<compile_context>
chip_gen: v7x
topology: tpu7x:2x2x1
jax: 0.10.0
libtpu: 0.0.40
codegen_flags: <defaults>
</compile_context>

<pallas_src>
import functools

import jax
import jax.numpy as jnp
from jax import lax
from jax.experimental import pallas as pl
from jax.experimental.pallas import tpu as pltpu

# ---- problem sizes (small, consistent with the module's image-restoration use)
H = 16
W = 16
C = 4            # image channels
CP = 8           # channels padded to one sublane tile
F = 32           # hidden channels of the conv denoiser
HW = H * W
N_FP_ITERS = 12  # "solver_img": plain fixed-point (forward) iteration count
# TODO(synk): the real solver_img is Anderson acceleration; a plain fixed-point
# iteration is used here (a valid solver for a contractive f).

_TAPS = [(dh, dw) for dh in (-1, 0, 1) for dw in (-1, 0, 1)]  # 3x3 conv taps
_CENTER = 4                                                    # index of (0, 0)


def _tap_masks():
    """(9, HW) zero-padding validity masks, destination-indexed, float32."""
    p = jnp.arange(HW, dtype=jnp.int32)
    hh = p // W
    ww = p - hh * W
    rows = []
    for dh, dw in _TAPS:
        valid = ((hh + dh) >= 0) & ((hh + dh) < H) & \
                ((ww + dw) >= 0) & ((ww + dw) < W)
        rows.append(valid.astype(jnp.float32))
    return jnp.stack(rows, axis=0)                 # (9, HW)


def deq_kernel(ny_ref, w1_ref, b1_ref, w2_ref, b2_ref, mask_ref, scal_ref,
               out_ref):
    Nn = ny_ref.shape[1]           # Bt * HW  (static)
    inv1pa = scal_ref[0]           # 1 / (1 + alpha)
    a_over = scal_ref[1]           # alpha / (1 + alpha)

    y = ny_ref[...]                # (CP, Nn) padded observation slab (rows C..7 = 0)

    # ---- loop invariants hoisted out of the fixed-point iteration -----------
    b1v = jnp.broadcast_to(b1_ref[...], (F, Nn))        # conv1 bias, broadcast once
    b2v = jnp.broadcast_to(b2_ref[...], (CP, Nn))       # sigma*conv2 bias, broadcast once
    inv1pa_v = jnp.broadcast_to(inv1pa, (CP, Nn))       # scalar splat hoisted
    yterm = y * a_over                                  # (alpha/(1+alpha)) * y

    def roll_tap(x, t):
        # shifted[p] = x[p + s_t]; wrapped destinations are masked to zero by
        # the caller, so the flat roll is exact per image even with Bt > 1.
        dh, dw = _TAPS[t]
        s = dh * W + dw
        if s == 0:
            return x
        return pltpu.roll(x, shift=(-s) % Nn, axis=1)

    def prox(z):
        # (z + alpha*y) / (1 + alpha)
        return z * inv1pa_v + yterm

    def denoise(u):
        # conv1: stack 9 shifted copies of the padded (CP,Nn) slab -> one
        # (F,72)@(72,Nn) bf16 matmul; single masked multiply on the whole slab.
        xs = jnp.concatenate([roll_tap(u, t) for t in range(9)], axis=0)  # (72,Nn)
        xs = xs * mask_ref[...]
        h = b1v + jnp.dot(w1_ref[...], xs.astype(jnp.bfloat16),
                          preferred_element_type=jnp.float32)             # (F,Nn)
        h = jnp.maximum(h, 0.0)

        # conv2: one (72,F)@(F,Nn) bf16 matmul (sigma pre-folded into weights),
        # then shift/mask the small 8-row OUTPUT slices and tree-sum them.
        ys = jnp.dot(w2_ref[...], h.astype(jnp.bfloat16),
                     preferred_element_type=jnp.float32)                  # (72,Nn)
        terms = [b2v]
        for t in range(9):
            yt = ys[CP * t:CP * (t + 1), :]                               # aligned slice
            if t == _CENTER:
                terms.append(yt)
            else:
                terms.append(roll_tap(yt, t) * mask_ref[CP * t:CP * (t + 1), :])
        # balanced pairwise tree sum: dependence depth ~4 instead of 9
        while len(terms) > 1:
            nxt = [terms[i] + terms[i + 1] for i in range(0, len(terms) - 1, 2)]
            if len(terms) % 2:
                nxt.append(terms[-1])
            terms = nxt
        return u - terms[0]

    def f(z):
        return denoise(prox(z))

    n_ipt = prox(y)                                              # f.calculate_prox(degrad)
    z = lax.fori_loop(0, N_FP_ITERS, lambda i, zz: f(zz), n_ipt)  # solver_img
    z = f(z)                                                     # z = self.f(z, sigma, ...)
    out_ref[...] = denoise(z)                                    # self.f.denoise(z, sigma, ...)


def init_params(key):
    """Deterministic synthetic parameters (shapes implied by the module's forward)."""
    k1, k2 = jax.random.split(key, 2)
    return dict(
        # per-tap conv matrices: w1[t] is (F, C), w2[t] is (C, F)
        w1=(jax.random.normal(k1, (9, F, C), jnp.float32) * 0.10),
        b1=jnp.zeros((F, 1), jnp.float32),
        w2=(jax.random.normal(k2, (9, C, F), jnp.float32) * 0.05),
        b2=jnp.zeros((C, 1), jnp.float32),
        # self.sigmaFactor = nn.Parameter(torch.tensor([sigmaFactor]))
        sigmaFactor=jnp.array([1.5], jnp.float32),
    )


@functools.partial(jax.jit, static_argnames=("degradMode", "sf"))
def deq_fixed_point_forward(n_y_nchw, blur_kernel, sigma, gt, params,
                            degradMode="denoising", sf=1):
    # Only the plain path is implemented (not 'inpainting', not 'SR').
    # TODO(synk): 'SR' branch needs cv2 bicubic resize + shift_pixel; 'inpainting'
    # branch overrides sigma and uses a masking prox — not implemented here.
    # `blur_kernel`, `gt`, `sf` are unused on this path (kept for signature parity).
    del blur_kernel, gt, sf, degradMode
    B = n_y_nchw.shape[0]

    # Images per grid step: fold batch into the matmul N dimension, but keep
    # >= 2 grid steps when possible so v7x's two TensorCores both get work.
    Bt = B // 2 if (B >= 2 and B % 2 == 0) else B
    G = B // Bt
    Nn = Bt * HW

    sigma_sc = jnp.asarray(sigma, jnp.float32).reshape(()) * params["sigmaFactor"][0]
    alpha = 1.0 / (sigma_sc * sigma_sc + 1e-6)
    inv1pa = 1.0 / (1.0 + alpha)
    scal = jnp.stack([inv1pa, alpha * inv1pa]).astype(jnp.float32)   # SMEM scalars

    # ---- host-side weight restructuring -------------------------------------
    # Pad each tap's channel block to 8 sublanes, stack taps, cast to bf16.
    w1p = jnp.pad(params["w1"], ((0, 0), (0, 0), (0, CP - C)))       # (9, F, 8)
    w1s = jnp.transpose(w1p, (1, 0, 2)).reshape(F, 9 * CP).astype(jnp.bfloat16)
    w2p = jnp.pad(params["w2"], ((0, 0), (0, CP - C), (0, 0)))       # (9, 8, F)
    w2s = (w2p.reshape(9 * CP, F) * sigma_sc).astype(jnp.bfloat16)   # sigma folded in
    b1 = params["b1"].astype(jnp.float32)                            # (F, 1)
    b2 = (jnp.pad(params["b2"], ((0, CP - C), (0, 0))) * sigma_sc
          ).astype(jnp.float32)                                      # (8, 1), sigma folded

    # Tap masks pre-broadcast to the full (72, Bt*HW) slab (periodic per image).
    masks = jnp.broadcast_to(_tap_masks()[:, None, None, :],
                             (9, CP, Bt, HW)).reshape(9 * CP, Nn)

    # NCHW -> (CP, B*HW): channels on sublanes (padded to 8), batch*spatial on lanes.
    ny = n_y_nchw.reshape(B, C, HW).astype(jnp.float32)
    ny = jnp.transpose(ny, (1, 0, 2)).reshape(C, B * HW)
    ny = jnp.pad(ny, ((0, CP - C), (0, 0)))                          # (8, B*HW)

    out = pl.pallas_call(
        deq_kernel,
        out_shape=jax.ShapeDtypeStruct((CP, B * HW), jnp.float32),
        grid=(G,),
        in_specs=[
            pl.BlockSpec((CP, Nn), lambda b: (0, b)),                # y (batched lanes)
            pl.BlockSpec((F, 9 * CP), lambda b: (0, 0)),             # conv1 weights (bf16)
            pl.BlockSpec((F, 1), lambda b: (0, 0)),                  # conv1 bias
            pl.BlockSpec((9 * CP, F), lambda b: (0, 0)),             # conv2 weights (bf16, *sigma)
            pl.BlockSpec((CP, 1), lambda b: (0, 0)),                 # conv2 bias (*sigma, padded)
            pl.BlockSpec((9 * CP, Nn), lambda b: (0, 0)),            # tap masks (pre-broadcast)
            pl.BlockSpec(memory_space=pltpu.MemorySpace.SMEM),       # [1/(1+a), a/(1+a)]
        ],
        out_specs=pl.BlockSpec((CP, Nn), lambda b: (0, b)),
        compiler_params=pltpu.CompilerParams(dimension_semantics=("parallel",)),
    )(ny, w1s, b1, w2s, b2, masks, scal)

    # (CP, B*HW) -> NCHW, dropping the padded channel rows.
    out = out[:C].reshape(C, B, HW)
    out = jnp.transpose(out, (1, 0, 2)).reshape(B, C, H, W)
    return out


if __name__ == "__main__":
    key = jax.random.PRNGKey(0)
    kp, kx = jax.random.split(key)
    params = init_params(kp)

    B = 4
    n_y = jax.random.uniform(kx, (B, C, H, W), jnp.float32)     # degraded input, NCHW
    blur_kernel = jnp.ones((B, 1, 3, 3), jnp.float32) / 9.0     # unused on this path
    gt = jnp.zeros_like(n_y)                                    # unused in forward compute
    sigma = 0.1

    out = deq_fixed_point_forward(n_y, blur_kernel, sigma, gt, params,
                                  degradMode="denoising", sf=1)
    out = jax.block_until_ready(out)

    assert out.shape == (B, C, H, W), out.shape
    assert bool(jnp.all(jnp.isfinite(out)))
    print("KERNEL_OK")
</pallas_src>

<mosaic_0001>
module attributes {stable_mosaic.version = 11 : i64} {
  func.func @deq_kernel(%arg0: i32, %arg1: memref<8x512xf32, #tpu.memory_space<vmem>>, %arg2: memref<32x72xbf16, #tpu.memory_space<vmem>>, %arg3: memref<32x1xf32, #tpu.memory_space<vmem>>, %arg4: memref<72x32xbf16, #tpu.memory_space<vmem>>, %arg5: memref<8x1xf32, #tpu.memory_space<vmem>>, %arg6: memref<72x512xf32, #tpu.memory_space<vmem>>, %arg7: memref<2xf32, #tpu.memory_space<smem>>, %arg8: memref<8x512xf32, #tpu.memory_space<vmem>>) attributes {dimension_semantics = [#tpu.dimension_semantics<parallel>], iteration_bounds = array<i64: 2>, scalar_prefetch = 0 : i64, scratch_operands = 0 : i64, tpu.core_type = #tpu.core_type<tc>, window_params = [{transform_indices = @transform_0, window_bounds = array<i64: 8, 512>}, {pipeline_mode = #tpu.pipeline_mode<synchronous>, transform_indices = @transform_1, window_bounds = array<i64: 32, 72>}, {pipeline_mode = #tpu.pipeline_mode<synchronous>, transform_indices = @transform_2, window_bounds = array<i64: 32, 1>}, {pipeline_mode = #tpu.pipeline_mode<synchronous>, transform_indices = @transform_3, window_bounds = array<i64: 72, 32>}, {pipeline_mode = #tpu.pipeline_mode<synchronous>, transform_indices = @transform_4, window_bounds = array<i64: 8, 1>}, {pipeline_mode = #tpu.pipeline_mode<synchronous>, transform_indices = @transform_5, window_bounds = array<i64: 72, 512>}, {transform_indices = @transform_6, window_bounds = array<i64: 2>}, {transform_indices = @transform_7, window_bounds = array<i64: 8, 512>}]} {
    %c0 = arith.constant 0 : index
    %0 = memref.load %arg7[%c0] : memref<2xf32, #tpu.memory_space<smem>>
    %c1 = arith.constant 1 : index
    %1 = memref.load %arg7[%c1] : memref<2xf32, #tpu.memory_space<smem>>
    %c0_0 = arith.constant 0 : index
    %c0_1 = arith.constant 0 : index
    %2 = vector.load %arg1[%c0_0, %c0_1] : memref<8x512xf32, #tpu.memory_space<vmem>>, vector<8x512xf32>
    %c0_2 = arith.constant 0 : index
    %c0_3 = arith.constant 0 : index
    %3 = vector.load %arg3[%c0_2, %c0_3] : memref<32x1xf32, #tpu.memory_space<vmem>>, vector<32x1xf32>
    %4 = vector.shape_cast %3 : vector<32x1xf32> to vector<32x1xf32>
    %5 = vector.broadcast %4 : vector<32x1xf32> to vector<32x512xf32>
    %c0_4 = arith.constant 0 : index
    %c0_5 = arith.constant 0 : index
    %6 = vector.load %arg5[%c0_4, %c0_5] : memref<8x1xf32, #tpu.memory_space<vmem>>, vector<8x1xf32>
    %7 = vector.shape_cast %6 : vector<8x1xf32> to vector<8x1xf32>
    %8 = vector.broadcast %7 : vector<8x1xf32> to vector<8x512xf32>
    %9 = vector.broadcast %0 : f32 to vector<8x512xf32>
    %10 = vector.broadcast %1 : f32 to vector<8x512xf32>
    %11 = arith.mulf %2, %10 : vector<8x512xf32>
    %12 = arith.mulf %2, %9 : vector<8x512xf32>
    %13 = arith.addf %12, %11 : vector<8x512xf32>
    %c0_i32 = arith.constant 0 : i32
    %c12_i32 = arith.constant 12 : i32
    %14 = arith.addi %c0_i32, %c12_i32 : i32
    %c1_i32 = arith.constant 1 : i32
    %15 = scf.for %arg9 = %c0_i32 to %14 step %c1_i32 iter_args(%arg10 = %13) -> (vector<8x512xf32>)  : i32 {
      %145 = arith.mulf %arg10, %9 : vector<8x512xf32>
      %146 = arith.addf %145, %11 : vector<8x512xf32>
      %c17_i32_75 = arith.constant 17 : i32
      %147 = tpu.dynamic_rotate %146 by %c17_i32_75 dim 1 : vector<8x512xf32>, i32 -> vector<8x512xf32>
      %c16_i32_76 = arith.constant 16 : i32
      %148 = tpu.dynamic_rotate %146 by %c16_i32_76 dim 1 : vector<8x512xf32>, i32 -> vector<8x512xf32>
      %c15_i32_77 = arith.constant 15 : i32
      %149 = tpu.dynamic_rotate %146 by %c15_i32_77 dim 1 : vector<8x512xf32>, i32 -> vector<8x512xf32>
      %c1_i32_78 = arith.constant 1 : i32
      %150 = tpu.dynamic_rotate %146 by %c1_i32_78 dim 1 : vector<8x512xf32>, i32 -> vector<8x512xf32>
      %c511_i32_79 = arith.constant 511 : i32
      %151 = tpu.dynamic_rotate %146 by %c511_i32_79 dim 1 : vector<8x512xf32>, i32 -> vector<8x512xf32>
      %c497_i32_80 = arith.constant 497 : i32
      %152 = tpu.dynamic_rotate %146 by %c497_i32_80 dim 1 : vector<8x512xf32>, i32 -> vector<8x512xf32>
      %c496_i32_81 = arith.constant 496 : i32
      %153 = tpu.dynamic_rotate %146 by %c496_i32_81 dim 1 : vector<8x512xf32>, i32 -> vector<8x512xf32>
      %c495_i32_82 = arith.constant 495 : i32
      %154 = tpu.dynamic_rotate %146 by %c495_i32_82 dim 1 : vector<8x512xf32>, i32 -> vector<8x512xf32>
      %155 = tpu.concatenate %147, %148, %149, %150, %146, %151, %152, %153, %154 in 0 : vector<8x512xf32>, vector<8x512xf32>, vector<8x512xf32>, vector<8x512xf32>, vector<8x512xf32>, vector<8x512xf32>, vector<8x512xf32>, vector<8x512xf32>, vector<8x512xf32> -> vector<72x512xf32>
      %c0_83 = arith.constant 0 : index
      %c0_84 = arith.constant 0 : index
      %156 = vector.load %arg6[%c0_83, %c0_84] : memref<72x512xf32, #tpu.memory_space<vmem>>, vector<72x512xf32>
      %157 = arith.mulf %155, %156 : vector<72x512xf32>
      %c0_85 = arith.constant 0 : index
      %c0_86 = arith.constant 0 : index
      %158 = vector.load %arg2[%c0_85, %c0_86] : memref<32x72xbf16, #tpu.memory_space<vmem>>, vector<32x72xbf16>
      %159 = arith.truncf %157 : vector<72x512xf32> to vector<72x512xbf16>
      %cst_87 = arith.constant dense<0.000000e+00> : vector<32x512xf32>
      %160 = tpu.matmul %158, %159, %cst_87 {dimension_numbers = #tpu.dot_dimension_numbers<[1], [0], [0], [1], [0, 0, 1, 1], [], []>} : vector<32x72xbf16>, vector<72x512xbf16>, vector<32x512xf32> -> vector<32x512xf32>
      %161 = arith.addf %5, %160 : vector<32x512xf32>
      %cst_88 = arith.constant 0.000000e+00 : f32
      %162 = vector.broadcast %cst_88 : f32 to vector<32x512xf32>
      %163 = arith.maximumf %161, %162 : vector<32x512xf32>
      %c0_89 = arith.constant 0 : index
      %c0_90 = arith.constant 0 : index
      %164 = vector.load %arg4[%c0_89, %c0_90] : memref<72x32xbf16, #tpu.memory_space<vmem>>, vector<72x32xbf16>
      %165 = arith.truncf %163 : vector<32x512xf32> to vector<32x512xbf16>
      %cst_91 = arith.constant dense<0.000000e+00> : vector<72x512xf32>
      %166 = tpu.matmul %164, %165, %cst_91 {dimension_numbers = #tpu.dot_dimension_numbers<[1], [0], [0], [1], [0, 0, 1, 1], [], []>} : vector<72x32xbf16>, vector<32x512xbf16>, vector<72x512xf32> -> vector<72x512xf32>
      %167 = vector.extract_strided_slice %166 {offsets = [0, 0], sizes = [8, 512], strides = [1, 1]} : vector<72x512xf32> to vector<8x512xf32>
      %c17_i32_92 = arith.constant 17 : i32
      %168 = tpu.dynamic_rotate %167 by %c17_i32_92 dim 1 : vector<8x512xf32>, i32 -> vector<8x512xf32>
      %c0_93 = arith.constant 0 : index
      %c0_94 = arith.constant 0 : index
      %169 = vector.load %arg6[%c0_93, %c0_94] : memref<72x512xf32, #tpu.memory_space<vmem>>, vector<8x512xf32>
      %170 = arith.mulf %168, %169 : vector<8x512xf32>
      %171 = vector.extract_strided_slice %166 {offsets = [8, 0], sizes = [8, 512], strides = [1, 1]} : vector<72x512xf32> to vector<8x512xf32>
      %c16_i32_95 = arith.constant 16 : i32
      %172 = tpu.dynamic_rotate %171 by %c16_i32_95 dim 1 : vector<8x512xf32>, i32 -> vector<8x512xf32>
      %c8_96 = arith.constant 8 : index
      %c0_97 = arith.constant 0 : index
      %173 = vector.load %arg6[%c8_96, %c0_97] : memref<72x512xf32, #tpu.memory_space<vmem>>, vector<8x512xf32>
      %174 = arith.mulf %172, %173 : vector<8x512xf32>
      %175 = vector.extract_strided_slice %166 {offsets = [16, 0], sizes = [8, 512], strides = [1, 1]} : vector<72x512xf32> to vector<8x512xf32>
      %c15_i32_98 = arith.constant 15 : i32
      %176 = tpu.dynamic_rotate %175 by %c15_i32_98 dim 1 : vector<8x512xf32>, i32 -> vector<8x512xf32>
      %c16_99 = arith.constant 16 : index
      %c0_100 = arith.constant 0 : index
      %177 = vector.load %arg6[%c16_99, %c0_100] : memref<72x512xf32, #tpu.memory_space<vmem>>, vector<8x512xf32>
      %178 = arith.mulf %176, %177 : vector<8x512xf32>
      %179 = vector.extract_strided_slice %166 {offsets = [24, 0], sizes = [8, 512], strides = [1, 1]} : vector<72x512xf32> to vector<8x512xf32>
      %c1_i32_101 = arith.constant 1 : i32
      %180 = tpu.dynamic_rotate %179 by %c1_i32_101 dim 1 : vector<8x512xf32>, i32 -> vector<8x512xf32>
      %c24_102 = arith.constant 24 : index
      %c0_103 = arith.constant 0 : index
      %181 = vector.load %arg6[%c24_102, %c0_103] : memref<72x512xf32, #tpu.memory_space<vmem>>, vector<8x512xf32>
      %182 = arith.mulf %180, %181 : vector<8x512xf32>
      %183 = vector.extract_strided_slice %166 {offsets = [32, 0], sizes = [8, 512], strides = [1, 1]} : vector<72x512xf32> to vector<8x512xf32>
      %184 = vector.extract_strided_slice %166 {offsets = [40, 0], sizes = [8, 512], strides = [1, 1]} : vector<72x512xf32> to vector<8x512xf32>
      %c511_i32_104 = arith.constant 511 : i32
      %185 = tpu.dynamic_rotate %184 by %c511_i32_104 dim 1 : vector<8x512xf32>, i32 -> vector<8x512xf32>
      %c40_105 = arith.constant 40 : index
      %c0_106 = arith.constant 0 : index
      %186 = vector.load %arg6[%c40_105, %c0_106] : memref<72x512xf32, #tpu.memory_space<vmem>>, vector<8x512xf32>
      %187 = arith.mulf %185, %186 : vector<8x512xf32>
      %188 = vector.extract_strided_slice %166 {offsets = [48, 0], sizes = [8, 512], strides = [1, 1]} : vector<72x512xf32> to vector<8x512xf32>
      %c497_i32_107 = arith.constant 497 : i32
      %189 = tpu.dynamic_rotate %188 by %c497_i32_107 dim 1 : vector<8x512xf32>, i32 -> vector<8x512xf32>
      %c48_108 = arith.constant 48 : index
      %c0_109 = arith.constant 0 : index
      %190 = vector.load %arg6[%c48_108, %c0_109] : memref<72x512xf32, #tpu.memory_space<vmem>>, vector<8x512xf32>
      %191 = arith.mulf %189, %190 : vector<8x512xf32>
      %192 = vector.extract_strided_slice %166 {offsets = [56, 0], sizes = [8, 512], strides = [1, 1]} : vector<72x512xf32> to vector<8x512xf32>
      %c496_i32_110 = arith.constant 496 : i32
      %193 = tpu.dynamic_rotate %192 by %c496_i32_110 dim 1 : vector<8x512xf32>, i32 -> vector<8x512xf32>
      %c56_111 = arith.constant 56 : index
      %c0_112 = arith.constant 0 : index
      %194 = vector.load %arg6[%c56_111, %c0_112] : memref<72x512xf32, #tpu.memory_space<vmem>>, vector<8x512xf32>
      %195 = arith.mulf %193, %194 : vector<8x512xf32>
      %196 = vector.extract_strided_slice %166 {offsets = [64, 0], sizes = [8, 512], strides = [1, 1]} : vector<72x512xf32> to vector<8x512xf32>
      %c495_i32_113 = arith.constant 495 : i32
      %197 = tpu.dynamic_rotate %196 by %c495_i32_113 dim 1 : vector<8x512xf32>, i32 -> vector<8x512xf32>
      %c64_114 = arith.constant 64 : index
      %c0_115 = arith.constant 0 : index
      %198 = vector.load %arg6[%c64_114, %c0_115] : memref<72x512xf32, #tpu.memory_space<vmem>>, vector<8x512xf32>
      %199 = arith.mulf %197, %198 : vector<8x512xf32>
      %200 = arith.addf %8, %170 : vector<8x512xf32>
      %201 = arith.addf %174, %178 : vector<8x512xf32>
      %202 = arith.addf %182, %183 : vector<8x512xf32>
      %203 = arith.addf %187, %191 : vector<8x512xf32>
      %204 = arith.addf %195, %199 : vector<8x512xf32>
      %205 = arith.addf %200, %201 : vector<8x512xf32>
      %206 = arith.addf %202, %203 : vector<8x512xf32>
      %207 = arith.addf %205, %206 : vector<8x512xf32>
      %208 = arith.addf %207, %204 : vector<8x512xf32>
      %209 = arith.subf %146, %208 : vector<8x512xf32>
      scf.yield %209 : vector<8x512xf32>
    }
    %16 = arith.mulf %15, %9 : vector<8x512xf32>
    %17 = arith.addf %16, %11 : vector<8x512xf32>
    %c17_i32 = arith.constant 17 : i32
    %18 = tpu.dynamic_rotate %17 by %c17_i32 dim 1 : vector<8x512xf32>, i32 -> vector<8x512xf32>
    %c16_i32 = arith.constant 16 : i32
    %19 = tpu.dynamic_rotate %17 by %c16_i32 dim 1 : vector<8x512xf32>, i32 -> vector<8x512xf32>
    %c15_i32 = arith.constant 15 : i32
    %20 = tpu.dynamic_rotate %17 by %c15_i32 dim 1 : vector<8x512xf32>, i32 -> vector<8x512xf32>
    %c1_i32_6 = arith.constant 1 : i32
    %21 = tpu.dynamic_rotate %17 by %c1_i32_6 dim 1 : vector<8x512xf32>, i32 -> vector<8x512xf32>
    %c511_i32 = arith.constant 511 : i32
    %22 = tpu.dynamic_rotate %17 by %c511_i32 dim 1 : vector<8x512xf32>, i32 -> vector<8x512xf32>
    %c497_i32 = arith.constant 497 : i32
    %23 = tpu.dynamic_rotate %17 by %c497_i32 dim 1 : vector<8x512xf32>, i32 -> vector<8x512xf32>
    %c496_i32 = arith.constant 496 : i32
    %24 = tpu.dynamic_rotate %17 by %c496_i32 dim 1 : vector<8x512xf32>, i32 -> vector<8x512xf32>
    %c495_i32 = arith.constant 495 : i32
    %25 = tpu.dynamic_rotate %17 by %c495_i32 dim 1 : vector<8x512xf32>, i32 -> vector<8x512xf32>
    %26 = tpu.concatenate %18, %19, %20, %21, %17, %22, %23, %24, %25 in 0 : vector<8x512xf32>, vector<8x512xf32>, vector<8x512xf32>, vector<8x512xf32>, vector<8x512xf32>, vector<8x512xf32>, vector<8x512xf32>, vector<8x512xf32>, vector<8x512xf32> -> vector<72x512xf32>
    %c0_7 = arith.constant 0 : index
    %c0_8 = arith.constant 0 : index
    %27 = vector.load %arg6[%c0_7, %c0_8] : memref<72x512xf32, #tpu.memory_space<vmem>>, vector<72x512xf32>
    %28 = arith.mulf %26, %27 : vector<72x512xf32>
    %c0_9 = arith.constant 0 : index
    %c0_10 = arith.constant 0 : index
    %29 = vector.load %arg2[%c0_9, %c0_10] : memref<32x72xbf16, #tpu.memory_space<vmem>>, vector<32x72xbf16>
    %30 = arith.truncf %28 : vector<72x512xf32> to vector<72x512xbf16>
    %cst = arith.constant dense<0.000000e+00> : vector<32x512xf32>
    %31 = tpu.matmul %29, %30, %cst {dimension_numbers = #tpu.dot_dimension_numbers<[1], [0], [0], [1], [0, 0, 1, 1], [], []>} : vector<32x72xbf16>, vector<72x512xbf16>, vector<32x512xf32> -> vector<32x512xf32>
    %32 = arith.addf %5, %31 : vector<32x512xf32>
    %cst_11 = arith.constant 0.000000e+00 : f32
    %33 = vector.broadcast %cst_11 : f32 to vector<32x512xf32>
    %34 = arith.maximumf %32, %33 : vector<32x512xf32>
    %c0_12 = arith.constant 0 : index
    %c0_13 = arith.constant 0 : index
    %35 = vector.load %arg4[%c0_12, %c0_13] : memref<72x32xbf16, #tpu.memory_space<vmem>>, vector<72x32xbf16>
    %36 = arith.truncf %34 : vector<32x512xf32> to vector<32x512xbf16>
    %cst_14 = arith.constant dense<0.000000e+00> : vector<72x512xf32>
    %37 = tpu.matmul %35, %36, %cst_14 {dimension_numbers = #tpu.dot_dimension_numbers<[1], [0], [0], [1], [0, 0, 1, 1], [], []>} : vector<72x32xbf16>, vector<32x512xbf16>, vector<72x512xf32> -> vector<72x512xf32>
    %38 = vector.extract_strided_slice %37 {offsets = [0, 0], sizes = [8, 512], strides = [1, 1]} : vector<72x512xf32> to vector<8x512xf32>
    %c17_i32_15 = arith.constant 17 : i32
    %39 = tpu.dynamic_rotate %38 by %c17_i32_15 dim 1 : vector<8x512xf32>, i32 -> vector<8x512xf32>
    %c0_16 = arith.constant 0 : index
    %c0_17 = arith.constant 0 : index
    %40 = vector.load %arg6[%c0_16, %c0_17] : memref<72x512xf32, #tpu.memory_space<vmem>>, vector<8x512xf32>
    %41 = arith.mulf %39, %40 : vector<8x512xf32>
    %42 = vector.extract_strided_slice %37 {offsets = [8, 0], sizes = [8, 512], strides = [1, 1]} : vector<72x512xf32> to vector<8x512xf32>
    %c16_i32_18 = arith.constant 16 : i32
    %43 = tpu.dynamic_rotate %42 by %c16_i32_18 dim 1 : vector<8x512xf32>, i32 -> vector<8x512xf32>
    %c8 = arith.constant 8 : index
    %c0_19 = arith.constant 0 : index
    %44 = vector.load %arg6[%c8, %c0_19] : memref<72x512xf32, #tpu.memory_space<vmem>>, vector<8x512xf32>
    %45 = arith.mulf %43, %44 : vector<8x512xf32>
    %46 = vector.extract_strided_slice %37 {offsets = [16, 0], sizes = [8, 512], strides = [1, 1]} : vector<72x512xf32> to vector<8x512xf32>
    %c15_i32_20 = arith.constant 15 : i32
    %47 = tpu.dynamic_rotate %46 by %c15_i32_20 dim 1 : vector<8x512xf32>, i32 -> vector<8x512xf32>
    %c16 = arith.constant 16 : index
    %c0_21 = arith.constant 0 : index
    %48 = vector.load %arg6[%c16, %c0_21] : memref<72x512xf32, #tpu.memory_space<vmem>>, vector<8x512xf32>
    %49 = arith.mulf %47, %48 : vector<8x512xf32>
    %50 = vector.extract_strided_slice %37 {offsets = [24, 0], sizes = [8, 512], strides = [1, 1]} : vector<72x512xf32> to vector<8x512xf32>
    %c1_i32_22 = arith.constant 1 : i32
    %51 = tpu.dynamic_rotate %50 by %c1_i32_22 dim 1 : vector<8x512xf32>, i32 -> vector<8x512xf32>
    %c24 = arith.constant 24 : index
    %c0_23 = arith.constant 0 : index
    %52 = vector.load %arg6[%c24, %c0_23] : memref<72x512xf32, #tpu.memory_space<vmem>>, vector<8x512xf32>
    %53 = arith.mulf %51, %52 : vector<8x512xf32>
    %54 = vector.extract_strided_slice %37 {offsets = [32, 0], sizes = [8, 512], strides = [1, 1]} : vector<72x512xf32> to vector<8x512xf32>
    %55 = vector.extract_strided_slice %37 {offsets = [40, 0], sizes = [8, 512], strides = [1, 1]} : vector<72x512xf32> to vector<8x512xf32>
    %c511_i32_24 = arith.constant 511 : i32
    %56 = tpu.dynamic_rotate %55 by %c511_i32_24 dim 1 : vector<8x512xf32>, i32 -> vector<8x512xf32>
    %c40 = arith.constant 40 : index
    %c0_25 = arith.constant 0 : index
    %57 = vector.load %arg6[%c40, %c0_25] : memref<72x512xf32, #tpu.memory_space<vmem>>, vector<8x512xf32>
    %58 = arith.mulf %56, %57 : vector<8x512xf32>
    %59 = vector.extract_strided_slice %37 {offsets = [48, 0], sizes = [8, 512], strides = [1, 1]} : vector<72x512xf32> to vector<8x512xf32>
    %c497_i32_26 = arith.constant 497 : i32
    %60 = tpu.dynamic_rotate %59 by %c497_i32_26 dim 1 : vector<8x512xf32>, i32 -> vector<8x512xf32>
    %c48 = arith.constant 48 : index
    %c0_27 = arith.constant 0 : index
    %61 = vector.load %arg6[%c48, %c0_27] : memref<72x512xf32, #tpu.memory_space<vmem>>, vector<8x512xf32>
    %62 = arith.mulf %60, %61 : vector<8x512xf32>
    %63 = vector.extract_strided_slice %37 {offsets = [56, 0], sizes = [8, 512], strides = [1, 1]} : vector<72x512xf32> to vector<8x512xf32>
    %c496_i32_28 = arith.constant 496 : i32
    %64 = tpu.dynamic_rotate %63 by %c496_i32_28 dim 1 : vector<8x512xf32>, i32 -> vector<8x512xf32>
    %c56 = arith.constant 56 : index
    %c0_29 = arith.constant 0 : index
    %65 = vector.load %arg6[%c56, %c0_29] : memref<72x512xf32, #tpu.memory_space<vmem>>, vector<8x512xf32>
    %66 = arith.mulf %64, %65 : vector<8x512xf32>
    %67 = vector.extract_strided_slice %37 {offsets = [64, 0], sizes = [8, 512], strides = [1, 1]} : vector<72x512xf32> to vector<8x512xf32>
    %c495_i32_30 = arith.constant 495 : i32
    %68 = tpu.dynamic_rotate %67 by %c495_i32_30 dim 1 : vector<8x512xf32>, i32 -> vector<8x512xf32>
    %c64 = arith.constant 64 : index
    %c0_31 = arith.constant 0 : index
    %69 = vector.load %arg6[%c64, %c0_31] : memref<72x512xf32, #tpu.memory_space<vmem>>, vector<8x512xf32>
    %70 = arith.mulf %68, %69 : vector<8x512xf32>
    %71 = arith.addf %8, %41 : vector<8x512xf32>
    %72 = arith.addf %45, %49 : vector<8x512xf32>
    %73 = arith.addf %53, %54 : vector<8x512xf32>
    %74 = arith.addf %58, %62 : vector<8x512xf32>
    %75 = arith.addf %66, %70 : vector<8x512xf32>
    %76 = arith.addf %71, %72 : vector<8x512xf32>
    %77 = arith.addf %73, %74 : vector<8x512xf32>
    %78 = arith.addf %76, %77 : vector<8x512xf32>
    %79 = arith.addf %78, %75 : vector<8x512xf32>
    %80 = arith.subf %17, %79 : vector<8x512xf32>
    %c17_i32_32 = arith.constant 17 : i32
    %81 = tpu.dynamic_rotate %80 by %c17_i32_32 dim 1 : vector<8x512xf32>, i32 -> vector<8x512xf32>
    %c16_i32_33 = arith.constant 16 : i32
    %82 = tpu.dynamic_rotate %80 by %c16_i32_33 dim 1 : vector<8x512xf32>, i32 -> vector<8x512xf32>
    %c15_i32_34 = arith.constant 15 : i32
    %83 = tpu.dynamic_rotate %80 by %c15_i32_34 dim 1 : vector<8x512xf32>, i32 -> vector<8x512xf32>
    %c1_i32_35 = arith.constant 1 : i32
    %84 = tpu.dynamic_rotate %80 by %c1_i32_35 dim 1 : vector<8x512xf32>, i32 -> vector<8x512xf32>
    %c511_i32_36 = arith.constant 511 : i32
    %85 = tpu.dynamic_rotate %80 by %c511_i32_36 dim 1 : vector<8x512xf32>, i32 -> vector<8x512xf32>
    %c497_i32_37 = arith.constant 497 : i32
    %86 = tpu.dynamic_rotate %80 by %c497_i32_37 dim 1 : vector<8x512xf32>, i32 -> vector<8x512xf32>
    %c496_i32_38 = arith.constant 496 : i32
    %87 = tpu.dynamic_rotate %80 by %c496_i32_38 dim 1 : vector<8x512xf32>, i32 -> vector<8x512xf32>
    %c495_i32_39 = arith.constant 495 : i32
    %88 = tpu.dynamic_rotate %80 by %c495_i32_39 dim 1 : vector<8x512xf32>, i32 -> vector<8x512xf32>
    %89 = tpu.concatenate %81, %82, %83, %84, %80, %85, %86, %87, %88 in 0 : vector<8x512xf32>, vector<8x512xf32>, vector<8x512xf32>, vector<8x512xf32>, vector<8x512xf32>, vector<8x512xf32>, vector<8x512xf32>, vector<8x512xf32>, vector<8x512xf32> -> vector<72x512xf32>
    %c0_40 = arith.constant 0 : index
    %c0_41 = arith.constant 0 : index
    %90 = vector.load %arg6[%c0_40, %c0_41] : memref<72x512xf32, #tpu.memory_space<vmem>>, vector<72x512xf32>
    %91 = arith.mulf %89, %90 : vector<72x512xf32>
    %c0_42 = arith.constant 0 : index
    %c0_43 = arith.constant 0 : index
    %92 = vector.load %arg2[%c0_42, %c0_43] : memref<32x72xbf16, #tpu.memory_space<vmem>>, vector<32x72xbf16>
    %93 = arith.truncf %91 : vector<72x512xf32> to vector<72x512xbf16>
    %cst_44 = arith.constant dense<0.000000e+00> : vector<32x512xf32>
    %94 = tpu.matmul %92, %93, %cst_44 {dimension_numbers = #tpu.dot_dimension_numbers<[1], [0], [0], [1], [0, 0, 1, 1], [], []>} : vector<32x72xbf16>, vector<72x512xbf16>, vector<32x512xf32> -> vector<32x512xf32>
    %95 = arith.addf %5, %94 : vector<32x512xf32>
    %cst_45 = arith.constant 0.000000e+00 : f32
    %96 = vector.broadcast %cst_45 : f32 to vector<32x512xf32>
    %97 = arith.maximumf %95, %96 : vector<32x512xf32>
    %c0_46 = arith.constant 0 : index
    %c0_47 = arith.constant 0 : index
    %98 = vector.load %arg4[%c0_46, %c0_47] : memref<72x32xbf16, #tpu.memory_space<vmem>>, vector<72x32xbf16>
    %99 = arith.truncf %97 : vector<32x512xf32> to vector<32x512xbf16>
    %cst_48 = arith.constant dense<0.000000e+00> : vector<72x512xf32>
    %100 = tpu.matmul %98, %99, %cst_48 {dimension_numbers = #tpu.dot_dimension_numbers<[1], [0], [0], [1], [0, 0, 1, 1], [], []>} : vector<72x32xbf16>, vector<32x512xbf16>, vector<72x512xf32> -> vector<72x512xf32>
    %101 = vector.extract_strided_slice %100 {offsets = [0, 0], sizes = [8, 512], strides = [1, 1]} : vector<72x512xf32> to vector<8x512xf32>
    %c17_i32_49 = arith.constant 17 : i32
    %102 = tpu.dynamic_rotate %101 by %c17_i32_49 dim 1 : vector<8x512xf32>, i32 -> vector<8x512xf32>
    %c0_50 = arith.constant 0 : index
    %c0_51 = arith.constant 0 : index
    %103 = vector.load %arg6[%c0_50, %c0_51] : memref<72x512xf32, #tpu.memory_space<vmem>>, vector<8x512xf32>
    %104 = arith.mulf %102, %103 : vector<8x512xf32>
    %105 = vector.extract_strided_slice %100 {offsets = [8, 0], sizes = [8, 512], strides = [1, 1]} : vector<72x512xf32> to vector<8x512xf32>
    %c16_i32_52 = arith.constant 16 : i32
    %106 = tpu.dynamic_rotate %105 by %c16_i32_52 dim 1 : vector<8x512xf32>, i32 -> vector<8x512xf32>
    %c8_53 = arith.constant 8 : index
    %c0_54 = arith.constant 0 : index
    %107 = vector.load %arg6[%c8_53, %c0_54] : memref<72x512xf32, #tpu.memory_space<vmem>>, vector<8x512xf32>
    %108 = arith.mulf %106, %107 : vector<8x512xf32>
    %109 = vector.extract_strided_slice %100 {offsets = [16, 0], sizes = [8, 512], strides = [1, 1]} : vector<72x512xf32> to vector<8x512xf32>
    %c15_i32_55 = arith.constant 15 : i32
    %110 = tpu.dynamic_rotate %109 by %c15_i32_55 dim 1 : vector<8x512xf32>, i32 -> vector<8x512xf32>
    %c16_56 = arith.constant 16 : index
    %c0_57 = arith.constant 0 : index
    %111 = vector.load %arg6[%c16_56, %c0_57] : memref<72x512xf32, #tpu.memory_space<vmem>>, vector<8x512xf32>
    %112 = arith.mulf %110, %111 : vector<8x512xf32>
    %113 = vector.extract_strided_slice %100 {offsets = [24, 0], sizes = [8, 512], strides = [1, 1]} : vector<72x512xf32> to vector<8x512xf32>
    %c1_i32_58 = arith.constant 1 : i32
    %114 = tpu.dynamic_rotate %113 by %c1_i32_58 dim 1 : vector<8x512xf32>, i32 -> vector<8x512xf32>
    %c24_59 = arith.constant 24 : index
    %c0_60 = arith.constant 0 : index
    %115 = vector.load %arg6[%c24_59, %c0_60] : memref<72x512xf32, #tpu.memory_space<vmem>>, vector<8x512xf32>
    %116 = arith.mulf %114, %115 : vector<8x512xf32>
    %117 = vector.extract_strided_slice %100 {offsets = [32, 0], sizes = [8, 512], strides = [1, 1]} : vector<72x512xf32> to vector<8x512xf32>
    %118 = vector.extract_strided_slice %100 {offsets = [40, 0], sizes = [8, 512], strides = [1, 1]} : vector<72x512xf32> to vector<8x512xf32>
    %c511_i32_61 = arith.constant 511 : i32
    %119 = tpu.dynamic_rotate %118 by %c511_i32_61 dim 1 : vector<8x512xf32>, i32 -> vector<8x512xf32>
    %c40_62 = arith.constant 40 : index
    %c0_63 = arith.constant 0 : index
    %120 = vector.load %arg6[%c40_62, %c0_63] : memref<72x512xf32, #tpu.memory_space<vmem>>, vector<8x512xf32>
    %121 = arith.mulf %119, %120 : vector<8x512xf32>
    %122 = vector.extract_strided_slice %100 {offsets = [48, 0], sizes = [8, 512], strides = [1, 1]} : vector<72x512xf32> to vector<8x512xf32>
    %c497_i32_64 = arith.constant 497 : i32
    %123 = tpu.dynamic_rotate %122 by %c497_i32_64 dim 1 : vector<8x512xf32>, i32 -> vector<8x512xf32>
    %c48_65 = arith.constant 48 : index
    %c0_66 = arith.constant 0 : index
    %124 = vector.load %arg6[%c48_65, %c0_66] : memref<72x512xf32, #tpu.memory_space<vmem>>, vector<8x512xf32>
    %125 = arith.mulf %123, %124 : vector<8x512xf32>
    %126 = vector.extract_strided_slice %100 {offsets = [56, 0], sizes = [8, 512], strides = [1, 1]} : vector<72x512xf32> to vector<8x512xf32>
    %c496_i32_67 = arith.constant 496 : i32
    %127 = tpu.dynamic_rotate %126 by %c496_i32_67 dim 1 : vector<8x512xf32>, i32 -> vector<8x512xf32>
    %c56_68 = arith.constant 56 : index
    %c0_69 = arith.constant 0 : index
    %128 = vector.load %arg6[%c56_68, %c0_69] : memref<72x512xf32, #tpu.memory_space<vmem>>, vector<8x512xf32>
    %129 = arith.mulf %127, %128 : vector<8x512xf32>
    %130 = vector.extract_strided_slice %100 {offsets = [64, 0], sizes = [8, 512], strides = [1, 1]} : vector<72x512xf32> to vector<8x512xf32>
    %c495_i32_70 = arith.constant 495 : i32
    %131 = tpu.dynamic_rotate %130 by %c495_i32_70 dim 1 : vector<8x512xf32>, i32 -> vector<8x512xf32>
    %c64_71 = arith.constant 64 : index
    %c0_72 = arith.constant 0 : index
    %132 = vector.load %arg6[%c64_71, %c0_72] : memref<72x512xf32, #tpu.memory_space<vmem>>, vector<8x512xf32>
    %133 = arith.mulf %131, %132 : vector<8x512xf32>
    %134 = arith.addf %8, %104 : vector<8x512xf32>
    %135 = arith.addf %108, %112 : vector<8x512xf32>
    %136 = arith.addf %116, %117 : vector<8x512xf32>
    %137 = arith.addf %121, %125 : vector<8x512xf32>
    %138 = arith.addf %129, %133 : vector<8x512xf32>
    %139 = arith.addf %134, %135 : vector<8x512xf32>
    %140 = arith.addf %136, %137 : vector<8x512xf32>
    %141 = arith.addf %139, %140 : vector<8x512xf32>
    %142 = arith.addf %141, %138 : vector<8x512xf32>
    %143 = arith.subf %80, %142 : vector<8x512xf32>
    %c0_73 = arith.constant 0 : index
    %c0_74 = arith.constant 0 : index
    %144 = vector.load %arg8[%c0_73, %c0_74] : memref<8x512xf32, #tpu.memory_space<vmem>>, vector<8x512xf32>
    tpu.vector_store %arg8[%c0_73, %c0_74], %143 {strides = array<i32>} : memref<8x512xf32, #tpu.memory_space<vmem>>, vector<8x512xf32>,
    return
  }
  func.func @transform_0(%arg0: i32) -> (i32, i32) {
    %c0_i32 = arith.constant 0 : i32
    %c0_i32_0 = arith.constant 0 : i32
    return %c0_i32, %arg0 : i32, i32
  }
  func.func @transform_1(%arg0: i32) -> (i32, i32) {
    %c0_i32 = arith.constant 0 : i32
    %c0_i32_0 = arith.constant 0 : i32
    %c0_i32_1 = arith.constant 0 : i32
    return %c0_i32, %c0_i32_0 : i32, i32
  }
  func.func @transform_2(%arg0: i32) -> (i32, i32) {
    %c0_i32 = arith.constant 0 : i32
    %c0_i32_0 = arith.constant 0 : i32
    %c0_i32_1 = arith.constant 0 : i32
    return %c0_i32, %c0_i32_0 : i32, i32
  }
  func.func @transform_3(%arg0: i32) -> (i32, i32) {
    %c0_i32 = arith.constant 0 : i32
    %c0_i32_0 = arith.constant 0 : i32
    %c0_i32_1 = arith.constant 0 : i32
    return %c0_i32, %c0_i32_0 : i32, i32
  }
  func.func @transform_4(%arg0: i32) -> (i32, i32) {
    %c0_i32 = arith.constant 0 : i32
    %c0_i32_0 = arith.constant 0 : i32
    %c0_i32_1 = arith.constant 0 : i32
    return %c0_i32, %c0_i32_0 : i32, i32
  }
  func.func @transform_5(%arg0: i32) -> (i32, i32) {
    %c0_i32 = arith.constant 0 : i32
    %c0_i32_0 = arith.constant 0 : i32
    %c0_i32_1 = arith.constant 0 : i32
    return %c0_i32, %c0_i32_0 : i32, i32
  }
  func.func @transform_6(%arg0: i32) -> i32 {
    %c0_i32 = arith.constant 0 : i32
    %c0_i32_0 = arith.constant 0 : i32
    return %c0_i32 : i32
  }
  func.func @transform_7(%arg0: i32) -> (i32, i32) {
    %c0_i32 = arith.constant 0 : i32
    %c0_i32_0 = arith.constant 0 : i32
    return %c0_i32, %arg0 : i32, i32
  }
}

</mosaic_0001>

<bundles_post_ra>
// kernel: deq_fixed_point_forward.1
= control target key start
LH: loop header
LB: loop body
LE: loop exit
PB: predicated region body
PF: predicated region fallthrough
CT: control target
= control target key end

     0   :  { %12 = vsyncpa [#allocation3], 0  ;;  %s2999_s24 = smov 0   ;;  %s4816_s0 = inlined_call_operand.vmem [shape: f32[8,1024], index: 0, kind: input, shape index: {}]   ;;  %s4817_s1 = inlined_call_operand.vmem [shape: bf16[32,72], index: 1, kind: input, shape index: {}]   ;;  %s4818_s2 = inlined_call_operand.vmem [shape: f32[32,1], index: 2, kind: input, shape index: {}]   ;;  %s4819_s3 = inlined_call_operand.vmem [shape: bf16[72,32], index: 3, kind: input, shape index: {}]   ;;  %s4820_s4 = inlined_call_operand.vmem [shape: f32[8,1], index: 4, kind: input, shape index: {}]   ;;  %s4821_s5 = inlined_call_operand.vmem [shape: f32[72,512], index: 5, kind: input, shape index: {}]   ;;  %s4822_s6 = inlined_call_operand.vmem [shape: f32[2], index: 6, kind: input, shape index: {}]   ;;  %s4823_s7 = inlined_call_operand.vmem [shape: f32[8,1024], index: 7, kind: output, shape index: {}]  }
   0x1 LB: > { %s2670_s25 = sadd.s32 4294967295, %s2918_s24   ;;  %p2672_p0 = scmp.ge.s32.totalorder %s2918_s24, 1  ;;  %s2918_s24 = sphi %s2999_s24, %s18_s24  }
   0x2   : > { %p201_p1 = scmp.lt.s32.totalorder %s2918_s24, 3  ;;  %s229_s28 = sshll.u32 %s4822_s6, 4  ;;  %s230_s28 = int_to_ptr.vmem [resolvable:$true] %s229_s28 }
   0x3   : > { %p3014_p3 = scmp.eq.s32.totalorder %s2670_s25, 0  ;;  %s2873_s8 = scalar_lea.vmem %s230_s28, 16 }
   0x4   : > { %p3010_p2 = pnand %p2672_p0, %p201_p1  ;;  %p2874_p6 = scmp.ne.s32.totalorder %s230_s28, %s2873_s8 }
   0x5   : > { %p2881_p10 = scmp.lt.s32.totalorder %s230_s28, %s230_s28  ;;  %p2882_p11 = scmp.lt.s32.totalorder %s2873_s8, %s2873_s8 }
   0x6   : > { %p2750_p4 = pneg %p3010_p2 }
   0x7   : > { %p2883_p12 = por %p2882_p11, %p2881_p10 }
   0x8   : > { %p2751_p5 = pnand %p3014_p3, %p2750_p4 }
   0xa   : > { %p2875_p7 = pneg %p2751_p5 }
   0xc   : > { %p2876_p8 = pnand %p2875_p7, %p2874_p6 }
   0xe   : > { %p2877_p9 = pneg %p2876_p8 }
  0x10   : > { %p2884_p13 = pnand %p2883_p12, %p2877_p9 }
  0x12   : > { %2887 = shalt.err (!%p2884_p13)
}
  0x13   : > { %s2940_s9 = smov [#allocation2]   ;;  %251 = sbr.rel (%p3010_p2) target bundleno = 2611 (0xa33), region = 48 }
  0x14   : > { %2753 = dma.vmem_to_smem (!%p2751_p5), %s230_s28, 16, %s2940_s9, [#allocation3]  }
  0x1a   : > { %2913 = dma.done.wait (%p3014_p3), [#allocation3], 16  }
  0x1b   : > { %2915 = vsyncadd (%p3014_p3), [#allocation3], 4294967280 }
  0x1c   : > { %257 = sfence }
  0x1d   : > { %v305_v0 = vld [vmem:[%s4818_s2 + $0x10] sm:$0xff]  ;;  %v303_v1 = vld [vmem:[%s4818_s2] sm:$0xff]  ;;  %s2677_s14 = sshll.u32 %s2670_s25, 2  ;;  %v4824_v2 = vmov 0   ;;  %s297_s15 = sld [smem:[#allocation2]]  ;;  %v306_v3 = vld [vmem:[%s4818_s2 + $0x18] sm:$0xff] }
  0x1e   : > { %2824 = vset.pattern.permute.xlu1 %v4824_v2  ;;  %2823 = vset.pattern.permute.xlu0 %v4824_v2  ;;  %p285_p0 = scmp.lt.s32.totalorder %s2677_s14, 7  ;;  %s2681_s16 = sld [smem:[#allocation2 + $0x1]]  ;;  %v304_v4 = vld [vmem:[%s4818_s2 + $0x8] sm:$0xff]  ;;  %v327_v5 = vld [vmem:[%s4820_s4] sm:$0xff] }
  0x1f   : > { %319 = vperm.xlu1 %2824, %v305_v0   ;;  %309 = vperm.xlu0 %2823, %v303_v1   ;;  %s3089_s8 = smov 0  }
  0x20   : > { %s4979_s14 = smov (!%p285_p0, %s2677_s14), 7 }
  0x21   : > { %s2678_s21 = sshll.u32 %s4979_s14, 3 }
  0x22   : > { %s288_s27 = scalar_lea.vmem %s4816_s0, %s2678_s21  ;;  %s3056_s30 = scalar_lea.vmem %s4823_s7, %s2678_s21 }
  0x23   : > { %324 = vperm.xlu1 %2824, %v306_v3   ;;  %314 = vperm.xlu0 %2823, %v304_v4   ;;  %v299_v6 = vld [vmem:[%s288_s27] sm:$0xff]  ;;  %v300_v7 = vld [vmem:[%s288_s27 + $0x8] sm:$0xff]  ;;  %v301_v8 = vld [vmem:[%s288_s27 + $0x10] sm:$0xff]  ;;  %v3048_v9 = vstv %s297_s15 }
  0x24   : > { %4886 = vst [vmem:[#allocation5_spill] sm:$0xff] %v3048_v9  ;;  %v302_v10 = vld [vmem:[%s288_s27 + $0x18] sm:$0xff]  ;;  %v334_v11 = vstv %s2681_s16  ;;  %v339_v12 = vmul.f32 %v3048_v9, %v299_v6  ;;  %v340_v13 = vmul.f32 %v3048_v9, %v300_v7  ;;  %v341_v14 = vmul.f32 %v3048_v9, %v301_v8 }
  0x25   : > { %v3058_v15 = vmul.f32 %v334_v11, %v299_v6  ;;  %v3060_v16 = vmul.f32 %v334_v11, %v300_v7  ;;  %v3062_v17 = vmul.f32 %v334_v11, %v301_v8  ;;  %v3064_v18 = vmul.f32 %v334_v11, %v302_v10 }
  0x26   : > { %v342_v19 = vmul.f32 %v3048_v9, %v302_v10 }
  0x27   : > { %4887 = vst [vmem:[#allocation6_spill] sm:$0xff] %v3058_v15  ;;  %4888 = vst [vmem:[#allocation7_spill] sm:$0xff] %v3060_v16  ;;  %330 = vperm.xlu0 %2823, %v327_v5   ;;  %v343_v20 = vadd.f32 %v339_v12, %v3058_v15   ;;  %v344_v21 = vadd.f32 %v340_v13, %v3060_v16   ;;  %v345_v22 = vadd.f32 %v341_v14, %v3062_v17  }
  0x28   : > { %4889 = vst [vmem:[#allocation8_spill] sm:$0xff] %v3062_v17  ;;  %4890 = vst [vmem:[#allocation9_spill] sm:$0xff] %v3064_v18  ;;  %v346_v23 = vadd.f32 %v342_v19, %v3064_v18  }
  0x9e   : > { %v3071_v24 = vpop.permute.xlu1 %319  ;;  %v3073_v25 = vpop.permute.xlu0 %309 }
  0x9f   : > { %4891 = vst [vmem:[#allocation10_spill] sm:$0xff] %v3071_v24  ;;  %4892 = vst [vmem:[#allocation11_spill] sm:$0xff] %v3073_v25 }
  0xa2   : > { %v3075_v26 = vpop.permute.xlu1 %324  ;;  %v3077_v27 = vpop.permute.xlu0 %314 }
  0xa3   : > { %4893 = vst [vmem:[#allocation12_spill] sm:$0xff] %v3075_v26  ;;  %4894 = vst [vmem:[#allocation13_spill] sm:$0xff] %v3077_v27 }
  0xa6   : > { %v3079_v28 = vpop.permute.xlu0 %330 }
  0xa7 LB: >> { %v4896_v24 = vld [vmem:[#allocation10_spill] sm:$0xff]  ;;  %v4898_v9 = vld [vmem:[#allocation5_spill] sm:$0xff]  ;;  %v4899_v25 = vld [vmem:[#allocation11_spill] sm:$0xff]  ;;  %s2942_s9 = smov 17   ;;  %s2943_s10 = smov 16   ;;  %v4826_v37 = vmov 0   ;;  %v373_v38 = vlaneseq  ;;  %s2938_s8 = sphi %s3089_s8, %s352_s8   ;;  %v2934_v20 = vphi %v343_v20, %v4924_v20   ;;  %v2930_v21 = vphi %v344_v21, %v4923_v21   ;;  %v2926_v22 = vphi %v345_v22, %v4922_v22   ;;  %v2922_v23 = vphi %v346_v23, %v4921_v23  }
  0xa8   : >> { %v357_v29 = vmul.f32 %v2934_v20, %v4898_v9  ;;  %v359_v30 = vmul.f32 %v2926_v22, %v4898_v9  ;;  %v358_v31 = vmul.f32 %v2930_v21, %v4898_v9  ;;  %v360_v32 = vmul.f32 %v2922_v23, %v4898_v9  ;;  %v4900_v15 = vld [vmem:[#allocation6_spill] sm:$0xff]  ;;  %v4902_v17 = vld [vmem:[#allocation8_spill] sm:$0xff]  ;;  %v4904_v16 = vld [vmem:[#allocation7_spill] sm:$0xff]  ;;  %s2944_s11 = smov 15   ;;  %s2945_s12 = smov 1   ;;  %629 = vmatprep.mubr.bf16.mxu0 %v4826_v37 }
  0xa9   : >> { %v4906_v18 = vld [vmem:[#allocation9_spill] sm:$0xff]  ;;  %s2946_s13 = smov 127   ;;  %s2947_s14 = smov 113   ;;  %682 = vmatprep.mubr.bf16.mxu1 %v4826_v37  ;;  %v3180_v41 = vand.u32 127, %v373_v38  ;;  %v3189_v45 = vld [vmem:[%s4821_s5 + $0x8] sm:$0xff]  ;;  %v3199_v49 = vld [vmem:[%s4821_s5 + $0x10] sm:$0xff] }
  0xaa   : >> { %v4895_v27 = vld [vmem:[#allocation13_spill] sm:$0xff]  ;;  %v4897_v26 = vld [vmem:[#allocation12_spill] sm:$0xff]  ;;  %v3103_v33 = vadd.f32 %v357_v29, %v4900_v15  ;;  %v3106_v34 = vadd.f32 %v359_v30, %v4902_v17  ;;  %v3113_v35 = vadd.f32 %v358_v31, %v4904_v16  ;;  %v3116_v36 = vadd.f32 %v360_v32, %v4906_v18  ;;  %s2948_s15 = smov 112   ;;  %s2950_s16 = smov 111   ;;  %v3194_v46 = vld [vmem:[%s4821_s5 + $0x28] sm:$0xff] }
  0xab   : >> { %vm375_vm0 = vcmp.lt.s32.totalorder %v3180_v41, 17  ;;  %vm388_vm1 = vcmp.lt.s32.totalorder %v3180_v41, 16  ;;  %v3208_v52 = vld [vmem:[%s4821_s5] sm:$0xff]  ;;  %v3215_v54 = vld [vmem:[%s4821_s5 + $0x30] sm:$0xff]  ;;  %v3229_v59 = vld [vmem:[%s4821_s5 + $0x18] sm:$0xff]  ;;  %vm401_vm2 = vcmp.lt.s32.totalorder %v3180_v41, 15 }
  0xac   : >> { %4901 = vst [vmem:[#allocation14_spill] sm:$0xff] %v3103_v33  ;;  %4903 = vst [vmem:[#allocation15_spill] sm:$0xff] %v3106_v34  ;;  %365 = vrot.lane.b32.xlu0 %v3103_v33, %s2942_s9  ;;  %369 = vrot.lane.b32.xlu1 %v3106_v34, %s2942_s9  ;;  %v3224_v58 = vld [vmem:[%s4821_s5 + $0x20] sm:$0xff]  ;;  %v3234_v60 = vld [vmem:[%s4821_s5 + $0x38] sm:$0xff]  ;;  %vm414_vm3 = vcmp.lt.s32.totalorder %v3180_v41, 1  ;;  %vm427_vm4 = vcmp.lt.s32.totalorder %v3180_v41, 127 }
  0xad   : >> { %4905 = vst [vmem:[#allocation16_spill] sm:$0xff] %v3113_v35  ;;  %4907 = vst [vmem:[#allocation17_spill] sm:$0xff] %v3116_v36  ;;  %v3253_v22 = vld [vmem:[%s4821_s5 + $0x48] sm:$0xff]  ;;  %v3265_v32 = vld [vmem:[%s4821_s5 + $0x50] sm:$0xff]  ;;  %vm453_vm5 = vcmp.lt.s32.totalorder %v3180_v41, 112  ;;  %vm440_vm6 = vcmp.lt.s32.totalorder %v3180_v41, 113 }
  0xae   : >> { %v3260_v29 = vld [vmem:[%s4821_s5 + $0x68] sm:$0xff]  ;;  %vm466_vm7 = vcmp.lt.s32.totalorder %v3180_v41, 111  ;;  %vm584_vm8 = vcmask 1043456   ;;  %vm577_vm9 = vcmask 588800   ;;  %vm775_vm10 = vcmask 261120   ;;  %s352_s8 = sadd.s32 1, %s2938_s8  }
  0xaf   : >> { %p349_p1 = scmp.ge.s32.totalorder %s352_s8, 12  }
  0xb0   : >> { %367 = vrot.lane.b32.xlu0 %v3113_v35, %s2942_s9  ;;  %371 = vrot.lane.b32.xlu1 %v3116_v36, %s2942_s9  ;;  %s2953_s8 = smov (%p349_p1), 15  }
  0xb4   : >> { %380 = vrot.lane.b32.xlu0 %v3103_v33, %s2943_s10  ;;  %382 = vrot.lane.b32.xlu1 %v3113_v35, %s2943_s10 }
  0xb8   : >> { %384 = vrot.lane.b32.xlu0 %v3106_v34, %s2943_s10  ;;  %386 = vrot.lane.b32.xlu1 %v3116_v36, %s2943_s10 }
  0xbc   : >> { %393 = vrot.lane.b32.xlu0 %v3103_v33, %s2944_s11  ;;  %395 = vrot.lane.b32.xlu1 %v3113_v35, %s2944_s11 }
  0xc0   : >> { %397 = vrot.lane.b32.xlu0 %v3106_v34, %s2944_s11  ;;  %399 = vrot.lane.b32.xlu1 %v3116_v36, %s2944_s11 }
  0xc4   : >> { %406 = vrot.lane.b32.xlu0 %v3103_v33, %s2945_s12  ;;  %408 = vrot.lane.b32.xlu1 %v3113_v35, %s2945_s12 }
  0xc8   : >> { %410 = vrot.lane.b32.xlu0 %v3106_v34, %s2945_s12  ;;  %412 = vrot.lane.b32.xlu1 %v3116_v36, %s2945_s12 }
  0xcc   : >> { %419 = vrot.lane.b32.xlu0 %v3103_v33, %s2946_s13  ;;  %421 = vrot.lane.b32.xlu1 %v3113_v35, %s2946_s13 }
  0xd0   : >> { %423 = vrot.lane.b32.xlu0 %v3106_v34, %s2946_s13  ;;  %425 = vrot.lane.b32.xlu1 %v3116_v36, %s2946_s13 }
  0xd4   : >> { %432 = vrot.lane.b32.xlu0 %v3103_v33, %s2947_s14  ;;  %434 = vrot.lane.b32.xlu1 %v3113_v35, %s2947_s14 }
  0xd8   : >> { %436 = vrot.lane.b32.xlu0 %v3106_v34, %s2947_s14  ;;  %438 = vrot.lane.b32.xlu1 %v3116_v36, %s2947_s14 }
  0xdc   : >> { %445 = vrot.lane.b32.xlu0 %v3103_v33, %s2948_s15  ;;  %447 = vrot.lane.b32.xlu1 %v3113_v35, %s2948_s15 }
  0xe0   : >> { %449 = vrot.lane.b32.xlu0 %v3106_v34, %s2948_s15  ;;  %451 = vrot.lane.b32.xlu1 %v3116_v36, %s2948_s15 }
  0xe4   : >> { %458 = vrot.lane.b32.xlu0 %v3103_v33, %s2950_s16  ;;  %460 = vrot.lane.b32.xlu1 %v3113_v35, %s2950_s16 }
  0xe8   : >> { %462 = vrot.lane.b32.xlu0 %v3106_v34, %s2950_s16  ;;  %464 = vrot.lane.b32.xlu1 %v3116_v36, %s2950_s16 }
 0x11e   : >> { %v366_v39 = vpop.permute.xlu0 %365  ;;  %v370_v40 = vpop.permute.xlu1 %369 }
 0x122   : >> { %v368_v42 = vpop.permute.xlu0 %367  ;;  %v372_v43 = vpop.permute.xlu1 %371 }
 0x123   : >> { %v378_v44 = vsel %vm375_vm0, %v366_v39, %v368_v42  ;;  %v377_v50 = vsel %vm375_vm0, %v368_v42, %v370_v40  ;;  %v379_v53 = vsel %vm375_vm0, %v372_v43, %v366_v39  ;;  %v376_v57 = vsel %vm375_vm0, %v370_v40, %v372_v43  ;;  %v3275_v42 = vld [vmem:[%s4821_s5 + $0x40] sm:$0xff]  ;;  %v3280_v43 = vld [vmem:[%s4821_s5 + $0x58] sm:$0xff] }
 0x124   : >> { %v508_v55 = vmul.f32 %v3189_v45, %v378_v44  ;;  %v509_v61 = vmul.f32 %v3199_v49, %v377_v50  ;;  %v507_v1 = vmul.f32 %v3208_v52, %v379_v53  ;;  %v510_v8 = vmul.f32 %v3229_v59, %v376_v57  ;;  %v3290_v50 = vld [vmem:[%s4821_s5 + $0x70] sm:$0xff]  ;;  %v3300_v53 = vld [vmem:[%s4821_s5 + $0x78] sm:$0xff] }
 0x126   : >> { %v381_v47 = vpop.permute.xlu0 %380  ;;  %v383_v48 = vpop.permute.xlu1 %382 }
 0x127   : >> { %v391_v51 = vsel %vm388_vm1, %v381_v47, %v383_v48 }
 0x128   : >> { %v512_v56 = vmul.f32 %v3194_v46, %v391_v51  ;;  %v3295_v51 = vld [vmem:[%s4821_s5 + $0x60] sm:$0xff] }
 0x12a   : >> { %v385_v62 = vpop.permute.xlu0 %384  ;;  %v387_v63 = vpop.permute.xlu1 %386  ;;  %v548_v0 = vpack.c.bf16 %v512_v56, %v508_v55 }
 0x12b   : >> { %v390_v3 = vsel %vm388_vm1, %v383_v48, %v385_v62  ;;  %v389_v4 = vsel %vm388_vm1, %v385_v62, %v387_v63  ;;  %v392_v5 = vsel %vm388_vm1, %v387_v63, %v381_v47 }
 0x12c   : >> { %v513_v6 = vmul.f32 %v3215_v54, %v390_v3  ;;  %v511_v7 = vmul.f32 %v3224_v58, %v392_v5  ;;  %597 = vmatprep.subr.bf16.mxu0 %v548_v0  ;;  %v514_v10 = vmul.f32 %v3234_v60, %v389_v4 }
 0x12e   : >> { %v394_v11 = vpop.permute.xlu0 %393  ;;  %v396_v12 = vpop.permute.xlu1 %395  ;;  %v547_v13 = vpack.c.bf16 %v511_v7, %v507_v1  ;;  %v550_v14 = vpack.c.bf16 %v514_v10, %v510_v8  ;;  %v549_v19 = vpack.c.bf16 %v513_v6, %v509_v61 }
 0x12f   : >> { %v404_v23 = vsel %vm401_vm2, %v394_v11, %v396_v12 }
 0x130   : >> { %598 = vmatpush1.bf16.msra.mxu0 %v547_v13  ;;  %650 = vmatprep.subr.bf16.mxu1 %v550_v14  ;;  %v516_v40 = vmul.f32 %v3253_v22, %v404_v23  ;;  %v487_v13 = vld [vmem:[%s4821_s5 + $0x80] sm:$0xff]  ;;  %v488_v14 = vld [vmem:[%s4821_s5 + $0x88] sm:$0xff] }
 0x131   : >> { %651 = vmatpush1.bf16.msra.mxu1 %v549_v19  ;;  %v490_v19 = vld [vmem:[%s4821_s5 + $0x98] sm:$0xff] }
 0x132   : >> { %v398_v20 = vpop.permute.xlu0 %397  ;;  %v400_v21 = vpop.permute.xlu1 %399 }
 0x133   : >> { %v403_v38 = vsel %vm401_vm2, %v396_v12, %v398_v20  ;;  %v405_v44 = vsel %vm401_vm2, %v400_v21, %v394_v11  ;;  %v402_v48 = vsel %vm401_vm2, %v398_v20, %v400_v21  ;;  %v489_v20 = vld [vmem:[%s4821_s5 + $0x90] sm:$0xff]  ;;  %v3330_v21 = vld [vmem:[%s4821_s5 + $0xa0] sm:$0xff] }
 0x134   : >> { %v517_v55 = vmul.f32 %v3265_v32, %v403_v38  ;;  %v515_v62 = vmul.f32 %v3275_v42, %v405_v44  ;;  %v518_v3 = vmul.f32 %v3280_v43, %v402_v48  ;;  %v3347_v38 = vld [vmem:[%s4821_s5 + $0xb8] sm:$0xff]  ;;  %v524_v44 = vmul.f32 %v488_v14, %v3113_v35  ;;  %v3368_v14 = vld [vmem:[%s4821_s5 + $0xc8] sm:$0xff] }
 0x135   : >> { %v523_v48 = vmul.f32 %v487_v13, %v3103_v33 }
 0x136   : >> { %v407_v30 = vpop.permute.xlu0 %406  ;;  %v409_v31 = vpop.permute.xlu1 %408 }
 0x137   : >> { %v417_v39 = vsel %vm414_vm3, %v407_v30, %v409_v31 }
 0x138   : >> { %v520_v47 = vmul.f32 %v3260_v29, %v417_v39 }
 0x13a   : >> { %v411_v56 = vpop.permute.xlu0 %410  ;;  %v413_v57 = vpop.permute.xlu1 %412  ;;  %v552_v61 = vpack.c.bf16 %v520_v47, %v516_v40  ;;  %v526_v47 = vmul.f32 %v490_v19, %v3116_v36 }
 0x13b   : >> { %v416_v63 = vsel %vm414_vm3, %v409_v31, %v411_v56  ;;  %v415_v0 = vsel %vm414_vm3, %v411_v56, %v413_v57  ;;  %v418_v1 = vsel %vm414_vm3, %v413_v57, %v407_v30  ;;  %v3337_v30 = vld [vmem:[%s4821_s5 + $0xa8] sm:$0xff]  ;;  %v3342_v31 = vld [vmem:[%s4821_s5 + $0xb0] sm:$0xff] }
 0x13c   : >> { %v521_v4 = vmul.f32 %v3290_v50, %v416_v63  ;;  %v519_v5 = vmul.f32 %v3295_v51, %v418_v1  ;;  %v522_v6 = vmul.f32 %v3300_v53, %v415_v0  ;;  %599 = vmatprep.subr.bf16.mxu0 %v552_v61 }
 0x13e   : >> { %v420_v7 = vpop.permute.xlu0 %419  ;;  %v422_v8 = vpop.permute.xlu1 %421  ;;  %v551_v10 = vpack.c.bf16 %v519_v5, %v515_v62  ;;  %v554_v11 = vpack.c.bf16 %v522_v6, %v518_v3  ;;  %v553_v12 = vpack.c.bf16 %v521_v4, %v517_v55  ;;  %v525_v55 = vmul.f32 %v489_v20, %v3106_v34  ;;  %v3375_v20 = vld [vmem:[%s4821_s5 + $0xd0] sm:$0xff] }
 0x13f   : >> { %v430_v23 = vsel %vm427_vm4, %v420_v7, %v422_v8 }
 0x140   : >> { %600 = vmatpush1.bf16.msra.mxu0 %v551_v10  ;;  %652 = vmatprep.subr.bf16.mxu1 %v554_v11  ;;  %v527_v56 = vmul.f32 %v3330_v21, %v430_v23 }
 0x141   : >> { %653 = vmatpush1.bf16.msra.mxu1 %v553_v12 }
 0x142   : >> { %v424_v39 = vpop.permute.xlu0 %423  ;;  %v426_v40 = vpop.permute.xlu1 %425  ;;  %v555_v11 = vpack.c.bf16 %v527_v56, %v523_v48  ;;  %v3396_v48 = vld [vmem:[%s4821_s5 + $0xe8] sm:$0xff]  ;;  %v3406_v56 = vld [vmem:[%s4821_s5 + $0xf8] sm:$0xff] }
 0x143   : >> { %v429_v57 = vsel %vm427_vm4, %v422_v8, %v424_v39  ;;  %v428_v61 = vsel %vm427_vm4, %v424_v39, %v426_v40  ;;  %v431_v62 = vsel %vm427_vm4, %v426_v40, %v420_v7  ;;  %v3382_v39 = vld [vmem:[%s4821_s5 + $0xd8] sm:$0xff]  ;;  %v3387_v40 = vld [vmem:[%s4821_s5 + $0xe0] sm:$0xff]  ;;  %4908 = vst [vmem:[#allocation18_spill] sm:$0xff] %v3406_v56 }
 0x144   : >> { %v528_v63 = vmul.f32 %v3337_v30, %v429_v57  ;;  %v529_v0 = vmul.f32 %v3342_v31, %v428_v61  ;;  %v530_v1 = vmul.f32 %v3347_v38, %v431_v62  ;;  %v3411_v57 = vld [vmem:[%s4821_s5 + $0xc0] sm:$0xff] }
 0x146   : >> { %v433_v3 = vpop.permute.xlu0 %432  ;;  %v435_v4 = vpop.permute.xlu1 %434  ;;  %v556_v5 = vpack.c.bf16 %v528_v63, %v524_v44  ;;  %v558_v6 = vpack.c.bf16 %v530_v1, %v526_v47  ;;  %v557_v10 = vpack.c.bf16 %v529_v0, %v525_v55  ;;  %v3401_v55 = vld [vmem:[%s4821_s5 + $0xf0] sm:$0xff] }
 0x147   : >> { %v443_v61 = vsel %vm440_vm6, %v433_v3, %v435_v4 }
 0x148   : >> { %601 = vmatprep.subr.bf16.mxu0 %v556_v5  ;;  %654 = vmatprep.subr.bf16.mxu1 %v558_v6 }
 0x149   : >> { %602 = vmatpush1.bf16.msra.mxu0 %v555_v11  ;;  %655 = vmatpush1.bf16.msra.mxu1 %v557_v10 }
 0x14a   : >> { %v437_v8 = vpop.permute.xlu0 %436  ;;  %v439_v12 = vpop.permute.xlu1 %438 }
 0x14b   : >> { %v442_v19 = vsel %vm440_vm6, %v435_v4, %v437_v8  ;;  %v441_v23 = vsel %vm440_vm6, %v437_v8, %v439_v12  ;;  %v444_v47 = vsel %vm440_vm6, %v439_v12, %v433_v3 }
 0x14c   : >> { %v532_v62 = vmul.f32 %v3368_v14, %v442_v19  ;;  %v533_v63 = vmul.f32 %v3375_v20, %v441_v23  ;;  %v534_v3 = vmul.f32 %v3382_v39, %v444_v47  ;;  %v531_v19 = vmul.f32 %v3411_v57, %v443_v61  ;;  %v3441_v61 = vld [vmem:[%s4821_s5 + $0x108] sm:$0xff] }
 0x14d   : >> { %4909 = vst [vmem:[#allocation19_spill] sm:$0xff] %v3441_v61 }
 0x14e   : >> { %v446_v7 = vpop.permute.xlu0 %445  ;;  %v448_v13 = vpop.permute.xlu1 %447 }
 0x14f   : >> { %v456_v44 = vsel %vm453_vm5, %v446_v7, %v448_v13 }
 0x150   : >> { %v535_v5 = vmul.f32 %v3387_v40, %v456_v44 }
 0x152   : >> { %v450_v0 = vpop.permute.xlu0 %449  ;;  %v452_v1 = vpop.permute.xlu1 %451 }
 0x153   : >> { %v455_v6 = vsel %vm453_vm5, %v448_v13, %v450_v0  ;;  %v454_v10 = vsel %vm453_vm5, %v450_v0, %v452_v1  ;;  %v457_v11 = vsel %vm453_vm5, %v452_v1, %v446_v7  ;;  %v3433_v13 = vld [vmem:[%s4821_s5 + $0x100] sm:$0xff]  ;;  %v559_v1 = vpack.c.bf16 %v535_v5, %v531_v19 }
 0x154   : >> { %v536_v4 = vmul.f32 %v3396_v48, %v455_v6  ;;  %v537_v8 = vmul.f32 %v3401_v55, %v454_v10  ;;  %v538_v12 = vmul.f32 %v3406_v56, %v457_v11 }
 0x156   : >> { %v459_v23 = vpop.permute.xlu0 %458  ;;  %v461_v44 = vpop.permute.xlu1 %460  ;;  %v560_v0 = vpack.c.bf16 %v536_v4, %v532_v62  ;;  %v562_v2 = vpack.c.bf16 %v538_v12, %v534_v3  ;;  %v561_v7 = vpack.c.bf16 %v537_v8, %v533_v63  ;;  %v3446_v62 = vld [vmem:[%s4821_s5 + $0x110] sm:$0xff]  ;;  %v3451_v63 = vld [vmem:[%s4821_s5 + $0x118] sm:$0xff] }
 0x157   : >> { %v469_v47 = vsel %vm466_vm7, %v459_v23, %v461_v44  ;;  %4910 = vst [vmem:[#allocation20_spill] sm:$0xff] %v3446_v62  ;;  %4911 = vst [vmem:[#allocation21_spill] sm:$0xff] %v3451_v63 }
 0x158   : >> { %v539_v6 = vmul.f32 %v3433_v13, %v469_v47  ;;  %603 = vmatprep.subr.bf16.mxu0 %v560_v0  ;;  %656 = vmatprep.subr.bf16.mxu1 %v562_v2 }
 0x159   : >> { %604 = vmatpush1.bf16.msra.mxu0 %v559_v1  ;;  %657 = vmatpush1.bf16.msra.mxu1 %v561_v7 }
 0x15a   : >> { %v463_v5 = vpop.permute.xlu0 %462  ;;  %v465_v10 = vpop.permute.xlu1 %464  ;;  %v563_v4 = vpack.c.bf16 %v539_v6, %v539_v6  ;;  %v2826_v6 = vld [vmem:[%s4817_s1 + $0x8] sm:$0xff]  }
 0x15b   : >> { %v468_v2 = vsel %vm466_vm7, %v461_v44, %v463_v5  ;;  %v467_v11 = vsel %vm466_vm7, %v463_v5, %v465_v10  ;;  %v470_v3 = vsel %vm466_vm7, %v465_v10, %v459_v23  ;;  %v2825_v23 = vld [vmem:[%s4817_s1] sm:$0xff]  }
 0x15c   : >> { %v540_v8 = vmul.f32 %v3441_v61, %v468_v2  ;;  %v541_v12 = vmul.f32 %v3446_v62, %v467_v11  ;;  %v542_v19 = vmul.f32 %v3451_v63, %v470_v3  ;;  %v586_v44 = vsel %vm584_vm8, %v563_v4, 0 }
 0x15e   : >> { %v564_v0 = vpack.c.bf16 %v540_v8, %v540_v8  ;;  %v565_v7 = vpack.c.bf16 %v541_v12, %v541_v12  ;;  %v566_v47 = vpack.c.bf16 %v542_v19, %v542_v19 }
 0x160   : >> { %2684 = vmatprep.subr.msk.bf16.mxu0 %vm584_vm8, %v564_v0  ;;  %2687 = vmatprep.subr.msk.bf16.mxu1 %vm584_vm8, %v566_v47  ;;  %v592_v1 = vsel %vm584_vm8, %v565_v7, 0 }
 0x161   : >> { %606 = vmatpush1.bf16.msra.mxu0 %v586_v44  ;;  %659 = vmatpush1.bf16.msra.mxu1 %v592_v1 }
 0x164   : >> { %2685 = vmatmul.mubr.msk.bf16.vlgmr.msra.gmra.mrb[0].mxu0 %vm577_vm9, %v2825_v23  ;;  %2688 = vmatmul.mubr.msk.bf16.vlgmr.msra.gmra.mrb[0].mxu1 %vm577_vm9, %v2825_v23 }
 0x165   : >> { %639 = vmatprep.mubr.bf16.mxu0 %v4826_v37  ;;  %692 = vmatprep.mubr.bf16.mxu1 %v4826_v37 }
 0x16c   : >> { %2686 = vmatmul.mubr.msk.bf16.gmra.mrb[4].mxu0 %vm577_vm9, %v2826_v6  ;;  %2689 = vmatmul.mubr.msk.bf16.gmra.mrb[4].mxu1 %vm577_vm9, %v2826_v6 }
 0x16d   : >> { %823 = vmatprep.mubr.bf16.mxu0 %v4826_v37  ;;  %904 = vmatprep.mubr.bf16.mxu1 %v4826_v37 }
 0x237   : >> { %v631_v5 = vpop.f32.mrb[0].mxu0  ;;  %v684_v10 = vpop.f32.mrb[0].mxu1 }
 0x238   : >> { %v703_v2 = vadd.f32 %v631_v5, %v4899_v25  ;;  %v705_v11 = vadd.f32 %v684_v10, %v4899_v25  ;;  %v633_v3 = vpop.f32.mrb[1].mxu0  ;;  %v686_v4 = vpop.f32.mrb[1].mxu1 }
 0x239   : >> { %v704_v8 = vadd.f32 %v633_v3, %v4899_v25  ;;  %v706_v12 = vadd.f32 %v686_v4, %v4899_v25  ;;  %v635_v19 = vpop.f32.mrb[2].mxu0  ;;  %v688_v0 = vpop.f32.mrb[2].mxu1 }
 0x23a   : >> { %v721_v7 = vmax.f32 %v705_v11, 0.0  ;;  %v707_v47 = vadd.f32 %v635_v19, %v4895_v27  ;;  %v709_v44 = vadd.f32 %v688_v0, %v4895_v27  ;;  %v637_v1 = vpop.f32.mrb[3].mxu0  ;;  %v690_v23 = vpop.f32.mrb[3].mxu1  ;;  %v719_v37 = vmax.f32 %v703_v2, 0.0 }
 0x23b   : >> { %v722_v6 = vmax.f32 %v706_v12, 0.0  ;;  %v708_v5 = vadd.f32 %v637_v1, %v4895_v27  ;;  %v710_v10 = vadd.f32 %v690_v23, %v4895_v27  ;;  %v720_v3 = vmax.f32 %v704_v8, 0.0 }
 0x23c   : >> { %v723_v17 = vmax.f32 %v707_v47, 0.0  ;;  %v725_v18 = vmax.f32 %v709_v44, 0.0 }
 0x23d   : >> { %v724_v16 = vmax.f32 %v708_v5, 0.0  ;;  %v726_v4 = vmax.f32 %v710_v10, 0.0 }
 0x23e   : >> { %v744_v25 = vpack.c.bf16 %v723_v17, %v719_v37  ;;  %v746_v15 = vpack.c.bf16 %v725_v18, %v721_v7 }
 0x23f   : >> { %v745_v11 = vpack.c.bf16 %v724_v16, %v720_v3  ;;  %v747_v9 = vpack.c.bf16 %v726_v4, %v722_v6  ;;  %v641_v19 = vpop.f32.mrb[4].mxu0  ;;  %v694_v36 = vpop.f32.mrb[4].mxu1 }
 0x240   : >> { %v711_v0 = vadd.f32 %v641_v19, %v4896_v24  ;;  %v713_v12 = vadd.f32 %v694_v36, %v4896_v24  ;;  %v643_v34 = vpop.f32.mrb[5].mxu0  ;;  %v696_v1 = vpop.f32.mrb[5].mxu1 }
 0x241   : >> { %v712_v23 = vadd.f32 %v643_v34, %v4896_v24  ;;  %v714_v2 = vadd.f32 %v696_v1, %v4896_v24  ;;  %v645_v47 = vpop.f32.mrb[6].mxu0  ;;  %v698_v8 = vpop.f32.mrb[6].mxu1  ;;  %791 = vmatprep.subr.bf16.mxu0 %v745_v11  ;;  %872 = vmatprep.subr.bf16.mxu1 %v747_v9 }
 0x242   : >> { %v729_v17 = vmax.f32 %v713_v12, 0.0  ;;  %v715_v16 = vadd.f32 %v645_v47, %v4897_v26  ;;  %v717_v18 = vadd.f32 %v698_v8, %v4897_v26  ;;  %v647_v37 = vpop.f32.mrb[7].mxu0  ;;  %v700_v7 = vpop.f32.mrb[7].mxu1  ;;  %792 = vmatpush1.bf16.msra.mxu0 %v744_v25  ;;  %873 = vmatpush1.bf16.msra.mxu1 %v746_v15  ;;  %v727_v6 = vmax.f32 %v711_v0, 0.0  ;;  %v2827_v15 = vld [vmem:[%s4819_s3] sm:$0xff]   ;;  %v2828_v0 = vld [vmem:[%s4819_s3 + $0x8] sm:$0xff]  }
 0x243   : >> { %v730_v36 = vmax.f32 %v714_v2, 0.0  ;;  %v716_v44 = vadd.f32 %v647_v37, %v4897_v26  ;;  %v718_v34 = vadd.f32 %v700_v7, %v4897_v26  ;;  %v728_v3 = vmax.f32 %v712_v23, 0.0  ;;  %v2829_v23 = vld [vmem:[%s4819_s3 + $0x10] sm:$0xff]   ;;  %v2830_v2 = vld [vmem:[%s4819_s3 + $0x18] sm:$0xff]   ;;  %v2831_v47 = vld [vmem:[%s4819_s3 + $0x20] ss:$0 sps:$4 sm:$0xff]  }
 0x244   : >> { %v731_v5 = vmax.f32 %v715_v16, 0.0  ;;  %v733_v10 = vmax.f32 %v717_v18, 0.0  ;;  %v4912_v25 = vmov 0  }
 0x245   : >> { %v732_v4 = vmax.f32 %v716_v44, 0.0  ;;  %v734_v9 = vmax.f32 %v718_v34, 0.0 }
 0x246   : >> { %v748_v11 = vpack.c.bf16 %v731_v5, %v727_v6  ;;  %v750_v19 = vpack.c.bf16 %v733_v10, %v729_v17 }
 0x247   : >> { %v749_v12 = vpack.c.bf16 %v732_v4, %v728_v3  ;;  %v751_v1 = vpack.c.bf16 %v734_v9, %v730_v36 }
 0x249   : >> { %793 = vmatprep.subr.bf16.mxu0 %v749_v12  ;;  %874 = vmatprep.subr.bf16.mxu1 %v751_v1 }
 0x24a   : >> { %794 = vmatpush1.bf16.msra.mxu0 %v748_v11  ;;  %875 = vmatpush1.bf16.msra.mxu1 %v750_v19 }
 0x24d   : >> { %2695 = vmatmul.mubr.msk.bf16.vlgmr.msra.gmra.mrb[8].mxu0 %vm775_vm10, %v2827_v15  ;;  %2700 = vmatmul.mubr.msk.bf16.vlgmr.msra.gmra.mrb[8].mxu1 %vm775_vm10, %v2827_v15 }
 0x24e   : >> { %833 = vmatprep.mubr.bf16.mxu0 %v4912_v25  ;;  %914 = vmatprep.mubr.bf16.mxu1 %v4912_v25 }
 0x255   : >> { %2696 = vmatmul.mubr.msk.bf16.gmra.mrb[12].mxu0 %vm775_vm10, %v2828_v0  ;;  %2701 = vmatmul.mubr.msk.bf16.gmra.mrb[12].mxu1 %vm775_vm10, %v2828_v0 }
 0x256   : >> { %843 = vmatprep.mubr.bf16.mxu0 %v4912_v25  ;;  %924 = vmatprep.mubr.bf16.mxu1 %v4912_v25 }
 0x25d   : >> { %2697 = vmatmul.mubr.msk.bf16.gmra.mrb[16].mxu0 %vm775_vm10, %v2829_v23  ;;  %2702 = vmatmul.mubr.msk.bf16.gmra.mrb[16].mxu1 %vm775_vm10, %v2829_v23 }
 0x25e   : >> { %853 = vmatprep.mubr.bf16.mxu0 %v4912_v25  ;;  %934 = vmatprep.mubr.bf16.mxu1 %v4912_v25 }
 0x265   : >> { %2698 = vmatmul.mubr.msk.bf16.gmra.mrb[20].mxu0 %vm775_vm10, %v2830_v2  ;;  %2703 = vmatmul.mubr.msk.bf16.gmra.mrb[20].mxu1 %vm775_vm10, %v2830_v2 }
 0x266   : >> { %863 = vmatprep.mubr.bf16.mxu0 %v4912_v25  ;;  %944 = vmatprep.mubr.bf16.mxu1 %v4912_v25 }
 0x26d   : >> { %2699 = vmatmul.mubr.msk.bf16.gmra.mrb[24].mxu0 %vm775_vm10, %v2831_v47  ;;  %2704 = vmatmul.mubr.msk.bf16.gmra.mrb[24].mxu1 %vm775_vm10, %v2831_v47 }
 0x320   : >> { %v825_v8 = vpop.f32.mrb[8].mxu0  ;;  %v906_v17 = vpop.f32.mrb[8].mxu1 }
 0x321   : >> { %953 = vrot.lane.b32.xlu0 %v825_v8, %s2942_s9  ;;  %v827_v16 = vpop.f32.mrb[9].mxu0  ;;  %v908_v18 = vpop.f32.mrb[9].mxu1 }
 0x322   : >> { %955 = vrot.lane.b32.xlu1 %v827_v16, %s2942_s9  ;;  %v829_v37 = vpop.f32.mrb[10].mxu0  ;;  %v910_v7 = vpop.f32.mrb[10].mxu1 }
 0x323   : >> { %v831_v36 = vpop.f32.mrb[11].mxu0  ;;  %v912_v44 = vpop.f32.mrb[11].mxu1 }
 0x325   : >> { %957 = vrot.lane.b32.xlu0 %v906_v17, %s2942_s9 }
 0x326   : >> { %959 = vrot.lane.b32.xlu1 %v908_v18, %s2942_s9  ;;  %s2951_s9 = smov (%p349_p1), 16  }
 0x328   : >> { %v835_v34 = vpop.f32.mrb[12].mxu0  ;;  %v916_v6 = vpop.f32.mrb[12].mxu1 }
 0x329   : >> { %973 = vrot.lane.b32.xlu0 %v829_v37, %s2943_s10  ;;  %v837_v5 = vpop.f32.mrb[13].mxu0  ;;  %v918_v10 = vpop.f32.mrb[13].mxu1 }
 0x32a   : >> { %975 = vrot.lane.b32.xlu1 %v831_v36, %s2943_s10  ;;  %v839_v3 = vpop.f32.mrb[14].mxu0  ;;  %v920_v4 = vpop.f32.mrb[14].mxu1 }
 0x32b   : >> { %v841_v9 = vpop.f32.mrb[15].mxu0  ;;  %v922_v11 = vpop.f32.mrb[15].mxu1 }
 0x32d   : >> { %977 = vrot.lane.b32.xlu0 %v910_v7, %s2943_s10 }
 0x32e   : >> { %979 = vrot.lane.b32.xlu1 %v912_v44, %s2943_s10  ;;  %s2952_s10 = smov (%p349_p1), 17  }
 0x330   : >> { %v3537_v19 = vpop.f32.mrb[16].mxu0  ;;  %v3539_v12 = vpop.f32.mrb[16].mxu1 }
 0x331   : >> { %993 = vrot.lane.b32.xlu0 %v835_v34, %s2944_s11  ;;  %v3542_v1 = vpop.f32.mrb[17].mxu0  ;;  %v3544_v15 = vpop.f32.mrb[17].mxu1 }
 0x332   : >> { %995 = vrot.lane.b32.xlu1 %v837_v5, %s2944_s11  ;;  %v849_v25 = vpop.f32.mrb[18].mxu0  ;;  %v930_v0 = vpop.f32.mrb[18].mxu1 }
 0x333   : >> { %v851_v23 = vpop.f32.mrb[19].mxu0  ;;  %v932_v2 = vpop.f32.mrb[19].mxu1 }
 0x335   : >> { %997 = vrot.lane.b32.xlu0 %v916_v6, %s2944_s11 }
 0x336   : >> { %999 = vrot.lane.b32.xlu1 %v918_v10, %s2944_s11  ;;  %s2954_s11 = smov (%p349_p1), 1  }
 0x338   : >> { %v855_v47 = vpop.f32.mrb[20].mxu0  ;;  %v936_v8 = vpop.f32.mrb[20].mxu1 }
 0x339   : >> { %1013 = vrot.lane.b32.xlu0 %v839_v3, %s2945_s12  ;;  %v857_v17 = vpop.f32.mrb[21].mxu0  ;;  %v938_v16 = vpop.f32.mrb[21].mxu1 }
 0x33a   : >> { %1015 = vrot.lane.b32.xlu1 %v841_v9, %s2945_s12  ;;  %v859_v18 = vpop.f32.mrb[22].mxu0  ;;  %v940_v37 = vpop.f32.mrb[22].mxu1 }
 0x33b   : >> { %v861_v7 = vpop.f32.mrb[23].mxu0  ;;  %v942_v36 = vpop.f32.mrb[23].mxu1 }
 0x33d   : >> { %1017 = vrot.lane.b32.xlu0 %v920_v4, %s2945_s12 }
 0x33e   : >> { %1019 = vrot.lane.b32.xlu1 %v922_v11, %s2945_s12  ;;  %s2955_s12 = smov (%p349_p1), 127  }
 0x340   : >> { %v865_v44 = vpop.f32.mrb[24].mxu0  ;;  %v946_v34 = vpop.f32.mrb[24].mxu1 }
 0x341   : >> { %1033 = vrot.lane.b32.xlu0 %v849_v25, %s2946_s13  ;;  %v867_v6 = vpop.f32.mrb[25].mxu0  ;;  %v948_v5 = vpop.f32.mrb[25].mxu1 }
 0x342   : >> { %1035 = vrot.lane.b32.xlu1 %v851_v23, %s2946_s13  ;;  %v869_v10 = vpop.f32.mrb[26].mxu0  ;;  %v950_v3 = vpop.f32.mrb[26].mxu1 }
 0x343   : >> { %v870_v26 = vpop.f32.mrb[27].mxu0  ;;  %v951_v9 = vpop.f32.mrb[27].mxu1 }
 0x345   : >> { %1037 = vrot.lane.b32.xlu0 %v930_v0, %s2946_s13 }
 0x346   : >> { %1039 = vrot.lane.b32.xlu1 %v932_v2, %s2946_s13  ;;  %s2956_s13 = smov (%p349_p1), 113  }
 0x349   : >> { %1053 = vrot.lane.b32.xlu0 %v855_v47, %s2947_s14 }
 0x34a   : >> { %1055 = vrot.lane.b32.xlu1 %v857_v17, %s2947_s14 }
 0x34d   : >> { %1057 = vrot.lane.b32.xlu0 %v936_v8, %s2947_s14 }
 0x34e   : >> { %1059 = vrot.lane.b32.xlu1 %v938_v16, %s2947_s14  ;;  %s2957_s14 = smov (%p349_p1), 112  }
 0x351   : >> { %1073 = vrot.lane.b32.xlu0 %v859_v18, %s2948_s15 }
 0x352   : >> { %1075 = vrot.lane.b32.xlu1 %v861_v7, %s2948_s15 }
 0x355   : >> { %1077 = vrot.lane.b32.xlu0 %v940_v37, %s2948_s15 }
 0x356   : >> { %1079 = vrot.lane.b32.xlu1 %v942_v36, %s2948_s15  ;;  %s2958_s15 = smov (%p349_p1), 111  }
 0x359   : >> { %1093 = vrot.lane.b32.xlu0 %v865_v44, %s2950_s16 }
 0x35a   : >> { %1095 = vrot.lane.b32.xlu1 %v867_v6, %s2950_s16 }
 0x35d   : >> { %1097 = vrot.lane.b32.xlu0 %v946_v34, %s2950_s16 }
 0x35e   : >> { %1099 = vrot.lane.b32.xlu1 %v948_v5, %s2950_s16 }
 0x393   : >> { %v954_v26 = vpop.permute.xlu0 %953 }
 0x394   : >> { %v956_v4 = vpop.permute.xlu1 %955 }
 0x395   : >> { %v963_v5 = vsel %vm375_vm0, %v954_v26, %v956_v4 }
 0x396   : >> { %v970_v9 = vmul.f32 %v963_v5, %v3189_v45 }
 0x397   : >> { %v958_v11 = vpop.permute.xlu0 %957 }
 0x398   : >> { %v960_v25 = vpop.permute.xlu1 %959  ;;  %v962_v24 = vsel %vm375_vm0, %v956_v4, %v958_v11  ;;  %v1110_v4 = vadd.f32 %v970_v9, %v3079_v28 }
 0x399   : >> { %v964_v27 = vsel %vm375_vm0, %v960_v25, %v954_v26  ;;  %v961_v33 = vsel %vm375_vm0, %v958_v11, %v960_v25  ;;  %v971_v56 = vmul.f32 %v962_v24, %v3199_v49 }
 0x39a   : >> { %v969_v61 = vmul.f32 %v964_v27, %v3208_v52  ;;  %v972_v5 = vmul.f32 %v961_v33, %v3229_v59 }
 0x39b   : >> { %v974_v0 = vpop.permute.xlu0 %973 }
 0x39c   : >> { %v976_v23 = vpop.permute.xlu1 %975  ;;  %v1109_v9 = vadd.f32 %v969_v61, %v3079_v28 }
 0x39d   : >> { %v983_v26 = vsel %vm388_vm1, %v974_v0, %v976_v23 }
 0x39f   : >> { %v978_v2 = vpop.permute.xlu0 %977 }
 0x3a0   : >> { %v980_v47 = vpop.permute.xlu1 %979  ;;  %v982_v11 = vsel %vm388_vm1, %v976_v23, %v978_v2  ;;  %v1111_v23 = vadd.f32 %v971_v56, %v3079_v28 }
 0x3a1   : >> { %v984_v25 = vsel %vm388_vm1, %v980_v47, %v974_v0  ;;  %v981_v27 = vsel %vm388_vm1, %v978_v2, %v980_v47  ;;  %v990_v0 = vmul.f32 %v983_v26, %v3194_v46 }
 0x3a3   : >> { %v994_v8 = vpop.permute.xlu0 %993 }
 0x3a4   : >> { %v996_v17 = vpop.permute.xlu1 %995 }
 0x3a5   : >> { %v1003_v63 = vsel %vm401_vm2, %v994_v8, %v996_v17 }
 0x3a6   : >> { %v1010_v24 = vmul.f32 %v1003_v63, %v3253_v22  ;;  %v991_v63 = vmul.f32 %v982_v11, %v3215_v54 }
 0x3a7   : >> { %v998_v16 = vpop.permute.xlu0 %997 }
 0x3a8   : >> { %v1000_v18 = vpop.permute.xlu1 %999  ;;  %v1002_v45 = vsel %vm401_vm2, %v996_v17, %v998_v16  ;;  %v1114_v56 = vadd.f32 %v1010_v24, %v990_v0 }
 0x3a9   : >> { %v1011_v52 = vmul.f32 %v1002_v45, %v3265_v32  ;;  %v1004_v17 = vsel %vm401_vm2, %v1000_v18, %v994_v8  ;;  %v1001_v22 = vsel %vm401_vm2, %v998_v16, %v1000_v18  ;;  %v989_v32 = vmul.f32 %v984_v25, %v3224_v58 }
 0x3aa   : >> { %v992_v8 = vmul.f32 %v981_v27, %v3234_v60  ;;  %v1009_v61 = vmul.f32 %v1004_v17, %v3275_v42  ;;  %v1012_v16 = vmul.f32 %v1001_v22, %v3280_v43 }
 0x3ab   : >> { %v1014_v37 = vpop.permute.xlu0 %1013  ;;  %v1115_v26 = vadd.f32 %v1011_v52, %v991_v63 }
 0x3ac   : >> { %v1016_v7 = vpop.permute.xlu1 %1015  ;;  %v1113_v27 = vadd.f32 %v1009_v61, %v989_v32 }
 0x3ad   : >> { %v1023_v11 = vsel %vm414_vm3, %v1014_v37, %v1016_v7  ;;  %v1131_v22 = vadd.f32 %v1115_v26, %v1111_v23 }
 0x3ae   : >> { %v1030_v52 = vmul.f32 %v1023_v11, %v3260_v29 }
 0x3af   : >> { %v1018_v36 = vpop.permute.xlu0 %1017 }
 0x3b0   : >> { %v1020_v44 = vpop.permute.xlu1 %1019  ;;  %v1022_v43 = vsel %vm414_vm3, %v1016_v7, %v1018_v36  ;;  %v1116_v7 = vadd.f32 %v1012_v16, %v992_v8 }
 0x3b1   : >> { %v1024_v2 = vsel %vm414_vm3, %v1020_v44, %v1014_v37 }
 0x3b2   : >> { %v1029_v60 = vmul.f32 %v1024_v2, %v3295_v51 }
 0x3b3   : >> { %v1034_v6 = vpop.permute.xlu0 %1033 }
 0x3b4   : >> { %v1036_v34 = vpop.permute.xlu1 %1035 }
 0x3b5   : >> { %v1043_v47 = vsel %vm427_vm4, %v1034_v6, %v1036_v34 }
 0x3b6   : >> { %v1049_v42 = vmul.f32 %v1043_v47, %v3330_v21 }
 0x3b7   : >> { %v1038_v10 = vpop.permute.xlu0 %1037 }
 0x3b8   : >> { %v1040_v3 = vpop.permute.xlu1 %1039  ;;  %v1042_v25 = vsel %vm427_vm4, %v1036_v34, %v1038_v10  ;;  %v1031_v34 = vmul.f32 %v1022_v43, %v3290_v50 }
 0x3b9   : >> { %v1041_v24 = vsel %vm427_vm4, %v1038_v10, %v1040_v3  ;;  %v1044_v51 = vsel %vm427_vm4, %v1040_v3, %v1034_v6  ;;  %v1117_v10 = vadd.f32 %v1029_v60, %v3537_v19  ;;  %v1050_v17 = vmul.f32 %v1042_v25, %v3337_v30 }
 0x3ba   : >> { %v1051_v6 = vmul.f32 %v1041_v24, %v3342_v31  ;;  %v1130_v3 = vadd.f32 %v1114_v56, %v1110_v4  ;;  %v1129_v19 = vadd.f32 %v1113_v27, %v1109_v9  ;;  %v1118_v31 = vadd.f32 %v1030_v52, %v3542_v1  ;;  %v4918_v52 = vld [vmem:[#allocation16_spill] sm:$0xff] }
 0x3bb   : >> { %v1054_v35 = vpop.permute.xlu0 %1053  ;;  %v1119_v4 = vadd.f32 %v1031_v34, %v3539_v12 }
 0x3bc   : >> { %v1056_v62 = vpop.permute.xlu1 %1055 }
 0x3bd   : >> { %v1063_v33 = vsel %vm440_vm6, %v1054_v35, %v1056_v62 }
 0x3be   : >> { %v1069_v46 = vmul.f32 %v1063_v33, %v3411_v57  ;;  %v1052_v33 = vmul.f32 %v1044_v51, %v3347_v38  ;;  %v4917_v51 = vld [vmem:[#allocation14_spill] sm:$0xff] }
 0x3bf   : >> { %v1058_v49 = vpop.permute.xlu0 %1057 }
 0x3c0   : >> { %v1060_v59 = vpop.permute.xlu1 %1059  ;;  %v1062_v54 = vsel %vm440_vm6, %v1056_v62, %v1058_v49  ;;  %v1021_v62 = vsel %vm414_vm3, %v1018_v36, %v1020_v44  ;;  %v1121_v37 = vadd.f32 %v1069_v46, %v1049_v42  ;;  %v4915_v42 = vld [vmem:[#allocation20_spill] sm:$0xff] }
 0x3c1   : >> { %v1061_v58 = vsel %vm440_vm6, %v1058_v49, %v1060_v59  ;;  %v1064_v57 = vsel %vm440_vm6, %v1060_v59, %v1054_v35  ;;  %v1070_v21 = vmul.f32 %v1062_v54, %v3368_v14  ;;  %v1112_v14 = vadd.f32 %v972_v5, %v3079_v28  ;;  %v4913_v54 = vld [vmem:[#allocation19_spill] sm:$0xff] }
 0x3c2   : >> { %v1071_v35 = vmul.f32 %v1061_v58, %v3375_v20  ;;  %v1072_v36 = vmul.f32 %v1064_v57, %v3382_v39  ;;  %v1032_v20 = vmul.f32 %v1021_v62, %v3300_v53  ;;  %v1133_v59 = vadd.f32 %v1121_v37, %v1117_v10  ;;  %v4916_v57 = vld [vmem:[#allocation21_spill] sm:$0xff] }
 0x3c3   : >> { %v1074_v45 = vpop.permute.xlu0 %1073  ;;  %v1122_v29 = vadd.f32 %v1070_v21, %v1050_v17  ;;  %v1132_v63 = vadd.f32 %v1116_v7, %v1112_v14  ;;  %v4920_v10 = vld [vmem:[#allocation17_spill] sm:$0xff] }
 0x3c4   : >> { %v1076_v18 = vpop.permute.xlu1 %1075  ;;  %v1123_v0 = vadd.f32 %v1071_v35, %v1051_v6  ;;  %v1124_v30 = vadd.f32 %v1072_v36, %v1052_v33  ;;  %v1120_v5 = vadd.f32 %v1032_v20, %v3544_v15  ;;  %v1137_v1 = vadd.f32 %v1133_v59, %v1129_v19  ;;  %v4925_v6 = vld [vmem:[#allocation5_spill] sm:$0xff] (%p349_p1)  ;;  %v4927_v33 = vld [vmem:[#allocation6_spill] sm:$0xff] (%p349_p1) }
 0x3c5   : >> { %v1083_v39 = vsel %vm453_vm5, %v1074_v45, %v1076_v18  ;;  %v1134_v47 = vadd.f32 %v1122_v29, %v1118_v31  ;;  %v4929_v29 = vld [vmem:[#allocation7_spill] sm:$0xff] (%p349_p1) }
 0x3c6   : >> { %v1089_v2 = vmul.f32 %v1083_v39, %v3387_v40  ;;  %v1135_v8 = vadd.f32 %v1123_v0, %v1119_v4  ;;  %v1136_v61 = vadd.f32 %v1124_v30, %v1120_v5  ;;  %v3773_v4 = vld [vmem:[%s4821_s5 + $0x8] sm:$0xff] (%p349_p1) }
 0x3c7   : >> { %v1078_v49 = vpop.permute.xlu0 %1077  ;;  %v1138_v62 = vadd.f32 %v1134_v47, %v1130_v3 }
 0x3c8   : >> { %v1080_v44 = vpop.permute.xlu1 %1079  ;;  %v1082_v53 = vsel %vm453_vm5, %v1076_v18, %v1078_v49  ;;  %v4914_v18 = vld [vmem:[#allocation18_spill] sm:$0xff]  ;;  %v1139_v24 = vadd.f32 %v1135_v8, %v1131_v22  ;;  %v1140_v37 = vadd.f32 %v1136_v61, %v1132_v63  ;;  %v3791_v61 = vld [vmem:[%s4821_s5] sm:$0xff] (%p349_p1) }
 0x3c9   : >> { %v1081_v23 = vsel %vm453_vm5, %v1078_v49, %v1080_v44  ;;  %v1084_v12 = vsel %vm453_vm5, %v1080_v44, %v1074_v45  ;;  %v1090_v46 = vmul.f32 %v1082_v53, %v3396_v48  ;;  %v4919_v44 = vld [vmem:[#allocation15_spill] sm:$0xff]  ;;  %v4933_v63 = vld [vmem:[#allocation8_spill] sm:$0xff] (%p349_p1)  ;;  %v3778_v53 = vld [vmem:[%s4821_s5 + $0x28] sm:$0xff] (%p349_p1) }
 0x3ca   : >> { %v1091_v16 = vmul.f32 %v1081_v23, %v3401_v55  ;;  %v1092_v11 = vmul.f32 %v1084_v12, %v4914_v18 }
 0x3cb   : >> { %v1094_v50 = vpop.permute.xlu0 %1093 }
 0x3cc   : >> { %v1096_v32 = vpop.permute.xlu1 %1095 }
 0x3cd   : >> { %v1103_v38 = vsel %vm466_vm7, %v1094_v50, %v1096_v32 }
 0x3ce   : >> { %v1105_v9 = vmul.f32 %v1103_v38, %v3433_v13 }
 0x3cf   : >> { %v1098_v56 = vpop.permute.xlu0 %1097 }
 0x3d0   : >> { %v1125_v26 = vadd.f32 %v1105_v9, %v1089_v2  ;;  %v1102_v15 = vsel %vm466_vm7, %v1096_v32, %v1098_v56  ;;  %v1100_v40 = vpop.permute.xlu1 %1099 }
 0x3d1   : >> { %v1106_v58 = vmul.f32 %v1102_v15, %v4913_v54  ;;  %v1101_v13 = vsel %vm466_vm7, %v1098_v56, %v1100_v40  ;;  %v1104_v45 = vsel %vm466_vm7, %v1100_v40, %v1094_v50  ;;  %v3803_v15 = vld [vmem:[%s4821_s5 + $0x10] sm:$0xff] (%p349_p1)  ;;  %v3815_v54 = vld [vmem:[%s4821_s5 + $0x38] sm:$0xff] (%p349_p1) }
 0x3d2   : >> { %v1141_v60 = vadd.f32 %v1137_v1, %v1125_v26  ;;  %v1107_v48 = vmul.f32 %v1101_v13, %v4915_v42  ;;  %v1108_v43 = vmul.f32 %v1104_v45, %v4916_v57  ;;  %v3798_v26 = vld [vmem:[%s4821_s5 + $0x18] sm:$0xff] (%p349_p1) }
 0x3d3   : >> { %v1126_v25 = vadd.f32 %v1106_v58, %v1090_v46  ;;  %v3820_v58 = vld [vmem:[%s4821_s5 + $0x30] sm:$0xff] (%p349_p1) }
 0x3d4   : >> { %v1145_v55 = vsub.f32 %v4917_v51, %v1141_v60   ;;  %v1127_v21 = vadd.f32 %v1107_v48, %v1091_v16  ;;  %v1128_v35 = vadd.f32 %v1108_v43, %v1092_v11  ;;  %351 = sbr.rel (!%p349_p1) target bundleno = 167 (0xa7), region = 90  ;;  %v3810_v16 = vld [vmem:[%s4821_s5 + $0x20] sm:$0xff] (%p349_p1) }
 0x3d5   : >> { %v1142_v49 = vadd.f32 %v1138_v62, %v1126_v25 }
 0x3d6   : >> { %v1143_v27 = vadd.f32 %v1139_v24, %v1127_v21  ;;  %v1144_v7 = vadd.f32 %v1140_v37, %v1128_v35  ;;  %v4924_v20 = vmov %v1145_v55  ;;  %v1149_v14 = vmul.f32 (%p349_p1), %v1145_v55, %v4925_v6  ;;  %v3837_v35 = vld [vmem:[%s4821_s5 + $0x48] sm:$0xff] (%p349_p1) }
 0x3d7   : >> { %v1146_v36 = vsub.f32 %v4918_v52, %v1142_v49   ;;  %v4926_v20 = vmov (%p349_p1), 0  }
 0x3d8   : >> { %v1147_v34 = vsub.f32 %v4919_v44, %v1143_v27   ;;  %v1148_v17 = vsub.f32 %v4920_v10, %v1144_v7   ;;  %1421 = vmatprep.mubr.bf16.mxu0 (%p349_p1), %v4926_v20  ;;  %1474 = vmatprep.mubr.bf16.mxu1 (%p349_p1), %v4926_v20  ;;  %v3693_v59 = vadd.f32 (%p349_p1), %v1149_v14, %v4927_v33  ;;  %v3844_v27 = vld [vmem:[%s4821_s5 + $0x68] sm:$0xff] (%p349_p1)  ;;  %v3853_v14 = vld [vmem:[%s4821_s5 + $0x40] sm:$0xff] (%p349_p1)  ;;  %v3860_v33 = vld [vmem:[%s4821_s5 + $0x50] sm:$0xff] (%p349_p1) }
 0x3d9   : >> { %v4923_v21 = vmov %v1146_v36  ;;  %v1150_v3 = vmul.f32 (%p349_p1), %v1146_v36, %v4925_v6 }
 0x3da   : >> { %v4921_v23 = vmov %v1148_v17  ;;  %v4922_v22 = vmov %v1147_v34  ;;  %4928 = vst [vmem:[#allocation5_spill] sm:$0xff] (%p349_p1), %v3693_v59  ;;  %1172 = vrot.lane.b32.xlu1 (%p349_p1), %v3693_v59, %s2951_s9  ;;  %1157 = vrot.lane.b32.xlu0 (%p349_p1), %v3693_v59, %s2952_s10  ;;  %v1152_v39 = vmul.f32 (%p349_p1), %v1148_v17, %v4925_v6  ;;  %v1151_v50 = vmul.f32 (%p349_p1), %v1147_v34, %v4925_v6 }
 0x3db   : > { %v3700_v0 = vadd.f32 %v1150_v3, %v4929_v29  ;;  %v4931_v22 = vld [vmem:[#allocation9_spill] sm:$0xff]  ;;  %v3865_v29 = vld [vmem:[%s4821_s5 + $0x58] sm:$0xff] }
 0x3dc   : > { %v3709_v19 = vadd.f32 %v1152_v39, %v4931_v22  ;;  %v3712_v30 = vadd.f32 %v1151_v50, %v4933_v63  ;;  %v3874_v22 = vld [vmem:[%s4821_s5 + $0x60] sm:$0xff]  ;;  %v3879_v63 = vld [vmem:[%s4821_s5 + $0x70] sm:$0xff] }
 0x3dd   : > { %4930 = vst [vmem:[#allocation6_spill] sm:$0xff] %v3700_v0 }
 0x3de   : > { %1174 = vrot.lane.b32.xlu1 %v3700_v0, %s2951_s9  ;;  %1159 = vrot.lane.b32.xlu0 %v3700_v0, %s2952_s10  ;;  %4932 = vst [vmem:[#allocation7_spill] sm:$0xff] %v3709_v19  ;;  %4934 = vst [vmem:[#allocation9_spill] sm:$0xff] %v3712_v30 }
 0x3e2   : > { %1163 = vrot.lane.b32.xlu1 %v3709_v19, %s2952_s10  ;;  %1161 = vrot.lane.b32.xlu0 %v3712_v30, %s2952_s10 }
 0x3e6   : > { %1178 = vrot.lane.b32.xlu1 %v3709_v19, %s2951_s9  ;;  %1176 = vrot.lane.b32.xlu0 %v3712_v30, %s2951_s9 }
 0x3ea   : > { %1187 = vrot.lane.b32.xlu1 %v3700_v0, %s2953_s8  ;;  %1185 = vrot.lane.b32.xlu0 %v3693_v59, %s2953_s8 }
 0x3ee   : > { %1200 = vrot.lane.b32.xlu1 %v3700_v0, %s2954_s11  ;;  %1198 = vrot.lane.b32.xlu0 %v3693_v59, %s2954_s11 }
 0x3f2   : > { %1191 = vrot.lane.b32.xlu1 %v3709_v19, %s2953_s8  ;;  %1189 = vrot.lane.b32.xlu0 %v3712_v30, %s2953_s8 }
 0x3f6   : > { %1204 = vrot.lane.b32.xlu1 %v3709_v19, %s2954_s11  ;;  %1202 = vrot.lane.b32.xlu0 %v3712_v30, %s2954_s11 }
 0x3fa   : > { %1215 = vrot.lane.b32.xlu1 %v3712_v30, %s2955_s12  ;;  %1213 = vrot.lane.b32.xlu0 %v3700_v0, %s2955_s12 }
 0x3fe   : > { %1217 = vrot.lane.b32.xlu1 %v3709_v19, %s2955_s12  ;;  %1211 = vrot.lane.b32.xlu0 %v3693_v59, %s2955_s12 }
 0x402   : > { %1228 = vrot.lane.b32.xlu1 %v3712_v30, %s2956_s13  ;;  %1226 = vrot.lane.b32.xlu0 %v3700_v0, %s2956_s13 }
 0x406   : > { %1241 = vrot.lane.b32.xlu1 %v3712_v30, %s2957_s14  ;;  %1239 = vrot.lane.b32.xlu0 %v3700_v0, %s2957_s14 }
 0x40a   : > { %1230 = vrot.lane.b32.xlu1 %v3709_v19, %s2956_s13  ;;  %1224 = vrot.lane.b32.xlu0 %v3693_v59, %s2956_s13 }
 0x40e   : > { %1243 = vrot.lane.b32.xlu1 %v3709_v19, %s2957_s14  ;;  %1237 = vrot.lane.b32.xlu0 %v3693_v59, %s2957_s14 }
 0x412   : > { %1252 = vrot.lane.b32.xlu1 %v3700_v0, %s2958_s15  ;;  %1250 = vrot.lane.b32.xlu0 %v3693_v59, %s2958_s15 }
 0x416   : > { %1256 = vrot.lane.b32.xlu1 %v3709_v19, %s2958_s15  ;;  %1254 = vrot.lane.b32.xlu0 %v3712_v30, %s2958_s15 }
 0x44c   : > { %v1173_v32 = vpop.permute.xlu1 %1172  ;;  %v1158_v31 = vpop.permute.xlu0 %1157 }
 0x450   : > { %v1175_v38 = vpop.permute.xlu1 %1174  ;;  %v1160_v5 = vpop.permute.xlu0 %1159 }
 0x451   : > { %v1170_v2 = vsel %vm375_vm0, %v1158_v31, %v1160_v5  ;;  %v1183_v23 = vsel %vm388_vm1, %v1173_v32, %v1175_v38 }
 0x452   : > { %v1300_v9 = vmul.f32 %v3773_v4, %v1170_v2  ;;  %v1304_v47 = vmul.f32 %v3778_v53, %v1183_v23 }
 0x454   : > { %v1164_v8 = vpop.permute.xlu1 %1163  ;;  %v1162_v12 = vpop.permute.xlu0 %1161  ;;  %v1340_v1 = vpack.c.bf16 %v1304_v47, %v1300_v9 }
 0x455   : > { %v1171_v56 = vsel %vm375_vm0, %v1164_v8, %v1158_v31  ;;  %v1168_v46 = vsel %vm375_vm0, %v1162_v12, %v1164_v8  ;;  %v1169_v40 = vsel %vm375_vm0, %v1160_v5, %v1162_v12  ;;  %v1280_v8 = vld [vmem:[%s4821_s5 + $0x88] sm:$0xff] }
 0x456   : > { %1389 = vmatprep.subr.bf16.mxu0 %v1340_v1  ;;  %v1299_v18 = vmul.f32 %v3791_v61, %v1171_v56  ;;  %v1302_v48 = vmul.f32 %v3798_v26, %v1168_v46  ;;  %v1301_v62 = vmul.f32 %v3803_v15, %v1169_v40  ;;  %v3904_v40 = vld [vmem:[%s4821_s5 + $0xa8] sm:$0xff] }
 0x458   : > { %v1179_v13 = vpop.permute.xlu1 %1178  ;;  %v1177_v45 = vpop.permute.xlu0 %1176 }
 0x459   : > { %v1184_v11 = vsel %vm388_vm1, %v1179_v13, %v1173_v32  ;;  %v1182_v60 = vsel %vm388_vm1, %v1175_v38, %v1177_v45  ;;  %v1181_v42 = vsel %vm388_vm1, %v1177_v45, %v1179_v13  ;;  %v3884_v32 = vld [vmem:[%s4821_s5 + $0x78] sm:$0xff] }
 0x45a   : > { %v1303_v57 = vmul.f32 %v3810_v16, %v1184_v11  ;;  %v1306_v43 = vmul.f32 %v3815_v54, %v1181_v42  ;;  %v1305_v25 = vmul.f32 %v3820_v58, %v1182_v60  ;;  %v1316_v42 = vmul.f32 %v1280_v8, %v3700_v0 }
 0x45c   : > { %v1188_v24 = vpop.permute.xlu1 %1187  ;;  %v1186_v51 = vpop.permute.xlu0 %1185  ;;  %v1339_v55 = vpack.c.bf16 %v1303_v57, %v1299_v18  ;;  %v1342_v37 = vpack.c.bf16 %v1306_v43, %v1302_v48  ;;  %v1341_v21 = vpack.c.bf16 %v1305_v25, %v1301_v62  ;;  %v3912_v57 = vld [vmem:[%s4821_s5 + $0x80] sm:$0xff]  ;;  %v1282_v43 = vld [vmem:[%s4821_s5 + $0x98] sm:$0xff]  ;;  %v3920_v62 = vld [vmem:[%s4821_s5 + $0x90] sm:$0xff] }
 0x45d   : > { %v1196_v49 = vsel %vm401_vm2, %v1186_v51, %v1188_v24  ;;  %4935 = vst [vmem:[#allocation8_spill] sm:$0xff] %v3912_v57  ;;  %4936 = vst [vmem:[#allocation22_spill] sm:$0xff] %v3920_v62 }
 0x45e   : > { %1390 = vmatpush1.bf16.msra.mxu0 %v1339_v55  ;;  %1442 = vmatprep.subr.bf16.mxu1 %v1342_v37  ;;  %v1308_v44 = vmul.f32 %v3837_v35, %v1196_v49  ;;  %v3936_v55 = vld [vmem:[%s4821_s5 + $0xb8] sm:$0xff] }
 0x45f   : > { %1443 = vmatpush1.bf16.msra.mxu1 %v1341_v21 }
 0x460   : > { %v1201_v7 = vpop.permute.xlu1 %1200  ;;  %v1199_v52 = vpop.permute.xlu0 %1198 }
 0x461   : > { %v1209_v36 = vsel %vm414_vm3, %v1199_v52, %v1201_v7 }
 0x462   : > { %v1312_v34 = vmul.f32 %v3844_v27, %v1209_v36  ;;  %v1317_v36 = vmul.f32 %v3920_v62, %v3712_v30  ;;  %v4945_v30 = vld [vmem:[#allocation10_spill] sm:$0xff] }
 0x464   : > { %v1192_v10 = vpop.permute.xlu1 %1191  ;;  %v1190_v17 = vpop.permute.xlu0 %1189  ;;  %v1344_v6 = vpack.c.bf16 %v1312_v34, %v1308_v44 }
 0x465   : > { %v1197_v3 = vsel %vm401_vm2, %v1192_v10, %v1186_v51  ;;  %v1195_v39 = vsel %vm401_vm2, %v1188_v24, %v1190_v17  ;;  %v1194_v50 = vsel %vm401_vm2, %v1190_v17, %v1192_v10  ;;  %v3926_v24 = vld [vmem:[%s4821_s5 + $0xb0] sm:$0xff]  ;;  %v3931_v51 = vld [vmem:[%s4821_s5 + $0xa0] sm:$0xff] }
 0x466   : > { %1391 = vmatprep.subr.bf16.mxu0 %v1344_v6  ;;  %v1307_v31 = vmul.f32 %v3853_v14, %v1197_v3  ;;  %v1309_v2 = vmul.f32 %v3860_v33, %v1195_v39  ;;  %v1310_v12 = vmul.f32 %v3865_v29, %v1194_v50 }
 0x468   : > { %v1205_v38 = vpop.permute.xlu1 %1204  ;;  %v1203_v5 = vpop.permute.xlu0 %1202 }
 0x469   : > { %v1210_v23 = vsel %vm414_vm3, %v1205_v38, %v1199_v52  ;;  %v1207_v9 = vsel %vm414_vm3, %v1203_v5, %v1205_v38  ;;  %v1208_v47 = vsel %vm414_vm3, %v1201_v7, %v1203_v5  ;;  %v1315_v7 = vmul.f32 %v3912_v57, %v3693_v59 }
 0x46a   : > { %v1311_v1 = vmul.f32 %v3874_v22, %v1210_v23  ;;  %v1313_v56 = vmul.f32 %v3879_v63, %v1208_v47  ;;  %v1314_v46 = vmul.f32 %v3884_v32, %v1207_v9  ;;  %v1318_v52 = vmul.f32 %v1282_v43, %v3709_v19  ;;  %v3962_v9 = vld [vmem:[%s4821_s5 + $0xe8] sm:$0xff] }
 0x46c   : > { %v1216_v13 = vpop.permute.xlu1 %1215  ;;  %v1214_v45 = vpop.permute.xlu0 %1213  ;;  %v1343_v18 = vpack.c.bf16 %v1311_v1, %v1307_v31  ;;  %v1346_v11 = vpack.c.bf16 %v1314_v46, %v1310_v12  ;;  %v1345_v60 = vpack.c.bf16 %v1313_v56, %v1309_v2  ;;  %v3955_v2 = vld [vmem:[%s4821_s5 + $0xc8] sm:$0xff] }
 0x46d   : > { %v1221_v48 = vsel %vm427_vm4, %v1214_v45, %v1216_v13 }
 0x46e   : > { %v1320_v25 = vmul.f32 %v3904_v40, %v1221_v48  ;;  %1392 = vmatpush1.bf16.msra.mxu0 %v1343_v18  ;;  %1444 = vmatprep.subr.bf16.mxu1 %v1346_v11  ;;  %v3971_v18 = vld [vmem:[%s4821_s5 + $0xd0] sm:$0xff] }
 0x46f   : > { %1445 = vmatpush1.bf16.msra.mxu1 %v1345_v60  ;;  %v3978_v60 = vld [vmem:[%s4821_s5 + $0xc0] sm:$0xff] }
 0x470   : > { %v1218_v37 = vpop.permute.xlu1 %1217  ;;  %v1212_v21 = vpop.permute.xlu0 %1211  ;;  %v1348_v49 = vpack.c.bf16 %v1320_v25, %v1316_v42  ;;  %v3983_v42 = vld [vmem:[%s4821_s5 + $0xd8] sm:$0xff]  ;;  %v3992_v25 = vld [vmem:[%s4821_s5 + $0xf0] sm:$0xff] }
 0x471   : > { %v1220_v44 = vsel %vm427_vm4, %v1216_v13, %v1218_v37  ;;  %v1222_v34 = vsel %vm427_vm4, %v1212_v21, %v1214_v45  ;;  %v1223_v10 = vsel %vm427_vm4, %v1218_v37, %v1212_v21  ;;  %4937 = vst [vmem:[#allocation23_spill] sm:$0xff] %v3992_v25  ;;  %v3997_v37 = vld [vmem:[%s4821_s5 + $0xe0] sm:$0xff]  ;;  %v4002_v21 = vld [vmem:[%s4821_s5 + $0xf8] sm:$0xff] }
 0x472   : > { %v1321_v17 = vmul.f32 %v3926_v24, %v1220_v44  ;;  %v1319_v6 = vmul.f32 %v3931_v51, %v1222_v34  ;;  %v1322_v3 = vmul.f32 %v3936_v55, %v1223_v10  ;;  %1393 = vmatprep.subr.bf16.mxu0 %v1348_v49  ;;  %4938 = vst [vmem:[#allocation24_spill] sm:$0xff] %v4002_v21 }
 0x474   : > { %v1229_v39 = vpop.permute.xlu1 %1228  ;;  %v1227_v50 = vpop.permute.xlu0 %1226  ;;  %v1347_v31 = vpack.c.bf16 %v1319_v6, %v1315_v7  ;;  %v1350_v38 = vpack.c.bf16 %v1322_v3, %v1318_v52  ;;  %v1349_v5 = vpack.c.bf16 %v1321_v17, %v1317_v36 }
 0x475   : > { %v1234_v23 = vsel %vm440_vm6, %v1227_v50, %v1229_v39 }
 0x476   : > { %1394 = vmatpush1.bf16.msra.mxu0 %v1347_v31  ;;  %1446 = vmatprep.subr.bf16.mxu1 %v1350_v38  ;;  %v1324_v1 = vmul.f32 %v3955_v2, %v1234_v23 }
 0x477   : > { %1447 = vmatpush1.bf16.msra.mxu1 %v1349_v5 }
 0x478   : > { %v1242_v47 = vpop.permute.xlu1 %1241  ;;  %v1240_v8 = vpop.permute.xlu0 %1239 }
 0x479   : > { %v1247_v12 = vsel %vm453_vm5, %v1240_v8, %v1242_v47 }
 0x47a   : > { %v1328_v56 = vmul.f32 %v3962_v9, %v1247_v12 }
 0x47c   : > { %v1231_v46 = vpop.permute.xlu1 %1230  ;;  %v1225_v13 = vpop.permute.xlu0 %1224  ;;  %v1352_v45 = vpack.c.bf16 %v1328_v56, %v1324_v1  ;;  %v4027_v1 = vld [vmem:[%s4821_s5 + $0x118] sm:$0xff]  ;;  %v4032_v56 = vld [vmem:[%s4821_s5 + $0x108] sm:$0xff] }
 0x47d   : > { %v1233_v11 = vsel %vm440_vm6, %v1229_v39, %v1231_v46  ;;  %v1235_v48 = vsel %vm440_vm6, %v1225_v13, %v1227_v50  ;;  %v1236_v43 = vsel %vm440_vm6, %v1231_v46, %v1225_v13  ;;  %v4019_v50 = vld [vmem:[%s4821_s5 + $0x100] sm:$0xff]  ;;  %4939 = vst [vmem:[#allocation25_spill] sm:$0xff] %v4027_v1  ;;  %v4037_v46 = vld [vmem:[%s4821_s5 + $0x110] sm:$0xff] }
 0x47e   : > { %1395 = vmatprep.subr.bf16.mxu0 %v1352_v45  ;;  %v1325_v49 = vmul.f32 %v3971_v18, %v1233_v11  ;;  %v1323_v36 = vmul.f32 %v3978_v60, %v1235_v48  ;;  %v1326_v17 = vmul.f32 %v3983_v42, %v1236_v43  ;;  %4940 = vst [vmem:[#allocation26_spill] sm:$0xff] %v4037_v46 }
 0x480   : > { %v1244_v7 = vpop.permute.xlu1 %1243  ;;  %v1238_v52 = vpop.permute.xlu0 %1237 }
 0x481   : > { %v1246_v44 = vsel %vm453_vm5, %v1242_v47, %v1244_v7  ;;  %v1248_v34 = vsel %vm453_vm5, %v1238_v52, %v1240_v8  ;;  %v1249_v10 = vsel %vm453_vm5, %v1244_v7, %v1238_v52 }
 0x482   : > { %v1329_v6 = vmul.f32 %v3992_v25, %v1246_v44  ;;  %v1327_v3 = vmul.f32 %v3997_v37, %v1248_v34  ;;  %v1330_v39 = vmul.f32 %v4002_v21, %v1249_v10 }
 0x484   : > { %v1253_v31 = vpop.permute.xlu1 %1252  ;;  %v1251_v38 = vpop.permute.xlu0 %1250  ;;  %v1351_v5 = vpack.c.bf16 %v1327_v3, %v1323_v36  ;;  %v1354_v23 = vpack.c.bf16 %v1330_v39, %v1326_v17  ;;  %v1353_v47 = vpack.c.bf16 %v1329_v6, %v1325_v49  ;;  %v4055_v3 = vld [vmem:[%s4817_s1] sm:$0xff]   ;;  %v4066_v39 = vld [vmem:[%s4817_s1 + $0x8] sm:$0xff]  }
 0x485   : > { %v1261_v8 = vsel %vm466_vm7, %v1251_v38, %v1253_v31  ;;  %4941 = vst [vmem:[#allocation27_spill] sm:$0xff] %v4055_v3  ;;  %4942 = vst [vmem:[#allocation28_spill] sm:$0xff] %v4066_v39 }
 0x486   : > { %1396 = vmatpush1.bf16.msra.mxu0 %v1351_v5  ;;  %1448 = vmatprep.subr.bf16.mxu1 %v1354_v23  ;;  %v1331_v12 = vmul.f32 %v4019_v50, %v1261_v8  ;;  %v4943_v5 = vld [vmem:[#allocation11_spill] sm:$0xff] }
 0x487   : > { %1449 = vmatpush1.bf16.msra.mxu1 %v1353_v47 }
 0x488   : > { %v1257_v13 = vpop.permute.xlu1 %1256  ;;  %v1255_v45 = vpop.permute.xlu0 %1254  ;;  %v1355_v52 = vpack.c.bf16 %v1331_v12, %v1331_v12 }
 0x489   : > { %v1262_v11 = vsel %vm466_vm7, %v1257_v13, %v1251_v38  ;;  %v1259_v48 = vsel %vm466_vm7, %v1255_v45, %v1257_v13  ;;  %v1260_v43 = vsel %vm466_vm7, %v1253_v31, %v1255_v45 }
 0x48a   : > { %v1334_v49 = vmul.f32 %v4027_v1, %v1262_v11  ;;  %v1332_v7 = vmul.f32 %v4032_v56, %v1260_v43  ;;  %v1333_v36 = vmul.f32 %v4037_v46, %v1259_v48  ;;  %v1378_v17 = vsel %vm584_vm8, %v1355_v52, 0 }
 0x48c   : > { %v1358_v44 = vpack.c.bf16 %v1334_v49, %v1334_v49  ;;  %v1356_v34 = vpack.c.bf16 %v1332_v7, %v1332_v7  ;;  %v1357_v10 = vpack.c.bf16 %v1333_v36, %v1333_v36  ;;  %v4944_v49 = vld [vmem:[#allocation13_spill] sm:$0xff] }
 0x48e   : > { %2707 = vmatprep.subr.msk.bf16.mxu0 %vm584_vm8, %v1356_v34  ;;  %2710 = vmatprep.subr.msk.bf16.mxu1 %vm584_vm8, %v1358_v44  ;;  %v1384_v6 = vsel %vm584_vm8, %v1357_v10, 0 }
 0x48f   : > { %1398 = vmatpush1.bf16.msra.mxu0 %v1378_v17  ;;  %1451 = vmatpush1.bf16.msra.mxu1 %v1384_v6 }
 0x492   : > { %2708 = vmatmul.mubr.msk.bf16.vlgmr.msra.gmra.mrb[0].mxu0 %vm577_vm9, %v4055_v3  ;;  %2711 = vmatmul.mubr.msk.bf16.vlgmr.msra.gmra.mrb[0].mxu1 %vm577_vm9, %v4055_v3 }
 0x493   : > { %1431 = vmatprep.mubr.bf16.mxu0 %v4926_v20  ;;  %1484 = vmatprep.mubr.bf16.mxu1 %v4926_v20 }
 0x49a   : > { %2709 = vmatmul.mubr.msk.bf16.gmra.mrb[4].mxu0 %vm577_vm9, %v4066_v39  ;;  %2712 = vmatmul.mubr.msk.bf16.gmra.mrb[4].mxu1 %vm577_vm9, %v4066_v39 }
 0x49b   : > { %1615 = vmatprep.mubr.bf16.mxu0 %v4926_v20  ;;  %1696 = vmatprep.mubr.bf16.mxu1 %v4926_v20 }
 0x565   : > { %v1423_v31 = vpop.f32.mrb[0].mxu0  ;;  %v1476_v38 = vpop.f32.mrb[0].mxu1 }
 0x566   : > { %v1495_v23 = vadd.f32 %v1423_v31, %v4943_v5  ;;  %v1425_v47 = vpop.f32.mrb[1].mxu0  ;;  %v1497_v8 = vadd.f32 %v1476_v38, %v4943_v5  ;;  %v1478_v12 = vpop.f32.mrb[1].mxu1 }
 0x567   : > { %v1496_v13 = vadd.f32 %v1425_v47, %v4943_v5  ;;  %v1427_v45 = vpop.f32.mrb[2].mxu0  ;;  %v1498_v11 = vadd.f32 %v1478_v12, %v4943_v5  ;;  %v1480_v48 = vpop.f32.mrb[2].mxu1 }
 0x568   : > { %v1513_v43 = vmax.f32 %v1497_v8, 0.0  ;;  %v1499_v7 = vadd.f32 %v1427_v45, %v4944_v49  ;;  %v1429_v52 = vpop.f32.mrb[3].mxu0  ;;  %v1501_v36 = vadd.f32 %v1480_v48, %v4944_v49  ;;  %v1482_v44 = vpop.f32.mrb[3].mxu1  ;;  %v1511_v6 = vmax.f32 %v1495_v23, 0.0 }
 0x569   : > { %v1514_v34 = vmax.f32 %v1498_v11, 0.0  ;;  %v1500_v10 = vadd.f32 %v1429_v52, %v4944_v49  ;;  %v1502_v17 = vadd.f32 %v1482_v44, %v4944_v49  ;;  %v1512_v47 = vmax.f32 %v1496_v13, 0.0 }
 0x56a   : > { %v1515_v31 = vmax.f32 %v1499_v7, 0.0  ;;  %v1517_v38 = vmax.f32 %v1501_v36, 0.0 }
 0x56b   : > { %v1516_v39 = vmax.f32 %v1500_v10, 0.0  ;;  %v1518_v3 = vmax.f32 %v1502_v17, 0.0 }
 0x56c   : > { %v1536_v12 = vpack.c.bf16 %v1515_v31, %v1511_v6  ;;  %v1538_v5 = vpack.c.bf16 %v1517_v38, %v1513_v43  ;;  %v4946_v43 = vld [vmem:[#allocation12_spill] sm:$0xff] }
 0x56d   : > { %v1537_v8 = vpack.c.bf16 %v1516_v39, %v1512_v47  ;;  %v1539_v62 = vpack.c.bf16 %v1518_v3, %v1514_v34  ;;  %v1433_v45 = vpop.f32.mrb[4].mxu0  ;;  %v1486_v57 = vpop.f32.mrb[4].mxu1 }
 0x56e   : > { %v1503_v48 = vadd.f32 %v1433_v45, %v4945_v30  ;;  %v1435_v19 = vpop.f32.mrb[5].mxu0  ;;  %v1505_v11 = vadd.f32 %v1486_v57, %v4945_v30  ;;  %v1488_v52 = vpop.f32.mrb[5].mxu1 }
 0x56f   : > { %v1504_v44 = vadd.f32 %v1435_v19, %v4945_v30  ;;  %v1437_v23 = vpop.f32.mrb[6].mxu0  ;;  %v1506_v7 = vadd.f32 %v1488_v52, %v4945_v30  ;;  %1583 = vmatprep.subr.bf16.mxu0 %v1537_v8  ;;  %v1490_v13 = vpop.f32.mrb[6].mxu1  ;;  %1664 = vmatprep.subr.bf16.mxu1 %v1539_v62 }
 0x570   : > { %v1521_v36 = vmax.f32 %v1505_v11, 0.0  ;;  %v1507_v39 = vadd.f32 %v1437_v23, %v4946_v43  ;;  %v1439_v3 = vpop.f32.mrb[7].mxu0  ;;  %v1509_v34 = vadd.f32 %v1490_v13, %v4946_v43  ;;  %1584 = vmatpush1.bf16.msra.mxu0 %v1536_v12  ;;  %v1492_v10 = vpop.f32.mrb[7].mxu1  ;;  %1665 = vmatpush1.bf16.msra.mxu1 %v1538_v5  ;;  %v1519_v6 = vmax.f32 %v1503_v48, 0.0  ;;  %v4093_v5 = vld [vmem:[%s4819_s3] sm:$0xff]   ;;  %v4104_v12 = vld [vmem:[%s4819_s3 + $0x8] sm:$0xff]  }
 0x571   : > { %v1522_v17 = vmax.f32 %v1506_v7, 0.0  ;;  %v1508_v57 = vadd.f32 %v1439_v3, %v4946_v43  ;;  %v1510_v19 = vadd.f32 %v1492_v10, %v4946_v43  ;;  %v1520_v47 = vmax.f32 %v1504_v44, 0.0  ;;  %4947 = vst [vmem:[#allocation29_spill] sm:$0xff] %v4093_v5  ;;  %4948 = vst [vmem:[#allocation30_spill] sm:$0xff] %v4104_v12  ;;  %v4115_v48 = vld [vmem:[%s4819_s3 + $0x10] sm:$0xff]   ;;  %v4126_v44 = vld [vmem:[%s4819_s3 + $0x18] sm:$0xff]  }
 0x572   : > { %v1523_v31 = vmax.f32 %v1507_v39, 0.0  ;;  %v1525_v38 = vmax.f32 %v1509_v34, 0.0  ;;  %4949 = vst [vmem:[#allocation31_spill] sm:$0xff] %v4115_v48  ;;  %4950 = vst [vmem:[#allocation32_spill] sm:$0xff] %v4126_v44  ;;  %v4137_v7 = vld [vmem:[%s4819_s3 + $0x20] ss:$0 sps:$4 sm:$0xff]  }
 0x573   : > { %v1524_v8 = vmax.f32 %v1508_v57, 0.0  ;;  %v1526_v62 = vmax.f32 %v1510_v19, 0.0  ;;  %4951 = vst [vmem:[#allocation33_spill] sm:$0xff] %v4137_v7 }
 0x574   : > { %v1540_v45 = vpack.c.bf16 %v1523_v31, %v1519_v6  ;;  %v1542_v11 = vpack.c.bf16 %v1525_v38, %v1521_v36 }
 0x575   : > { %v1541_v52 = vpack.c.bf16 %v1524_v8, %v1520_v47  ;;  %v1543_v23 = vpack.c.bf16 %v1526_v62, %v1522_v17 }
 0x577   : > { %1585 = vmatprep.subr.bf16.mxu0 %v1541_v52  ;;  %1666 = vmatprep.subr.bf16.mxu1 %v1543_v23 }
 0x578   : > { %1586 = vmatpush1.bf16.msra.mxu0 %v1540_v45  ;;  %1667 = vmatpush1.bf16.msra.mxu1 %v1542_v11 }
 0x57b   : > { %2718 = vmatmul.mubr.msk.bf16.vlgmr.msra.gmra.mrb[8].mxu0 %vm775_vm10, %v4093_v5  ;;  %2723 = vmatmul.mubr.msk.bf16.vlgmr.msra.gmra.mrb[8].mxu1 %vm775_vm10, %v4093_v5 }
 0x57c   : > { %1625 = vmatprep.mubr.bf16.mxu0 %v4926_v20  ;;  %1706 = vmatprep.mubr.bf16.mxu1 %v4926_v20 }
 0x583   : > { %2719 = vmatmul.mubr.msk.bf16.gmra.mrb[12].mxu0 %vm775_vm10, %v4104_v12  ;;  %2724 = vmatmul.mubr.msk.bf16.gmra.mrb[12].mxu1 %vm775_vm10, %v4104_v12 }
 0x584   : > { %1635 = vmatprep.mubr.bf16.mxu0 %v4926_v20  ;;  %1716 = vmatprep.mubr.bf16.mxu1 %v4926_v20 }
 0x58b   : > { %2720 = vmatmul.mubr.msk.bf16.gmra.mrb[16].mxu0 %vm775_vm10, %v4115_v48  ;;  %2725 = vmatmul.mubr.msk.bf16.gmra.mrb[16].mxu1 %vm775_vm10, %v4115_v48 }
 0x58c   : > { %1645 = vmatprep.mubr.bf16.mxu0 %v4926_v20  ;;  %1726 = vmatprep.mubr.bf16.mxu1 %v4926_v20 }
 0x593   : > { %2721 = vmatmul.mubr.msk.bf16.gmra.mrb[20].mxu0 %vm775_vm10, %v4126_v44  ;;  %2726 = vmatmul.mubr.msk.bf16.gmra.mrb[20].mxu1 %vm775_vm10, %v4126_v44 }
 0x594   : > { %1655 = vmatprep.mubr.bf16.mxu0 %v4926_v20  ;;  %1736 = vmatprep.mubr.bf16.mxu1 %v4926_v20 }
 0x59b   : > { %2722 = vmatmul.mubr.msk.bf16.gmra.mrb[24].mxu0 %vm775_vm10, %v4137_v7  ;;  %2727 = vmatmul.mubr.msk.bf16.gmra.mrb[24].mxu1 %vm775_vm10, %v4137_v7 }
 0x59c   : > { %2137 = vmatprep.mubr.bf16.mxu0 %v4926_v20  ;;  %2190 = vmatprep.mubr.bf16.mxu1 %v4926_v20 }
 0x64e   : > { %v1617_v13 = vpop.f32.mrb[8].mxu0  ;;  %v1698_v36 = vpop.f32.mrb[8].mxu1 }
 0x64f   : > { %1745 = vrot.lane.b32.xlu0 %v1617_v13, %s2952_s10  ;;  %v1619_v39 = vpop.f32.mrb[9].mxu0  ;;  %v1700_v3 = vpop.f32.mrb[9].mxu1 }
 0x650   : > { %1747 = vrot.lane.b32.xlu1 %v1619_v39, %s2952_s10  ;;  %v1621_v34 = vpop.f32.mrb[10].mxu0  ;;  %v1702_v10 = vpop.f32.mrb[10].mxu1 }
 0x651   : > { %v1623_v17 = vpop.f32.mrb[11].mxu0  ;;  %v1704_v57 = vpop.f32.mrb[11].mxu1 }
 0x653   : > { %1749 = vrot.lane.b32.xlu0 %v1698_v36, %s2952_s10 }
 0x654   : > { %1765 = vrot.lane.b32.xlu1 %v1621_v34, %s2951_s9 }
 0x656   : > { %v1627_v19 = vpop.f32.mrb[12].mxu0  ;;  %v1708_v6 = vpop.f32.mrb[12].mxu1 }
 0x657   : > { %1751 = vrot.lane.b32.xlu0 %v1700_v3, %s2952_s10  ;;  %v1629_v31 = vpop.f32.mrb[13].mxu0  ;;  %v1710_v38 = vpop.f32.mrb[13].mxu1 }
 0x658   : > { %1769 = vrot.lane.b32.xlu1 %v1702_v10, %s2951_s9  ;;  %v1631_v47 = vpop.f32.mrb[14].mxu0  ;;  %v1712_v8 = vpop.f32.mrb[14].mxu1 }
 0x659   : > { %v1633_v62 = vpop.f32.mrb[15].mxu0  ;;  %v1714_v45 = vpop.f32.mrb[15].mxu1 }
 0x65b   : > { %1767 = vrot.lane.b32.xlu0 %v1623_v17, %s2951_s9 }
 0x65c   : > { %1771 = vrot.lane.b32.xlu1 %v1704_v57, %s2951_s9 }
 0x65e   : > { %v4153_v11 = vpop.f32.mrb[16].mxu0  ;;  %v4155_v52 = vpop.f32.mrb[16].mxu1 }
 0x65f   : > { %4952 = vst [vmem:[#allocation34_spill] sm:$0xff] %v4155_v52  ;;  %1785 = vrot.lane.b32.xlu0 %v1627_v19, %s2953_s8  ;;  %v4158_v23 = vpop.f32.mrb[17].mxu0  ;;  %v4160_v13 = vpop.f32.mrb[17].mxu1 }
 0x660   : > { %4953 = vst [vmem:[#allocation35_spill] sm:$0xff] %v4160_v13  ;;  %1787 = vrot.lane.b32.xlu1 %v1629_v31, %s2953_s8  ;;  %v1641_v36 = vpop.f32.mrb[18].mxu0  ;;  %v1722_v39 = vpop.f32.mrb[18].mxu1 }
 0x661   : > { %v1643_v3 = vpop.f32.mrb[19].mxu0  ;;  %v1724_v34 = vpop.f32.mrb[19].mxu1 }
 0x663   : > { %1789 = vrot.lane.b32.xlu0 %v1708_v6, %s2953_s8 }
 0x664   : > { %1805 = vrot.lane.b32.xlu1 %v1631_v47, %s2954_s11 }
 0x666   : > { %v1647_v10 = vpop.f32.mrb[20].mxu0  ;;  %v1728_v17 = vpop.f32.mrb[20].mxu1 }
 0x667   : > { %1791 = vrot.lane.b32.xlu0 %v1710_v38, %s2953_s8  ;;  %v1649_v57 = vpop.f32.mrb[21].mxu0  ;;  %v1730_v19 = vpop.f32.mrb[21].mxu1 }
 0x668   : > { %1809 = vrot.lane.b32.xlu1 %v1712_v8, %s2954_s11  ;;  %v1651_v7 = vpop.f32.mrb[22].mxu0  ;;  %v1732_v44 = vpop.f32.mrb[22].mxu1 }
 0x669   : > { %v1653_v48 = vpop.f32.mrb[23].mxu0  ;;  %v1734_v31 = vpop.f32.mrb[23].mxu1 }
 0x66b   : > { %1807 = vrot.lane.b32.xlu0 %v1633_v62, %s2954_s11 }
 0x66c   : > { %1811 = vrot.lane.b32.xlu1 %v1714_v45, %s2954_s11 }
 0x66e   : > { %v1657_v12 = vpop.f32.mrb[24].mxu0  ;;  %v1738_v6 = vpop.f32.mrb[24].mxu1 }
 0x66f   : > { %1825 = vrot.lane.b32.xlu0 %v1641_v36, %s2955_s12  ;;  %v1659_v47 = vpop.f32.mrb[25].mxu0  ;;  %v1740_v5 = vpop.f32.mrb[25].mxu1 }
 0x670   : > { %1827 = vrot.lane.b32.xlu1 %v1643_v3, %s2955_s12  ;;  %v1661_v38 = vpop.f32.mrb[26].mxu0  ;;  %v1742_v43 = vpop.f32.mrb[26].mxu1 }
 0x671   : > { %v1662_v30 = vpop.f32.mrb[27].mxu0  ;;  %v1743_v8 = vpop.f32.mrb[27].mxu1 }
 0x673   : > { %1829 = vrot.lane.b32.xlu0 %v1722_v39, %s2955_s12 }
 0x674   : > { %1845 = vrot.lane.b32.xlu1 %v1647_v10, %s2956_s13 }
 0x677   : > { %1831 = vrot.lane.b32.xlu0 %v1724_v34, %s2955_s12 }
 0x678   : > { %1849 = vrot.lane.b32.xlu1 %v1728_v17, %s2956_s13 }
 0x67b   : > { %1847 = vrot.lane.b32.xlu0 %v1649_v57, %s2956_s13 }
 0x67c   : > { %1851 = vrot.lane.b32.xlu1 %v1730_v19, %s2956_s13 }
 0x67f   : > { %1865 = vrot.lane.b32.xlu0 %v1651_v7, %s2957_s14 }
 0x680   : > { %1867 = vrot.lane.b32.xlu1 %v1653_v48, %s2957_s14 }
 0x683   : > { %1869 = vrot.lane.b32.xlu0 %v1732_v44, %s2957_s14 }
 0x684   : > { %1885 = vrot.lane.b32.xlu1 %v1657_v12, %s2958_s15 }
 0x687   : > { %1887 = vrot.lane.b32.xlu0 %v1659_v47, %s2958_s15 }
 0x688   : > { %1889 = vrot.lane.b32.xlu1 %v1738_v6, %s2958_s15 }
 0x68b   : > { %1871 = vrot.lane.b32.xlu0 %v1734_v31, %s2957_s14 }
 0x68c   : > { %1891 = vrot.lane.b32.xlu1 %v1740_v5, %s2958_s15 }
 0x6c1   : > { %v1746_v30 = vpop.permute.xlu0 %1745 }
 0x6c2   : > { %v1748_v43 = vpop.permute.xlu1 %1747 }
 0x6c3   : > { %v1755_v47 = vsel %vm375_vm0, %v1746_v30, %v1748_v43 }
 0x6c4   : > { %v1762_v49 = vmul.f32 %v1755_v47, %v3773_v4 }
 0x6c5   : > { %v1750_v62 = vpop.permute.xlu0 %1749 }
 0x6c6   : > { %v1766_v45 = vpop.permute.xlu1 %1765  ;;  %v1754_v1 = vsel %vm375_vm0, %v1748_v43, %v1750_v62  ;;  %v1902_v4 = vadd.f32 %v1762_v49, %v3079_v28 }
 0x6c7   : > { %v4206_v47 = vmul.f32 %v1754_v1, %v3803_v15 }
 0x6c9   : > { %v1752_v36 = vpop.permute.xlu0 %1751 }
 0x6ca   : > { %v1770_v7 = vpop.permute.xlu1 %1769  ;;  %v1756_v8 = vsel %vm375_vm0, %v1752_v36, %v1746_v30  ;;  %v1753_v46 = vsel %vm375_vm0, %v1750_v62, %v1752_v36 }
 0x6cb   : > { %v1761_v25 = vmul.f32 %v1756_v8, %v3791_v61  ;;  %v1764_v21 = vmul.f32 %v1753_v46, %v3798_v26 }
 0x6cd   : > { %v1768_v39 = vpop.permute.xlu0 %1767  ;;  %v1901_v43 = vadd.f32 %v1761_v25, %v3079_v28 }
 0x6ce   : > { %v1772_v48 = vpop.permute.xlu1 %1771  ;;  %v1775_v52 = vsel %vm388_vm1, %v1766_v45, %v1768_v39 }
 0x6cf   : > { %v1782_v62 = vmul.f32 %v1775_v52, %v3778_v53  ;;  %v1773_v15 = vsel %vm388_vm1, %v1770_v7, %v1772_v48  ;;  %v1776_v53 = vsel %vm388_vm1, %v1772_v48, %v1766_v45  ;;  %v4237_v45 = vadd.f32 %v1764_v21, %v3079_v28 }
 0x6d1   : > { %v1786_v3 = vpop.permute.xlu0 %1785 }
 0x6d2   : > { %v1788_v44 = vpop.permute.xlu1 %1787 }
 0x6d3   : > { %v1795_v20 = vsel %vm401_vm2, %v1786_v3, %v1788_v44 }
 0x6d4   : > { %v1802_v30 = vmul.f32 %v1795_v20, %v3837_v35  ;;  %v1774_v20 = vsel %vm388_vm1, %v1768_v39, %v1770_v7 }
 0x6d5   : > { %v1790_v34 = vpop.permute.xlu0 %1789  ;;  %v1783_v48 = vmul.f32 %v1774_v20, %v3820_v58 }
 0x6d6   : > { %v1806_v12 = vpop.permute.xlu1 %1805  ;;  %v1794_v61 = vsel %vm401_vm2, %v1788_v44, %v1790_v34  ;;  %v1906_v25 = vadd.f32 %v1802_v30, %v1782_v62  ;;  %v1781_v30 = vmul.f32 %v1776_v53, %v3810_v16 }
 0x6d7   : > { %v1803_v49 = vmul.f32 %v1794_v61, %v3860_v33 }
 0x6d8   : > { %v1922_v20 = vadd.f32 %v1906_v25, %v1902_v4 }
 0x6d9   : > { %v1792_v10 = vpop.permute.xlu0 %1791 }
 0x6da   : > { %v4185_v17 = vpop.permute.xlu1 %1809  ;;  %v1796_v26 = vsel %vm401_vm2, %v1792_v10, %v1786_v3  ;;  %v1793_v61 = vsel %vm401_vm2, %v1790_v34, %v1792_v10 }
 0x6db   : > { %v1801_v3 = vmul.f32 %v1796_v26, %v3853_v14  ;;  %v4252_v26 = vadd.f32 %v1803_v49, %v1783_v48 }
 0x6dd   : > { %v4187_v57 = vpop.permute.xlu0 %1807  ;;  %v1905_v53 = vadd.f32 %v1801_v3, %v1781_v30 }
 0x6de   : > { %v1812_v19 = vpop.permute.xlu1 %1811  ;;  %v1815_v52 = vsel %vm414_vm3, %v1806_v12, %v4187_v57 }
 0x6df   : > { %v1816_v1 = vsel %vm414_vm3, %v1812_v19, %v1806_v12  ;;  %v1784_v12 = vmul.f32 %v1773_v15, %v3815_v54  ;;  %v1822_v21 = vmul.f32 %v1815_v52, %v3844_v27  ;;  %v1813_v54 = vsel %vm414_vm3, %v4185_v17, %v1812_v19 }
 0x6e0   : > { %v1821_v62 = vmul.f32 %v1816_v1, %v3874_v22  ;;  %v1824_v49 = vmul.f32 %v1813_v54, %v3884_v32  ;;  %v1921_v52 = vadd.f32 %v1905_v53, %v1901_v43 }
 0x6e1   : > { %v1826_v31 = vpop.permute.xlu0 %1825 }
 0x6e2   : > { %v1828_v5 = vpop.permute.xlu1 %1827  ;;  %v1909_v4 = vadd.f32 %v1821_v62, %v4153_v11  ;;  %v4954_v62 = vld [vmem:[#allocation35_spill] sm:$0xff] }
 0x6e3   : > { %v1835_v46 = vsel %vm427_vm4, %v1826_v31, %v1828_v5 }
 0x6e5   : > { %v1830_v6 = vpop.permute.xlu0 %1829 }
 0x6e6   : > { %v1846_v38 = vpop.permute.xlu1 %1845  ;;  %v1834_v7 = vsel %vm427_vm4, %v1828_v5, %v1830_v6  ;;  %v1841_v5 = vmul.f32 %v1835_v46, %v3931_v51  ;;  %v1814_v46 = vsel %vm414_vm3, %v4187_v57, %v4185_v17 }
 0x6e7   : > { %v1842_v58 = vmul.f32 %v1834_v7, %v3904_v40 }
 0x6e9   : > { %v1832_v0 = vpop.permute.xlu0 %1831 }
 0x6ea   : > { %v1850_v59 = vpop.permute.xlu1 %1849  ;;  %v1836_v34 = vsel %vm427_vm4, %v1832_v0, %v1826_v31  ;;  %v1833_v25 = vsel %vm427_vm4, %v1830_v6, %v1832_v0  ;;  %v1910_v31 = vadd.f32 %v1822_v21, %v4158_v23 }
 0x6eb   : > { %v1843_v7 = vmul.f32 %v1833_v25, %v3926_v24 }
 0x6ed   : > { %v1848_v13 = vpop.permute.xlu0 %1847 }
 0x6ee   : > { %v1855_v36 = vsel %vm440_vm6, %v1846_v38, %v1848_v13  ;;  %v1852_v8 = vpop.permute.xlu1 %1851  ;;  %v1854_v35 = vsel %vm440_vm6, %v1848_v13, %v1850_v59 }
 0x6ef   : > { %v1861_v13 = vmul.f32 %v1855_v36, %v3978_v60  ;;  %v1862_v44 = vmul.f32 %v1854_v35, %v3955_v2  ;;  %v1856_v36 = vsel %vm440_vm6, %v1852_v8, %v1846_v38  ;;  %v1853_v27 = vsel %vm440_vm6, %v1850_v59, %v1852_v8 }
 0x6f0   : > { %v1804_v38 = vmul.f32 %v1793_v61, %v3865_v29  ;;  %v1864_v19 = vmul.f32 %v1856_v36, %v3983_v42  ;;  %v1844_v29 = vmul.f32 %v1836_v34, %v3936_v55  ;;  %v1863_v8 = vmul.f32 %v1853_v27, %v3971_v18  ;;  %v4955_v27 = vld [vmem:[#allocation24_spill] sm:$0xff] }
 0x6f1   : > { %v1866_v39 = vpop.permute.xlu0 %1865  ;;  %v1913_v15 = vadd.f32 %v1861_v13, %v1841_v5  ;;  %v1914_v10 = vadd.f32 %v1862_v44, %v1842_v58  ;;  %v1912_v5 = vadd.f32 %v1824_v49, %v4954_v62 }
 0x6f2   : > { %v1868_v33 = vpop.permute.xlu1 %1867  ;;  %v1916_v57 = vadd.f32 %v1864_v19, %v1844_v29  ;;  %v1908_v44 = vadd.f32 %v1804_v38, %v1784_v12  ;;  %v1915_v61 = vadd.f32 %v1863_v8, %v1843_v7  ;;  %v4956_v19 = vld [vmem:[#allocation34_spill] sm:$0xff]  ;;  %v4960_v8 = vld [vmem:[#allocation25_spill] sm:$0xff] }
 0x6f3   : > { %v1875_v59 = vsel %vm453_vm5, %v1866_v39, %v1868_v33  ;;  %v1925_v11 = vadd.f32 %v1913_v15, %v1909_v4  ;;  %v1926_v17 = vadd.f32 %v1914_v10, %v1910_v31  ;;  %v4959_v29 = vld [vmem:[#allocation26_spill] sm:$0xff] }
 0x6f4   : > { %v1881_v13 = vmul.f32 %v1875_v59, %v3997_v37  ;;  %v1924_v25 = vadd.f32 %v1908_v44, %v4237_v45  ;;  %v1903_v45 = vadd.f32 %v4206_v47, %v3079_v28 }
 0x6f5   : > { %v1870_v35 = vpop.permute.xlu0 %1869  ;;  %v1929_v21 = vadd.f32 %v1925_v11, %v1921_v52  ;;  %v1930_v54 = vadd.f32 %v1926_v17, %v1922_v20 }
 0x6f6   : > { %v1886_v1 = vpop.permute.xlu1 %1885  ;;  %v1874_v0 = vsel %vm453_vm5, %v1868_v33, %v1870_v35  ;;  %v1823_v33 = vmul.f32 %v1814_v46, %v3879_v63  ;;  %v1928_v63 = vadd.f32 %v1916_v57, %v1912_v5 }
 0x6f7   : > { %v1882_v43 = vmul.f32 %v1874_v0, %v3962_v9 }
 0x6f8   : > { %v1911_v46 = vadd.f32 %v1823_v33, %v4956_v19  ;;  %v1932_v17 = vadd.f32 %v1928_v63, %v1924_v25  ;;  %v4403_v63 = vld [vmem:[%s4821_s5] sm:$0xff] }
 0x6f9   : > { %v1888_v6 = vpop.permute.xlu0 %1887 }
 0x6fa   : > { %v1895_v23 = vsel %vm466_vm7, %v1886_v1, %v1888_v6  ;;  %v1890_v32 = vpop.permute.xlu1 %1889  ;;  %v1927_v7 = vadd.f32 %v1915_v61, %v1911_v46 }
 0x6fb   : > { %v1897_v48 = vmul.f32 %v1895_v23, %v4019_v50  ;;  %v1894_v3 = vsel %vm466_vm7, %v1888_v6, %v1890_v32  ;;  %v4961_v6 = vld [vmem:[#allocation6_spill] sm:$0xff] }
 0x6fc   : > { %v1898_v30 = vmul.f32 %v1894_v3, %v4032_v56 }
 0x6fd   : > { %v1917_v58 = vadd.f32 %v1897_v48, %v1881_v13  ;;  %v1872_v36 = vpop.permute.xlu0 %1871  ;;  %v4962_v48 = vld [vmem:[#allocation7_spill] sm:$0xff] }
 0x6fe   : > { %v1918_v15 = vadd.f32 %v1898_v30, %v1882_v43  ;;  %v1873_v53 = vsel %vm453_vm5, %v1870_v35, %v1872_v36  ;;  %v1876_v12 = vsel %vm453_vm5, %v1872_v36, %v1866_v39  ;;  %v1892_v34 = vpop.permute.xlu1 %1891  ;;  %v4957_v35 = vld [vmem:[#allocation5_spill] sm:$0xff]  ;;  %v4958_v39 = vld [vmem:[#allocation23_spill] sm:$0xff]  ;;  %v4395_v36 = vld [vmem:[%s4821_s5 + $0x28] sm:$0xff] }
 0x6ff   : > { %v1933_v10 = vadd.f32 %v1929_v21, %v1917_v58  ;;  %v1884_v38 = vmul.f32 %v1876_v12, %v4955_v27  ;;  %v1893_v4 = vsel %vm466_vm7, %v1890_v32, %v1892_v34  ;;  %v1896_v31 = vsel %vm466_vm7, %v1892_v34, %v1886_v1  ;;  %v4389_v21 = vld [vmem:[%s4821_s5 + $0x8] sm:$0xff] }
 0x700   : > { %v1934_v20 = vadd.f32 %v1930_v54, %v1918_v15  ;;  %v1883_v59 = vmul.f32 %v1873_v53, %v4958_v39  ;;  %v1899_v11 = vmul.f32 %v1893_v4, %v4959_v29  ;;  %v1900_v0 = vmul.f32 %v1896_v31, %v4960_v8 }
 0x701   : > { %v4301_v49 = vsub.f32 %v4957_v35, %v1933_v10  ;;  %v1923_v1 = vadd.f32 %v4252_v26, %v1903_v45  ;;  %v4963_v26 = vld [vmem:[#allocation9_spill] sm:$0xff]  ;;  %v4416_v35 = vld [vmem:[%s4821_s5 + $0x10] sm:$0xff] }
 0x702   : > { %v4307_v52 = vsub.f32 %v4961_v6, %v1934_v20  ;;  %v1920_v23 = vadd.f32 %v1900_v0, %v1884_v38  ;;  %v1919_v32 = vadd.f32 %v1899_v11, %v1883_v59  ;;  %v4432_v45 = vld [vmem:[%s4821_s5 + $0x30] sm:$0xff] }
 0x703   : > { %1941 = vrot.lane.b32.xlu0 %v4301_v49, %s2952_s10  ;;  %v1931_v13 = vadd.f32 %v1927_v7, %v1923_v1 }
 0x704   : > { %1943 = vrot.lane.b32.xlu1 %v4307_v52, %s2952_s10  ;;  %v1936_v57 = vadd.f32 %v1932_v17, %v1920_v23  ;;  %v4438_v17 = vld [vmem:[%s4821_s5 + $0x38] sm:$0xff] }
 0x705   : > { %v1935_v47 = vadd.f32 %v1931_v13, %v1919_v32 }
 0x706   : > { %v4321_v3 = vsub.f32 %v4962_v48, %v1936_v57 }
 0x707   : > { %1953 = vrot.lane.b32.xlu0 %v4301_v49, %s2951_s9  ;;  %v4328_v44 = vsub.f32 %v4963_v26, %v1935_v47 }
 0x708   : > { %1955 = vrot.lane.b32.xlu1 %v4307_v52, %s2951_s9 }
 0x70b   : > { %1947 = vrot.lane.b32.xlu0 %v4321_v3, %s2952_s10 }
 0x70c   : > { %1959 = vrot.lane.b32.xlu1 %v4321_v3, %s2951_s9 }
 0x70f   : > { %1945 = vrot.lane.b32.xlu0 %v4328_v44, %s2952_s10 }
 0x710   : > { %1957 = vrot.lane.b32.xlu1 %v4328_v44, %s2951_s9 }
 0x713   : > { %1965 = vrot.lane.b32.xlu0 %v4301_v49, %s2953_s8 }
 0x714   : > { %1967 = vrot.lane.b32.xlu1 %v4307_v52, %s2953_s8 }
 0x717   : > { %1977 = vrot.lane.b32.xlu0 %v4301_v49, %s2954_s11 }
 0x718   : > { %1979 = vrot.lane.b32.xlu1 %v4307_v52, %s2954_s11 }
 0x71b   : > { %1971 = vrot.lane.b32.xlu0 %v4321_v3, %s2953_s8 }
 0x71c   : > { %1983 = vrot.lane.b32.xlu1 %v4321_v3, %s2954_s11 }
 0x71f   : > { %1969 = vrot.lane.b32.xlu0 %v4328_v44, %s2953_s8 }
 0x720   : > { %1981 = vrot.lane.b32.xlu1 %v4328_v44, %s2954_s11 }
 0x723   : > { %1991 = vrot.lane.b32.xlu0 %v4307_v52, %s2955_s12 }
 0x724   : > { %1993 = vrot.lane.b32.xlu1 %v4328_v44, %s2955_s12 }
 0x727   : > { %1989 = vrot.lane.b32.xlu0 %v4301_v49, %s2955_s12 }
 0x728   : > { %1995 = vrot.lane.b32.xlu1 %v4321_v3, %s2955_s12 }
 0x72b   : > { %2003 = vrot.lane.b32.xlu0 %v4307_v52, %s2956_s13 }
 0x72c   : > { %2005 = vrot.lane.b32.xlu1 %v4328_v44, %s2956_s13 }
 0x72f   : > { %2015 = vrot.lane.b32.xlu0 %v4307_v52, %s2957_s14 }
 0x730   : > { %2017 = vrot.lane.b32.xlu1 %v4328_v44, %s2957_s14 }
 0x733   : > { %2001 = vrot.lane.b32.xlu0 %v4301_v49, %s2956_s13 }
 0x734   : > { %2013 = vrot.lane.b32.xlu1 %v4301_v49, %s2957_s14 }
 0x737   : > { %2007 = vrot.lane.b32.xlu0 %v4321_v3, %s2956_s13 }
 0x738   : > { %2019 = vrot.lane.b32.xlu1 %v4321_v3, %s2957_s14 }
 0x73b   : > { %2025 = vrot.lane.b32.xlu0 %v4301_v49, %s2958_s15 }
 0x73c   : > { %2027 = vrot.lane.b32.xlu1 %v4307_v52, %s2958_s15 }
 0x73f   : > { %2029 = vrot.lane.b32.xlu0 %v4328_v44, %s2958_s15 }
 0x740   : > { %2031 = vrot.lane.b32.xlu1 %v4321_v3, %s2958_s15 }
 0x775   : > { %v1942_v33 = vpop.permute.xlu0 %1941 }
 0x776   : > { %v1944_v43 = vpop.permute.xlu1 %1943 }
 0x777   : > { %v1951_v30 = vsel %vm375_vm0, %v1942_v33, %v1944_v43 }
 0x778   : > { %v2038_v58 = vmul.f32 %v4389_v21, %v1951_v30 }
 0x779   : > { %v1954_v62 = vpop.permute.xlu0 %1953 }
 0x77a   : > { %v1956_v5 = vpop.permute.xlu1 %1955 }
 0x77b   : > { %v1963_v61 = vsel %vm388_vm1, %v1954_v62, %v1956_v5 }
 0x77c   : > { %v2042_v54 = vmul.f32 %v4395_v36, %v1963_v61 }
 0x77d   : > { %v1948_v15 = vpop.permute.xlu0 %1947 }
 0x77e   : > { %v1952_v53 = vsel %vm375_vm0, %v1948_v15, %v1942_v33  ;;  %v1960_v12 = vpop.permute.xlu1 %1959  ;;  %v2074_v34 = vpack.c.bf16 %v2042_v54, %v2038_v58 }
 0x77f   : > { %v2037_v10 = vmul.f32 %v4403_v63, %v1952_v53  ;;  %v1964_v38 = vsel %vm388_vm1, %v1960_v12, %v1954_v62  ;;  %v4454_v62 = vld [vmem:[%s4821_s5 + $0x68] sm:$0xff] }
 0x780   : > { %v2041_v4 = vmul.f32 %v1964_v38, %v3810_v16  ;;  %2105 = vmatprep.subr.bf16.mxu0 %v2074_v34  ;;  %v4422_v16 = vld [vmem:[%s4821_s5 + $0x18] sm:$0xff] }
 0x781   : > { %v1946_v25 = vpop.permute.xlu0 %1945 }
 0x782   : > { %v2073_v19 = vpack.c.bf16 %v2041_v4, %v2037_v10  ;;  %v1949_v46 = vsel %vm375_vm0, %v1946_v25, %v1948_v15  ;;  %v1950_v20 = vsel %vm375_vm0, %v1944_v43, %v1946_v25  ;;  %v1958_v31 = vpop.permute.xlu1 %1957  ;;  %v4448_v43 = vld [vmem:[%s4821_s5 + $0x48] sm:$0xff] }
 0x783   : > { %v2039_v59 = vmul.f32 %v4416_v35, %v1950_v20  ;;  %v2040_v11 = vmul.f32 %v4422_v16, %v1949_v46  ;;  %v1961_v0 = vsel %vm388_vm1, %v1958_v31, %v1960_v12  ;;  %v1962_v6 = vsel %vm388_vm1, %v1956_v5, %v1958_v31  ;;  %v4470_v46 = vld [vmem:[%s4821_s5 + $0x50] sm:$0xff] }
 0x784   : > { %v2043_v7 = vmul.f32 %v4432_v45, %v1962_v6  ;;  %v2044_v23 = vmul.f32 %v4438_v17, %v1961_v0  ;;  %2106 = vmatpush1.bf16.msra.mxu0 %v2073_v19  ;;  %v4492_v6 = vld [vmem:[%s4821_s5 + $0x78] sm:$0xff] }
 0x785   : > { %v1966_v1 = vpop.permute.xlu0 %1965 }
 0x786   : > { %v2075_v32 = vpack.c.bf16 %v2043_v7, %v2039_v59  ;;  %v1968_v57 = vpop.permute.xlu1 %1967  ;;  %v2076_v13 = vpack.c.bf16 %v2044_v23, %v2040_v11  ;;  %v4486_v11 = vld [vmem:[%s4821_s5 + $0x70] sm:$0xff] }
 0x787   : > { %v1975_v47 = vsel %vm401_vm2, %v1966_v1, %v1968_v57 }
 0x788   : > { %2158 = vmatprep.subr.bf16.mxu1 %v2076_v13  ;;  %v2046_v30 = vmul.f32 %v4448_v43, %v1975_v47 }
 0x789   : > { %2159 = vmatpush1.bf16.msra.mxu1 %v2075_v32  ;;  %v1978_v48 = vpop.permute.xlu0 %1977 }
 0x78a   : > { %v1980_v26 = vpop.permute.xlu1 %1979 }
 0x78b   : > { %v1987_v33 = vsel %vm414_vm3, %v1978_v48, %v1980_v26 }
 0x78c   : > { %v2050_v5 = vmul.f32 %v4454_v62, %v1987_v33 }
 0x78d   : > { %v1972_v61 = vpop.permute.xlu0 %1971 }
 0x78e   : > { %v1976_v58 = vsel %vm401_vm2, %v1972_v61, %v1966_v1  ;;  %v1984_v54 = vpop.permute.xlu1 %1983  ;;  %v2078_v15 = vpack.c.bf16 %v2050_v5, %v2046_v30 }
 0x78f   : > { %v2045_v53 = vmul.f32 %v1976_v58, %v3853_v14  ;;  %v1988_v12 = vsel %vm414_vm3, %v1984_v54, %v1978_v48  ;;  %v2852_v48 = vld [vmem:[%s4821_s5 + $0x88] sm:$0xff]  ;;  %v4964_v58 = vld [vmem:[#allocation8_spill] sm:$0xff] }
 0x790   : > { %v2049_v34 = vmul.f32 %v1988_v12, %v3874_v22  ;;  %2107 = vmatprep.subr.bf16.mxu0 %v2078_v15  ;;  %v4476_v22 = vld [vmem:[%s4821_s5 + $0x58] sm:$0xff]  ;;  %v4965_v12 = vld [vmem:[#allocation22_spill] sm:$0xff] }
 0x791   : > { %v1970_v10 = vpop.permute.xlu0 %1969 }
 0x792   : > { %v2077_v38 = vpack.c.bf16 %v2049_v34, %v2045_v53  ;;  %v1973_v4 = vsel %vm401_vm2, %v1970_v10, %v1972_v61  ;;  %v1974_v25 = vsel %vm401_vm2, %v1968_v57, %v1970_v10  ;;  %v1982_v19 = vpop.permute.xlu1 %1981  ;;  %v2055_v34 = vmul.f32 %v4328_v44, %v4965_v12 }
 0x793   : > { %v2047_v14 = vmul.f32 %v4470_v46, %v1974_v25  ;;  %v2048_v20 = vmul.f32 %v4476_v22, %v1973_v4  ;;  %v1985_v31 = vsel %vm414_vm3, %v1982_v19, %v1984_v54  ;;  %v1986_v59 = vsel %vm414_vm3, %v1980_v26, %v1982_v19  ;;  %v2853_v4 = vld [vmem:[%s4821_s5 + $0x98] sm:$0xff] }
 0x794   : > { %v2051_v0 = vmul.f32 %v4486_v11, %v1986_v59  ;;  %v2052_v7 = vmul.f32 %v4492_v6, %v1985_v31  ;;  %2108 = vmatpush1.bf16.msra.mxu0 %v2077_v38  ;;  %v2054_v26 = vmul.f32 %v2852_v48, %v4307_v52  ;;  %v2053_v54 = vmul.f32 %v4301_v49, %v4964_v58 }
 0x795   : > { %v1992_v23 = vpop.permute.xlu0 %1991 }
 0x796   : > { %v2079_v1 = vpack.c.bf16 %v2051_v0, %v2047_v14  ;;  %v1994_v32 = vpop.permute.xlu1 %1993  ;;  %v2080_v57 = vpack.c.bf16 %v2052_v7, %v2048_v20 }
 0x797   : > { %v1998_v13 = vsel %vm427_vm4, %v1992_v23, %v1994_v32 }
 0x798   : > { %v2058_v47 = vmul.f32 %v1998_v13, %v3904_v40  ;;  %2160 = vmatprep.subr.bf16.mxu1 %v2080_v57 }
 0x799   : > { %2161 = vmatpush1.bf16.msra.mxu1 %v2079_v1  ;;  %v1990_v33 = vpop.permute.xlu0 %1989 }
 0x79a   : > { %v1999_v30 = vsel %vm427_vm4, %v1990_v33, %v1992_v23  ;;  %v1996_v5 = vpop.permute.xlu1 %1995  ;;  %v2082_v61 = vpack.c.bf16 %v2058_v47, %v2054_v26 }
 0x79b   : > { %v2057_v15 = vmul.f32 %v1999_v30, %v3931_v51  ;;  %v1997_v40 = vsel %vm427_vm4, %v1994_v32, %v1996_v5  ;;  %v2000_v53 = vsel %vm427_vm4, %v1996_v5, %v1990_v33  ;;  %v2056_v51 = vmul.f32 %v2853_v4, %v4321_v3 }
 0x79c   : > { %v2059_v10 = vmul.f32 %v1997_v40, %v3926_v24  ;;  %v2060_v38 = vmul.f32 %v2000_v53, %v3936_v55  ;;  %2109 = vmatprep.subr.bf16.mxu0 %v2082_v61 }
 0x79d   : > { %v2081_v25 = vpack.c.bf16 %v2057_v15, %v2053_v54  ;;  %v2004_v19 = vpop.permute.xlu0 %2003 }
 0x79e   : > { %v2083_v14 = vpack.c.bf16 %v2059_v10, %v2055_v34  ;;  %v2006_v20 = vpop.permute.xlu1 %2005  ;;  %v2084_v31 = vpack.c.bf16 %v2060_v38, %v2056_v51 }
 0x79f   : > { %2110 = vmatpush1.bf16.msra.mxu0 %v2081_v25  ;;  %v2010_v59 = vsel %vm440_vm6, %v2004_v19, %v2006_v20 }
 0x7a0   : > { %2162 = vmatprep.subr.bf16.mxu1 %v2084_v31  ;;  %v2062_v7 = vmul.f32 %v2010_v59, %v3955_v2 }
 0x7a1   : > { %2163 = vmatpush1.bf16.msra.mxu1 %v2083_v14  ;;  %v2016_v24 = vpop.permute.xlu0 %2015 }
 0x7a2   : > { %v2018_v55 = vpop.permute.xlu1 %2017 }
 0x7a3   : > { %v2022_v0 = vsel %vm453_vm5, %v2016_v24, %v2018_v55 }
 0x7a4   : > { %v2066_v23 = vmul.f32 %v2022_v0, %v3962_v9  ;;  %v4969_v0 = vld [vmem:[#allocation11_spill] sm:$0xff] }
 0x7a5   : > { %v2002_v1 = vpop.permute.xlu0 %2001 }
 0x7a6   : > { %v2011_v32 = vsel %vm440_vm6, %v2002_v1, %v2004_v19  ;;  %v2014_v57 = vpop.permute.xlu1 %2013  ;;  %v2086_v13 = vpack.c.bf16 %v2066_v23, %v2062_v7 }
 0x7a7   : > { %v2061_v47 = vmul.f32 %v2011_v32, %v3978_v60  ;;  %v2023_v48 = vsel %vm453_vm5, %v2014_v57, %v2016_v24  ;;  %v4966_v24 = vld [vmem:[#allocation27_spill] sm:$0xff] }
 0x7a8   : > { %v2065_v26 = vmul.f32 %v2023_v48, %v3997_v37  ;;  %2111 = vmatprep.subr.bf16.mxu0 %v2086_v13 }
 0x7a9   : > { %v2008_v33 = vpop.permute.xlu0 %2007 }
 0x7aa   : > { %v2085_v30 = vpack.c.bf16 %v2065_v26, %v2061_v47  ;;  %v2009_v2 = vsel %vm440_vm6, %v2006_v20, %v2008_v33  ;;  %v2012_v9 = vsel %vm440_vm6, %v2008_v33, %v2002_v1  ;;  %v2020_v5 = vpop.permute.xlu1 %2019  ;;  %v4970_v26 = vld [vmem:[#allocation13_spill] sm:$0xff] }
 0x7ab   : > { %v2063_v61 = vmul.f32 %v2009_v2, %v3971_v18  ;;  %v2064_v58 = vmul.f32 %v2012_v9, %v3983_v42  ;;  %v2021_v60 = vsel %vm453_vm5, %v2018_v55, %v2020_v5  ;;  %v2024_v37 = vsel %vm453_vm5, %v2020_v5, %v2014_v57 }
 0x7ac   : > { %v2067_v54 = vmul.f32 %v2021_v60, %v4958_v39  ;;  %v2068_v15 = vmul.f32 %v2024_v37, %v4955_v27  ;;  %2112 = vmatpush1.bf16.msra.mxu0 %v2085_v30 }
 0x7ad   : > { %v2026_v40 = vpop.permute.xlu0 %2025 }
 0x7ae   : > { %v2087_v53 = vpack.c.bf16 %v2067_v54, %v2063_v61  ;;  %v2028_v12 = vpop.permute.xlu1 %2027  ;;  %v2088_v34 = vpack.c.bf16 %v2068_v15, %v2064_v58 }
 0x7af   : > { %v2035_v18 = vsel %vm466_vm7, %v2026_v40, %v2028_v12 }
 0x7b0   : > { %v2069_v42 = vmul.f32 %v2035_v18, %v4019_v50  ;;  %2164 = vmatprep.subr.bf16.mxu1 %v2088_v34 }
 0x7b1   : > { %2165 = vmatpush1.bf16.msra.mxu1 %v2087_v53  ;;  %v2030_v10 = vpop.permute.xlu0 %2029 }
 0x7b2   : > { %v2034_v38 = vsel %vm466_vm7, %v2028_v12, %v2030_v10  ;;  %v2032_v4 = vpop.permute.xlu1 %2031  ;;  %v2089_v39 = vpack.c.bf16 %v2069_v42, %v2069_v42 }
 0x7b3   : > { %v2070_v27 = vmul.f32 %v2034_v38, %v4032_v56  ;;  %v2033_v51 = vsel %vm466_vm7, %v2030_v10, %v2032_v4  ;;  %v2036_v25 = vsel %vm466_vm7, %v2032_v4, %v2026_v40 }
 0x7b4   : > { %v2071_v19 = vmul.f32 %v2033_v51, %v4959_v29  ;;  %v2072_v50 = vmul.f32 %v2036_v25, %v4960_v8  ;;  %v2094_v59 = vsel %vm584_vm8, %v2089_v39, 0  ;;  %v4967_v29 = vmov 0   ;;  %v4968_v8 = vld [vmem:[#allocation28_spill] sm:$0xff]  ;;  %v4971_v39 = vld [vmem:[#allocation10_spill] sm:$0xff] }
 0x7b5   : > { %v2090_v14 = vpack.c.bf16 %v2070_v27, %v2070_v27 }
 0x7b6   : > { %v2091_v20 = vpack.c.bf16 %v2071_v19, %v2071_v19  ;;  %v2092_v31 = vpack.c.bf16 %v2072_v50, %v2072_v50 }
 0x7b7   : > { %2728 = vmatprep.subr.msk.bf16.mxu0 %vm584_vm8, %v2090_v14 }
 0x7b8   : > { %2114 = vmatpush1.bf16.msra.mxu0 %v2094_v59  ;;  %2731 = vmatprep.subr.msk.bf16.mxu1 %vm584_vm8, %v2092_v31  ;;  %v2100_v56 = vsel %vm584_vm8, %v2091_v20, 0  ;;  %v4972_v59 = vld [vmem:[#allocation12_spill] sm:$0xff] }
 0x7b9   : > { %2167 = vmatpush1.bf16.msra.mxu1 %v2100_v56 }
 0x7bb   : > { %2729 = vmatmul.mubr.msk.bf16.vlgmr.msra.gmra.mrb[28].mxu0 %vm577_vm9, %v4966_v24 }
 0x7bc   : > { %2732 = vmatmul.mubr.msk.bf16.vlgmr.msra.gmra.mrb[28].mxu1 %vm577_vm9, %v4966_v24  ;;  %2147 = vmatprep.mubr.bf16.mxu0 %v4967_v29 }
 0x7bd   : > { %2200 = vmatprep.mubr.bf16.mxu1 %v4967_v29 }
 0x7c3   : > { %2730 = vmatmul.mubr.msk.bf16.gmra.mrb[32].mxu0 %vm577_vm9, %v4968_v8 }
 0x7c4   : > { %2733 = vmatmul.mubr.msk.bf16.gmra.mrb[32].mxu1 %vm577_vm9, %v4968_v8  ;;  %2283 = vmatprep.mubr.bf16.mxu0 %v4967_v29 }
 0x7c5   : > { %2364 = vmatprep.mubr.bf16.mxu1 %v4967_v29 }
 0x88e   : > { %v2139_v55 = vpop.f32.mrb[28].mxu0 }
 0x88f   : > { %v2211_v7 = vadd.f32 %v2139_v55, %v4969_v0  ;;  %v2141_v23 = vpop.f32.mrb[29].mxu0  ;;  %v2192_v1 = vpop.f32.mrb[28].mxu1 }
 0x890   : > { %v2212_v32 = vadd.f32 %v2141_v23, %v4969_v0  ;;  %v2213_v57 = vadd.f32 %v2192_v1, %v4969_v0  ;;  %v2143_v13 = vpop.f32.mrb[30].mxu0  ;;  %v2194_v47 = vpop.f32.mrb[29].mxu1 }
 0x891   : > { %v2227_v48 = vmax.f32 %v2211_v7, 0.0  ;;  %v2215_v33 = vadd.f32 %v2143_v13, %v4970_v26  ;;  %v2214_v30 = vadd.f32 %v2194_v47, %v4969_v0  ;;  %v2145_v2 = vpop.f32.mrb[31].mxu0  ;;  %v2196_v9 = vpop.f32.mrb[30].mxu1 }
 0x892   : > { %v2228_v5 = vmax.f32 %v2212_v32, 0.0  ;;  %v2216_v61 = vadd.f32 %v2145_v2, %v4970_v26  ;;  %v2217_v58 = vadd.f32 %v2196_v9, %v4970_v26  ;;  %v2198_v60 = vpop.f32.mrb[31].mxu1  ;;  %v2229_v15 = vmax.f32 %v2213_v57, 0.0 }
 0x893   : > { %v2231_v37 = vmax.f32 %v2215_v33, 0.0  ;;  %v2218_v54 = vadd.f32 %v2198_v60, %v4970_v26  ;;  %v2230_v34 = vmax.f32 %v2214_v30, 0.0  ;;  %v4975_v60 = vld [vmem:[#allocation31_spill] sm:$0xff] }
 0x894   : > { %v2232_v40 = vmax.f32 %v2216_v61, 0.0  ;;  %v2233_v53 = vmax.f32 %v2217_v58, 0.0  ;;  %v4973_v61 = vld [vmem:[#allocation29_spill] sm:$0xff]  ;;  %v4974_v58 = vld [vmem:[#allocation30_spill] sm:$0xff] }
 0x895   : > { %v2243_v12 = vpack.c.bf16 %v2231_v37, %v2227_v48  ;;  %v2234_v18 = vmax.f32 %v2218_v54, 0.0  ;;  %v4976_v37 = vld [vmem:[#allocation32_spill] sm:$0xff]  ;;  %v4977_v54 = vld [vmem:[#allocation33_spill] sm:$0xff] }
 0x896   : > { %v2244_v42 = vpack.c.bf16 %v2232_v40, %v2228_v5  ;;  %v2245_v10 = vpack.c.bf16 %v2233_v53, %v2229_v15  ;;  %v2149_v38 = vpop.f32.mrb[32].mxu0 }
 0x897   : > { %v2246_v4 = vpack.c.bf16 %v2234_v18, %v2230_v34  ;;  %v2219_v27 = vadd.f32 %v2149_v38, %v4971_v39  ;;  %v2151_v51 = vpop.f32.mrb[33].mxu0  ;;  %v2202_v25 = vpop.f32.mrb[32].mxu1 }
 0x898   : > { %v2220_v19 = vadd.f32 %v2151_v51, %v4971_v39  ;;  %v2221_v50 = vadd.f32 %v2202_v25, %v4971_v39  ;;  %v2153_v14 = vpop.f32.mrb[34].mxu0  ;;  %v2204_v20 = vpop.f32.mrb[33].mxu1  ;;  %2251 = vmatprep.subr.bf16.mxu0 %v2244_v42 }
 0x899   : > { %v2235_v31 = vmax.f32 %v2219_v27, 0.0  ;;  %v2223_v56 = vadd.f32 %v2153_v14, %v4972_v59  ;;  %v2222_v24 = vadd.f32 %v2204_v20, %v4971_v39  ;;  %v2155_v8 = vpop.f32.mrb[35].mxu0  ;;  %v2206_v55 = vpop.f32.mrb[34].mxu1  ;;  %2252 = vmatpush1.bf16.msra.mxu0 %v2243_v12  ;;  %2332 = vmatprep.subr.bf16.mxu1 %v2246_v4 }
 0x89a   : > { %v2236_v0 = vmax.f32 %v2220_v19, 0.0  ;;  %v2224_v7 = vadd.f32 %v2155_v8, %v4972_v59  ;;  %v2225_v23 = vadd.f32 %v2206_v55, %v4972_v59  ;;  %v2208_v1 = vpop.f32.mrb[35].mxu1  ;;  %2333 = vmatpush1.bf16.msra.mxu1 %v2245_v10  ;;  %v2237_v13 = vmax.f32 %v2221_v50, 0.0 }
 0x89b   : > { %v2239_v32 = vmax.f32 %v2223_v56, 0.0  ;;  %v2226_v57 = vadd.f32 %v2208_v1, %v4972_v59  ;;  %v2238_v33 = vmax.f32 %v2222_v24, 0.0 }
 0x89c   : > { %v2240_v47 = vmax.f32 %v2224_v7, 0.0  ;;  %v2241_v48 = vmax.f32 %v2225_v23, 0.0 }
 0x89d   : > { %v2247_v26 = vpack.c.bf16 %v2239_v32, %v2235_v31  ;;  %v2242_v30 = vmax.f32 %v2226_v57, 0.0 }
 0x89e   : > { %v2248_v2 = vpack.c.bf16 %v2240_v47, %v2236_v0  ;;  %v2249_v9 = vpack.c.bf16 %v2241_v48, %v2237_v13 }
 0x89f   : > { %v2250_v5 = vpack.c.bf16 %v2242_v30, %v2238_v33 }
 0x8a0   : > { %2253 = vmatprep.subr.bf16.mxu0 %v2248_v2 }
 0x8a1   : > { %2254 = vmatpush1.bf16.msra.mxu0 %v2247_v26  ;;  %2334 = vmatprep.subr.bf16.mxu1 %v2250_v5 }
 0x8a2   : > { %2335 = vmatpush1.bf16.msra.mxu1 %v2249_v9 }
 0x8a4   : > { %2734 = vmatmul.mubr.msk.bf16.vlgmr.msra.gmra.mrb[36].mxu0 %vm775_vm10, %v4973_v61 }
 0x8a5   : > { %2739 = vmatmul.mubr.msk.bf16.vlgmr.msra.gmra.mrb[36].mxu1 %vm775_vm10, %v4973_v61  ;;  %2293 = vmatprep.mubr.bf16.mxu0 %v4967_v29 }
 0x8a6   : > { %2374 = vmatprep.mubr.bf16.mxu1 %v4967_v29 }
 0x8ac   : > { %2735 = vmatmul.mubr.msk.bf16.gmra.mrb[40].mxu0 %vm775_vm10, %v4974_v58 }
 0x8ad   : > { %2740 = vmatmul.mubr.msk.bf16.gmra.mrb[40].mxu1 %vm775_vm10, %v4974_v58  ;;  %2303 = vmatprep.mubr.bf16.mxu0 %v4967_v29 }
 0x8ae   : > { %2384 = vmatprep.mubr.bf16.mxu1 %v4967_v29 }
 0x8b4   : > { %2736 = vmatmul.mubr.msk.bf16.gmra.mrb[44].mxu0 %vm775_vm10, %v4975_v60 }
 0x8b5   : > { %2741 = vmatmul.mubr.msk.bf16.gmra.mrb[44].mxu1 %vm775_vm10, %v4975_v60  ;;  %2313 = vmatprep.mubr.bf16.mxu0 %v4967_v29 }
 0x8b6   : > { %2394 = vmatprep.mubr.bf16.mxu1 %v4967_v29 }
 0x8bc   : > { %2737 = vmatmul.mubr.msk.bf16.gmra.mrb[48].mxu0 %vm775_vm10, %v4976_v37 }
 0x8bd   : > { %2742 = vmatmul.mubr.msk.bf16.gmra.mrb[48].mxu1 %vm775_vm10, %v4976_v37  ;;  %2323 = vmatprep.mubr.bf16.mxu0 %v4967_v29 }
 0x8be   : > { %2404 = vmatprep.mubr.bf16.mxu1 %v4967_v29 }
 0x8c4   : > { %2738 = vmatmul.mubr.msk.bf16.gmra.mrb[52].mxu0 %vm775_vm10, %v4977_v54 }
 0x8c5   : > { %2743 = vmatmul.mubr.msk.bf16.gmra.mrb[52].mxu1 %vm775_vm10, %v4977_v54 }
 0x977   : > { %v2285_v15 = vpop.f32.mrb[36].mxu0 }
 0x978   : > { %v2366_v40 = vpop.f32.mrb[36].mxu1  ;;  %2413 = vrot.lane.b32.xlu0 %v2285_v15, %s2952_s10  ;;  %v2287_v53 = vpop.f32.mrb[37].mxu0 }
 0x979   : > { %v2368_v12 = vpop.f32.mrb[37].mxu1  ;;  %v2289_v34 = vpop.f32.mrb[38].mxu0 }
 0x97a   : > { %2419 = vrot.lane.b32.xlu1 %v2368_v12, %s2952_s10  ;;  %v2370_v18 = vpop.f32.mrb[38].mxu1  ;;  %v2291_v42 = vpop.f32.mrb[39].mxu0 }
 0x97b   : > { %v2372_v10 = vpop.f32.mrb[39].mxu1 }
 0x97c   : > { %2417 = vrot.lane.b32.xlu0 %v2366_v40, %s2952_s10 }
 0x97e   : > { %2433 = vrot.lane.b32.xlu1 %v2370_v18, %s2951_s9 }
 0x97f   : > { %v2295_v29 = vpop.f32.mrb[40].mxu0 }
 0x980   : > { %2415 = vrot.lane.b32.xlu0 %v2287_v53, %s2952_s10  ;;  %v2376_v38 = vpop.f32.mrb[40].mxu1  ;;  %v2297_v4 = vpop.f32.mrb[41].mxu0 }
 0x981   : > { %v2378_v39 = vpop.f32.mrb[41].mxu1  ;;  %v2299_v27 = vpop.f32.mrb[42].mxu0 }
 0x982   : > { %2435 = vrot.lane.b32.xlu1 %v2372_v10, %s2951_s9  ;;  %v2380_v51 = vpop.f32.mrb[42].mxu1  ;;  %v2301_v25 = vpop.f32.mrb[43].mxu0 }
 0x983   : > { %v2382_v19 = vpop.f32.mrb[43].mxu1 }
 0x984   : > { %2429 = vrot.lane.b32.xlu0 %v2289_v34, %s2951_s9 }
 0x986   : > { %2431 = vrot.lane.b32.xlu1 %v2291_v42, %s2951_s9 }
 0x987   : > { %v4623_v50 = vpop.f32.mrb[44].mxu0 }
 0x988   : > { %2445 = vrot.lane.b32.xlu0 %v2295_v29, %s2953_s8  ;;  %v4626_v14 = vpop.f32.mrb[45].mxu0  ;;  %v4628_v20 = vpop.f32.mrb[44].mxu1 }
 0x989   : > { %v2309_v31 = vpop.f32.mrb[46].mxu0  ;;  %v4630_v59 = vpop.f32.mrb[45].mxu1 }
 0x98a   : > { %2451 = vrot.lane.b32.xlu1 %v2378_v39, %s2953_s8  ;;  %v2311_v56 = vpop.f32.mrb[47].mxu0  ;;  %v2390_v24 = vpop.f32.mrb[46].mxu1 }
 0x98b   : > { %v2392_v8 = vpop.f32.mrb[47].mxu1 }
 0x98c   : > { %2449 = vrot.lane.b32.xlu0 %v2376_v38, %s2953_s8 }
 0x98e   : > { %2465 = vrot.lane.b32.xlu1 %v2380_v51, %s2954_s11 }
 0x98f   : > { %v2315_v55 = vpop.f32.mrb[48].mxu0 }
 0x990   : > { %2447 = vrot.lane.b32.xlu0 %v2297_v4, %s2953_s8  ;;  %v2396_v0 = vpop.f32.mrb[48].mxu1  ;;  %v2317_v7 = vpop.f32.mrb[49].mxu0 }
 0x991   : > { %v2398_v23 = vpop.f32.mrb[49].mxu1  ;;  %v2319_v1 = vpop.f32.mrb[50].mxu0 }
 0x992   : > { %2467 = vrot.lane.b32.xlu1 %v2382_v19, %s2954_s11  ;;  %v2400_v32 = vpop.f32.mrb[50].mxu1  ;;  %v2321_v57 = vpop.f32.mrb[51].mxu0 }
 0x993   : > { %v2402_v13 = vpop.f32.mrb[51].mxu1 }
 0x994   : > { %2461 = vrot.lane.b32.xlu0 %v2299_v27, %s2954_s11 }
 0x996   : > { %2463 = vrot.lane.b32.xlu1 %v2301_v25, %s2954_s11 }
 0x997   : > { %v2325_v47 = vpop.f32.mrb[52].mxu0 }
 0x998   : > { %2477 = vrot.lane.b32.xlu0 %v2309_v31, %s2955_s12  ;;  %v2406_v48 = vpop.f32.mrb[52].mxu1  ;;  %v2327_v26 = vpop.f32.mrb[53].mxu0 }
 0x999   : > { %v2408_v33 = vpop.f32.mrb[53].mxu1  ;;  %v2329_v30 = vpop.f32.mrb[54].mxu0 }
 0x99a   : > { %2479 = vrot.lane.b32.xlu1 %v2311_v56, %s2955_s12  ;;  %v2410_v2 = vpop.f32.mrb[54].mxu1  ;;  %v2330_v9 = vpop.f32.mrb[55].mxu0 }
 0x99b   : > { %v2411_v5 = vpop.f32.mrb[55].mxu1 }
 0x99c   : > { %2481 = vrot.lane.b32.xlu0 %v2390_v24, %s2955_s12 }
 0x99e   : > { %2497 = vrot.lane.b32.xlu1 %v2396_v0, %s2956_s13 }
 0x9a0   : > { %2483 = vrot.lane.b32.xlu0 %v2392_v8, %s2955_s12 }
 0x9a2   : > { %2495 = vrot.lane.b32.xlu1 %v2317_v7, %s2956_s13 }
 0x9a4   : > { %2493 = vrot.lane.b32.xlu0 %v2315_v55, %s2956_s13 }
 0x9a6   : > { %2499 = vrot.lane.b32.xlu1 %v2398_v23, %s2956_s13 }
 0x9a8   : > { %2509 = vrot.lane.b32.xlu0 %v2319_v1, %s2957_s14 }
 0x9aa   : > { %2511 = vrot.lane.b32.xlu1 %v2321_v57, %s2957_s14 }
 0x9ac   : > { %2513 = vrot.lane.b32.xlu0 %v2400_v32, %s2957_s14 }
 0x9ae   : > { %2529 = vrot.lane.b32.xlu1 %v2406_v48, %s2958_s15 }
 0x9b0   : > { %2525 = vrot.lane.b32.xlu0 %v2325_v47, %s2958_s15 }
 0x9b2   : > { %2527 = vrot.lane.b32.xlu1 %v2327_v26, %s2958_s15 }
 0x9b4   : > { %2515 = vrot.lane.b32.xlu0 %v2402_v13, %s2957_s14  ;;  %v2854_v13 = vld [vmem:[%s4821_s5 + $0x40] sm:$0xff] }
 0x9b6   : > { %2531 = vrot.lane.b32.xlu1 %v2408_v33, %s2958_s15 }
 0x9ea   : > { %v2414_v61 = vpop.permute.xlu0 %2413 }
 0x9ec   : > { %v2420_v58 = vpop.permute.xlu1 %2419 }
 0x9ed   : > { %v2424_v25 = vsel %vm375_vm0, %v2420_v58, %v2414_v61 }
 0x9ee   : > { %v2418_v60 = vpop.permute.xlu0 %2417  ;;  %v2425_v24 = vmul.f32 %v4403_v63, %v2424_v25  ;;  %v2856_v25 = vld [vmem:[%s4821_s5 + $0xc8] sm:$0xff] }
 0x9ef   : > { %v2421_v19 = vsel %vm375_vm0, %v2418_v60, %v2420_v58 }
 0x9f0   : > { %v2434_v37 = vpop.permute.xlu1 %2433  ;;  %v2428_v8 = vmul.f32 %v4422_v16, %v2421_v19  ;;  %v2541_v33 = vadd.f32 %v2425_v24, %v3079_v28 }
 0x9f2   : > { %v2416_v54 = vpop.permute.xlu0 %2415  ;;  %v2544_v30 = vadd.f32 %v2428_v8, %v3079_v28 }
 0x9f3   : > { %v2422_v7 = vsel %vm375_vm0, %v2416_v54, %v2418_v60  ;;  %v2423_v23 = vsel %vm375_vm0, %v2414_v61, %v2416_v54  ;;  %v2855_v61 = vld [vmem:[%s4821_s5 + $0x20] sm:$0xff] }
 0x9f4   : > { %v2436_v15 = vpop.permute.xlu1 %2435  ;;  %v2426_v2 = vmul.f32 %v4389_v21, %v2423_v23  ;;  %v2427_v9 = vmul.f32 %v4416_v35, %v2422_v7 }
 0x9f5   : > { %v2437_v32 = vsel %vm388_vm1, %v2434_v37, %v2436_v15 }
 0x9f6   : > { %v2430_v40 = vpop.permute.xlu0 %2429  ;;  %v2444_v5 = vmul.f32 %v4438_v17, %v2437_v32  ;;  %v2860_v32 = vld [vmem:[%s4821_s5 + $0xa8] sm:$0xff] }
 0x9f7   : > { %v2440_v63 = vsel %vm388_vm1, %v2436_v15, %v2430_v40 }
 0x9f8   : > { %v2432_v53 = vpop.permute.xlu1 %2431  ;;  %v2441_v58 = vmul.f32 %v2855_v61, %v2440_v63 }
 0x9f9   : > { %v2438_v16 = vsel %vm388_vm1, %v2432_v53, %v2434_v37  ;;  %v2439_v57 = vsel %vm388_vm1, %v2430_v40, %v2432_v53 }
 0x9fa   : > { %v2446_v12 = vpop.permute.xlu0 %2445  ;;  %v2442_v54 = vmul.f32 %v4395_v36, %v2439_v57  ;;  %v2443_v21 = vmul.f32 %v4432_v45, %v2438_v16  ;;  %v2861_v57 = vld [vmem:[%s4821_s5 + $0xd0] sm:$0xff] }
 0x9fc   : > { %v2452_v34 = vpop.permute.xlu1 %2451 }
 0x9fd   : > { %v2456_v55 = vsel %vm401_vm2, %v2452_v34, %v2446_v12 }
 0x9fe   : > { %v2450_v18 = vpop.permute.xlu0 %2449  ;;  %v2457_v47 = vmul.f32 %v2854_v13, %v2456_v55  ;;  %v2858_v55 = vld [vmem:[%s4821_s5 + $0x60] sm:$0xff] }
 0x9ff   : > { %v2453_v0 = vsel %vm401_vm2, %v2450_v18, %v2452_v34 }
 0xa00   : > { %v2466_v42 = vpop.permute.xlu1 %2465  ;;  %v2460_v48 = vmul.f32 %v4476_v22, %v2453_v0  ;;  %v2545_v15 = vadd.f32 %v2457_v47, %v2441_v58  ;;  %v2862_v47 = vld [vmem:[%s4821_s5 + $0xd8] sm:$0xff] }
 0xa01   : > { %v2864_v58 = vld [vmem:[%s4821_s5 + $0xb8] sm:$0xff] }
 0xa02   : > { %v2448_v10 = vpop.permute.xlu0 %2447  ;;  %v2548_v40 = vadd.f32 %v2460_v48, %v2444_v5 }
 0xa03   : > { %v2454_v60 = vsel %vm401_vm2, %v2448_v10, %v2450_v18  ;;  %v2455_v22 = vsel %vm401_vm2, %v2446_v12, %v2448_v10 }
 0xa04   : > { %v2468_v29 = vpop.permute.xlu1 %2467  ;;  %v2458_v36 = vmul.f32 %v4448_v43, %v2455_v22  ;;  %v2459_v45 = vmul.f32 %v4470_v46, %v2454_v60  ;;  %v2561_v22 = vadd.f32 %v2545_v15, %v2541_v33 }
 0xa06   : > { %v2462_v38 = vpop.permute.xlu0 %2461 }
 0xa07   : > { %v2472_v53 = vsel %vm414_vm3, %v2468_v29, %v2462_v38 }
 0xa08   : > { %v2464_v4 = vpop.permute.xlu1 %2463  ;;  %v2473_v0 = vmul.f32 %v2858_v55, %v2472_v53 }
 0xa09   : > { %v2471_v34 = vsel %vm414_vm3, %v2462_v38, %v2464_v4  ;;  %v2857_v38 = vld [vmem:[%s4821_s5 + $0xc0] sm:$0xff]  ;;  %v2470_v7 = vsel %vm414_vm3, %v2464_v4, %v2466_v42  ;;  %v2543_v4 = vadd.f32 %v2427_v9, %v3079_v28 }
 0xa0a   : > { %v4655_v39 = vpop.permute.xlu0 %2477  ;;  %v2474_v23 = vmul.f32 %v4454_v62, %v2471_v34  ;;  %v2542_v62 = vadd.f32 %v2426_v2, %v3079_v28  ;;  %v2475_v2 = vmul.f32 %v4486_v11, %v2470_v7  ;;  %v2863_v28 = vld [vmem:[%s4821_s5 + $0xb0] sm:$0xff] }
 0xa0c   : > { %v2480_v27 = vpop.permute.xlu1 %2479 }
 0xa0d   : > { %v2487_v18 = vsel %vm427_vm4, %v4655_v39, %v2480_v27 }
 0xa0e   : > { %v2482_v51 = vpop.permute.xlu0 %2481 }
 0xa0f   : > { %v2486_v10 = vsel %vm427_vm4, %v2480_v27, %v2482_v51  ;;  %v2469_v27 = vsel %vm414_vm3, %v2466_v42, %v2468_v29 }
 0xa10   : > { %v2498_v31 = vpop.permute.xlu1 %2497  ;;  %v2490_v29 = vmul.f32 %v2860_v32, %v2486_v10  ;;  %v2869_v32 = vld [vmem:[%s4821_s5 + $0xf0] sm:$0xff] }
 0xa12   : > { %v2484_v56 = vpop.permute.xlu0 %2483 }
 0xa13   : > { %v2485_v63 = vsel %vm427_vm4, %v2482_v51, %v2484_v56  ;;  %v2488_v16 = vsel %vm427_vm4, %v2484_v56, %v4655_v39  ;;  %v2546_v51 = vadd.f32 %v2458_v36, %v2442_v54  ;;  %v2476_v56 = vmul.f32 %v4492_v6, %v2469_v27 }
 0xa14   : > { %v2496_v1 = vpop.permute.xlu1 %2495  ;;  %v2491_v9 = vmul.f32 %v2863_v28, %v2485_v63  ;;  %v2492_v60 = vmul.f32 %v2864_v58, %v2488_v16  ;;  %v2549_v54 = vadd.f32 %v2473_v0, %v4623_v50  ;;  %v2551_v50 = vadd.f32 %v2475_v2, %v4628_v20  ;;  %v2867_v20 = vld [vmem:[%s4821_s5 + $0x100] sm:$0xff]  ;;  %v2870_v63 = vld [vmem:[%s4821_s5 + $0xf8] sm:$0xff] }
 0xa15   : > { %v2502_v35 = vsel %vm440_vm6, %v2496_v1, %v2498_v31  ;;  %v2562_v34 = vadd.f32 %v2546_v51, %v2542_v62 }
 0xa16   : > { %v2494_v26 = vpop.permute.xlu0 %2493  ;;  %v2506_v19 = vmul.f32 %v2856_v25, %v2502_v35  ;;  %v2866_v25 = vld [vmem:[%s4821_s5 + $0xe8] sm:$0xff] }
 0xa17   : > { %v2503_v17 = vsel %vm440_vm6, %v2494_v26, %v2496_v1 }
 0xa18   : > { %v2500_v37 = vpop.permute.xlu1 %2499  ;;  %v2505_v24 = vmul.f32 %v2857_v38, %v2503_v17  ;;  %v2554_v5 = vadd.f32 %v2506_v19, %v2490_v29  ;;  %v2868_v38 = vld [vmem:[%s4821_s5 + $0x108] sm:$0xff] }
 0xa19   : > { %v2501_v43 = vsel %vm440_vm6, %v2498_v31, %v2500_v37  ;;  %v2504_v46 = vsel %vm440_vm6, %v2500_v37, %v2494_v26  ;;  %v2859_v31 = vld [vmem:[%s4821_s5 + $0xa0] sm:$0xff]  ;;  %v2547_v26 = vadd.f32 %v2459_v45, %v2443_v21  ;;  %v2564_v37 = vadd.f32 %v2548_v40, %v2544_v30 }
 0xa1a   : > { %v4705_v12 = vpop.permute.xlu0 %2509  ;;  %v2489_v1 = vmul.f32 %v2859_v31, %v2487_v18  ;;  %v2507_v13 = vmul.f32 %v2861_v57, %v2501_v43  ;;  %v2508_v48 = vmul.f32 %v2862_v47, %v2504_v46  ;;  %v2550_v21 = vadd.f32 %v2474_v23, %v4626_v14  ;;  %v2865_v40 = vld [vmem:[%s4821_s5 + $0xe0] sm:$0xff]  ;;  %v2871_v57 = vld [vmem:[%s4821_s5 + $0x110] sm:$0xff]  ;;  %v2872_v47 = vld [vmem:[%s4821_s5 + $0x118] sm:$0xff] }
 0xa1b   : > { %v2563_v36 = vadd.f32 %v2547_v26, %v2543_v4  ;;  %v2552_v30 = vadd.f32 %v2476_v56, %v4630_v59 }
 0xa1c   : > { %v2512_v8 = vpop.permute.xlu1 %2511  ;;  %v2553_v61 = vadd.f32 %v2505_v24, %v2489_v1  ;;  %v2555_v6 = vadd.f32 %v2507_v13, %v2491_v9  ;;  %v2556_v17 = vadd.f32 %v2508_v48, %v2492_v60  ;;  %v2566_v45 = vadd.f32 %v2554_v5, %v2550_v21 }
 0xa1d   : > { %v2519_v11 = vsel %vm453_vm5, %v4705_v12, %v2512_v8 }
 0xa1e   : > { %v2514_v42 = vpop.permute.xlu0 %2513  ;;  %v2565_v18 = vadd.f32 %v2553_v61, %v2549_v54  ;;  %v2521_v10 = vmul.f32 %v2865_v40, %v2519_v11  ;;  %v2567_v46 = vadd.f32 %v2555_v6, %v2551_v50  ;;  %v2570_v7 = vadd.f32 %v2566_v45, %v2562_v34 }
 0xa1f   : > { %v2518_v53 = vsel %vm453_vm5, %v2512_v8, %v2514_v42  ;;  %v2568_v8 = vadd.f32 %v2556_v17, %v2552_v30 }
 0xa20   : > { %v2530_v39 = vpop.permute.xlu1 %2529  ;;  %v2522_v19 = vmul.f32 %v2866_v25, %v2518_v53  ;;  %v2569_v0 = vadd.f32 %v2565_v18, %v2561_v22  ;;  %v2571_v51 = vadd.f32 %v2567_v46, %v2563_v36 }
 0xa21   : > { %v2572_v26 = vadd.f32 %v2568_v8, %v2564_v37 }
 0xa22   : > { %v2526_v35 = vpop.permute.xlu0 %2525 }
 0xa24   : > { %v2528_v33 = vpop.permute.xlu1 %2527 }
 0xa25   : > { %v2534_v14 = vsel %vm466_vm7, %v2528_v33, %v2530_v39  ;;  %v2535_v15 = vsel %vm466_vm7, %v2526_v35, %v2528_v33 }
 0xa26   : > { %v2537_v59 = vmul.f32 %v2867_v20, %v2535_v15  ;;  %v2538_v24 = vmul.f32 %v2868_v38, %v2534_v14  ;;  %v2516_v43 = vpop.permute.xlu0 %2515 }
 0xa27   : > { %v2517_v27 = vsel %vm453_vm5, %v2514_v42, %v2516_v43  ;;  %v2520_v55 = vsel %vm453_vm5, %v2516_v43, %v4705_v12 }
 0xa28   : > { %v2557_v23 = vadd.f32 %v2537_v59, %v2521_v10  ;;  %v2558_v31 = vadd.f32 %v2538_v24, %v2522_v19  ;;  %v2532_v1 = vpop.permute.xlu1 %2531  ;;  %v2523_v29 = vmul.f32 %v2869_v32, %v2517_v27  ;;  %v2524_v16 = vmul.f32 %v2870_v63, %v2520_v55 }
 0xa29   : > { %v2533_v42 = vsel %vm466_vm7, %v2530_v39, %v2532_v1  ;;  %v2536_v12 = vsel %vm466_vm7, %v2532_v1, %v2526_v35 }
 0xa2a   : > { %v2573_v62 = vadd.f32 %v2569_v0, %v2557_v23  ;;  %v2574_v4 = vadd.f32 %v2570_v7, %v2558_v31  ;;  %v2539_v13 = vmul.f32 %v2871_v57, %v2533_v42  ;;  %v2540_v48 = vmul.f32 %v2872_v47, %v2536_v12 }
 0xa2c   : > { %v2577_v41 = vsub.f32 %v4301_v49, %v2573_v62  ;;  %v2578_v5 = vsub.f32 %v4307_v52, %v2574_v4  ;;  %v2559_v61 = vadd.f32 %v2539_v13, %v2523_v29  ;;  %v2560_v39 = vadd.f32 %v2540_v48, %v2524_v16 }
 0xa2e   : > { %2581 = vst [vmem:[%s3056_s30] sm:$0xff] %v2577_v41  ;;  %v2575_v56 = vadd.f32 %v2571_v51, %v2559_v61  ;;  %v2576_v2 = vadd.f32 %v2572_v26, %v2560_v39  ;;  %2582 = vst [vmem:[%s3056_s30 + $0x8] sm:$0xff] %v2578_v5 }
 0xa30   : > { %v2579_v28 = vsub.f32 %v4328_v44, %v2575_v56  ;;  %v2580_v9 = vsub.f32 %v4321_v3, %v2576_v2 }
 0xa32   : > { %2583 = vst [vmem:[%s3056_s30 + $0x10] sm:$0xff] %v2579_v28  ;;  %2584 = vst [vmem:[%s3056_s30 + $0x18] sm:$0xff] %v2580_v9 }
 0xa33 PF: > { %s18_s24 = sadd.s32 1, %s2918_s24  }
 0xa34   : > { %p15_p2 = scmp.ge.s32.totalorder %s18_s24, 4  }
 0xa36   :  { %17 = sbr.rel (!%p15_p2) target bundleno = 1 (0x1), region = 101 }
 0xa3d   :  { %2607 = vsyncpa [#allocation3], 1 }
 0xa3e   :  { %2609 = vsyncpa [#allocation3 + $0x1], 1 }

</bundles_post_ra>
